<compile_context>
chip_gen: v7x
topology: tpu7x:2x2x1
jax: 0.10.0
libtpu: 0.0.40
codegen_flags: <defaults>
</compile_context>

<pallas_src>
import jax
import jax.numpy as jnp
from jax.experimental import pallas as pl
from jax.experimental.pallas import tpu as pltpu

SELU_ALPHA = 1.6732632423543772
SELU_SCALE = 1.0507009873554805


def _selu(x):
    return SELU_SCALE * jnp.where(x > 0, x, SELU_ALPHA * (jnp.exp(x) - 1.0))


def _gru_evidential_kernel(
    x_ref,
    # GRU layer 0 (per-gate, pre-transposed (in, H); biases (1, H))
    w0xr_ref, w0xz_ref, w0xn_ref,
    w0hr_ref, w0hz_ref, w0hn_ref,
    b0r_ref, b0z_ref, b0xn_ref, b0hn_ref,
    # GRU layer 1
    w1xr_ref, w1xz_ref, w1xn_ref,
    w1hr_ref, w1hz_ref, w1hn_ref,
    b1r_ref, b1z_ref, b1xn_ref, b1hn_ref,
    # MLP head (pre-transposed)
    wf1_ref, bf1_ref, wf2_ref, bf2_ref, wf3_ref, bf3_ref,
    out_ref,
):
    x = x_ref[...]                      # (T, TB, In), time-major
    T, TB, _ = x.shape
    H = w0hr_ref.shape[0]

    def dot(a, b):
        return jnp.dot(a, b, preferred_element_type=jnp.float32)

    # Load weights once (blocks are resident; constant index maps).
    w0xr, w0xz, w0xn = w0xr_ref[...], w0xz_ref[...], w0xn_ref[...]
    w0hr, w0hz, w0hn = w0hr_ref[...], w0hz_ref[...], w0hn_ref[...]
    b0r, b0z, b0xn, b0hn = b0r_ref[...], b0z_ref[...], b0xn_ref[...], b0hn_ref[...]
    w1xr, w1xz, w1xn = w1xr_ref[...], w1xz_ref[...], w1xn_ref[...]
    w1hr, w1hz, w1hn = w1hr_ref[...], w1hz_ref[...], w1hn_ref[...]
    b1r, b1z, b1xn, b1hn = b1r_ref[...], b1z_ref[...], b1xn_ref[...], b1hn_ref[...]

    # ---- Hoisted layer-0 input projections: independent of the recurrence, so they
    # sit off the serial h-chain and pipeline freely through the MXU.  Each x[t] is a
    # cheap leading-dim slice; each per-gate result is its own (TB, H) array (no lane
    # slicing needed later).
    gx0_r, gx0_z, gx0_n = [], [], []
    for t in range(T):
        x_t = x[t]                                       # (TB, In)
        gx0_r.append(dot(x_t, w0xr) + b0r)               # b_ir + b_hr pre-added
        gx0_z.append(dot(x_t, w0xz) + b0z)               # b_iz + b_hz pre-added
        gx0_n.append(dot(x_t, w0xn) + b0xn)              # b_in only (b_hn stays in h-path)

    h0 = jnp.zeros((TB, H), dtype=jnp.float32)
    h1 = jnp.zeros((TB, H), dtype=jnp.float32)

    # T is small and static -> static unroll (switch to lax.fori_loop if T grows >~16).
    for t in range(T):
        # --- layer 0: only the hidden-path matmuls remain in the recurrence chain.
        g0hr = dot(h0, w0hr)
        g0hz = dot(h0, w0hz)
        g0hn = dot(h0, w0hn) + b0hn
        r0 = jax.nn.sigmoid(gx0_r[t] + g0hr)
        z0 = jax.nn.sigmoid(gx0_z[t] + g0hz)
        n0 = jnp.tanh(gx0_n[t] + r0 * g0hn)
        h0 = (1.0 - z0) * n0 + z0 * h0

        # --- layer 1: input is the layer-0 output at this step (dropout = identity).
        g1xr = dot(h0, w1xr) + b1r
        g1xz = dot(h0, w1xz) + b1z
        g1xn = dot(h0, w1xn) + b1xn
        g1hr = dot(h1, w1hr)
        g1hz = dot(h1, w1hz)
        g1hn = dot(h1, w1hn) + b1hn
        r1 = jax.nn.sigmoid(g1xr + g1hr)
        z1 = jax.nn.sigmoid(g1xz + g1hz)
        n1 = jnp.tanh(g1xn + r1 * g1hn)
        h1 = (1.0 - z1) * n1 + z1 * h1

    # ---- SELU MLP head on the final top-layer hidden state; single merged (TB, 2) store.
    out = _selu(dot(h1, wf1_ref[...]) + bf1_ref[...])
    out = _selu(dot(out, wf2_ref[...]) + bf2_ref[...])
    out_ref[...] = dot(out, wf3_ref[...]) + bf3_ref[...]


@jax.jit
def gru_evidential_forward(x, params):
    """x: (B, T, input_size), params: PyTorch-layout weights. Returns (mu, log_var)."""
    B, T, In = x.shape
    H = params["weight_hh_l0"].shape[1]

    def split_w(w):   # (3H, K) -> three per-gate (K, H), pre-transposed
        return w[0:H].T, w[H:2 * H].T, w[2 * H:3 * H].T

    def split_b(b):   # (3H,) -> three (1, H)
        return b[0:H][None, :], b[H:2 * H][None, :], b[2 * H:3 * H][None, :]

    w0xr, w0xz, w0xn = split_w(params["weight_ih_l0"])
    w0hr, w0hz, w0hn = split_w(params["weight_hh_l0"])
    bi0r, bi0z, bi0n = split_b(params["bias_ih_l0"])
    bh0r, bh0z, bh0n = split_b(params["bias_hh_l0"])
    b0r, b0z = bi0r + bh0r, bi0z + bh0z

    w1xr, w1xz, w1xn = split_w(params["weight_ih_l1"])
    w1hr, w1hz, w1hn = split_w(params["weight_hh_l1"])
    bi1r, bi1z, bi1n = split_b(params["bias_ih_l1"])
    bh1r, bh1z, bh1n = split_b(params["bias_hh_l1"])
    b1r, b1z = bi1r + bh1r, bi1z + bh1z

    wf1, bf1 = params["fc1_w"].T, params["fc1_b"][None, :]
    wf2, bf2 = params["fc2_w"].T, params["fc2_b"][None, :]
    wf3, bf3 = params["fc3_w"].T, params["fc3_b"][None, :]

    weights = (w0xr, w0xz, w0xn, w0hr, w0hz, w0hn, b0r, b0z, bi0n, bh0n,
               w1xr, w1xz, w1xn, w1hr, w1hz, w1hn, b1r, b1z, bi1n, bh1n,
               wf1, bf1, wf2, bf2, wf3, bf3)

    x_tm = jnp.transpose(x, (1, 0, 2))        # (T, B, In), time-major

    # Batch tile: full batch for small/odd B, otherwise a multiple of 8 (<=128) that
    # divides B (keeps every block full; sized well under v7x's 64 MiB VMEM).
    if B % 8 == 0:
        tb = min(B, 128)
        while B % tb != 0:
            tb //= 2
    else:
        tb = B
    grid = (pl.cdiv(B, tb),)

    x_spec = pl.BlockSpec((T, tb, In), lambda i: (0, i, 0))
    w_specs = [pl.BlockSpec(w.shape, lambda i: (0, 0)) for w in weights]
    out_spec = pl.BlockSpec((tb, 2), lambda i: (i, 0))

    out = pl.pallas_call(
        _gru_evidential_kernel,
        out_shape=jax.ShapeDtypeStruct((B, 2), jnp.float32),
        grid_spec=pltpu.PrefetchScalarGridSpec(
            num_scalar_prefetch=0,
            grid=grid,
            in_specs=[x_spec] + w_specs,
            out_specs=out_spec,
        ),
        compiler_params=pltpu.CompilerParams(
            dimension_semantics=("parallel",),
            vmem_limit_bytes=32 * 1024 * 1024,
        ),
    )(x_tm, *weights)

    return out[:, 0:1], out[:, 1:2]


# ---------------------------------------------------------------------------
# Pure-JAX reference implementing PyTorch nn.GRU / nn.Linear conventions directly.
# ---------------------------------------------------------------------------
def _gru_layer_ref(x_seq, w_ih, w_hh, b_ih, b_hh):
    B, T, _ = x_seq.shape
    H = w_hh.shape[1]
    h = jnp.zeros((B, H), jnp.float32)
    outs = []
    for t in range(T):
        x_t = x_seq[:, t, :]
        gi = x_t @ w_ih.T + b_ih
        gh = h @ w_hh.T + b_hh
        r = jax.nn.sigmoid(gi[:, :H] + gh[:, :H])
        z = jax.nn.sigmoid(gi[:, H:2 * H] + gh[:, H:2 * H])
        n = jnp.tanh(gi[:, 2 * H:] + r * gh[:, 2 * H:])
        h = (1.0 - z) * n + z * h
        outs.append(h)
    return jnp.stack(outs, axis=1)


def _reference_forward(x, p):
    out0 = _gru_layer_ref(x, p["weight_ih_l0"], p["weight_hh_l0"],
                          p["bias_ih_l0"], p["bias_hh_l0"])
    out1 = _gru_layer_ref(out0, p["weight_ih_l1"], p["weight_hh_l1"],
                          p["bias_ih_l1"], p["bias_hh_l1"])
    h = out1[:, -1, :]
    h = _selu(h @ p["fc1_w"].T + p["fc1_b"])
    h = _selu(h @ p["fc2_w"].T + p["fc2_b"])
    out = h @ p["fc3_w"].T + p["fc3_b"]
    return out[:, 0:1], out[:, 1:2]


def make_params(input_size, hidden_size, key):
    """PyTorch-layout parameters with PyTorch-style uniform init."""
    H = hidden_size
    keys = jax.random.split(key, 14)
    u = lambda k, shape, bound: jax.random.uniform(k, shape, jnp.float32, -bound, bound)
    kg = 1.0 / jnp.sqrt(jnp.float32(H))
    return {
        "weight_ih_l0": u(keys[0], (3 * H, input_size), kg),
        "weight_hh_l0": u(keys[1], (3 * H, H), kg),
        "bias_ih_l0": u(keys[2], (3 * H,), kg),
        "bias_hh_l0": u(keys[3], (3 * H,), kg),
        "weight_ih_l1": u(keys[4], (3 * H, H), kg),
        "weight_hh_l1": u(keys[5], (3 * H, H), kg),
        "bias_ih_l1": u(keys[6], (3 * H,), kg),
        "bias_hh_l1": u(keys[7], (3 * H,), kg),
        "fc1_w": u(keys[8], (256, H), 1.0 / jnp.sqrt(jnp.float32(H))),
        "fc1_b": u(keys[9], (256,), 1.0 / jnp.sqrt(jnp.float32(H))),
        "fc2_w": u(keys[10], (128, 256), 1.0 / jnp.sqrt(256.0)),
        "fc2_b": u(keys[11], (128,), 1.0 / jnp.sqrt(256.0)),
        "fc3_w": u(keys[12], (2, 128), 1.0 / jnp.sqrt(128.0)),
        "fc3_b": u(keys[13], (2,), 1.0 / jnp.sqrt(128.0)),
    }


if __name__ == "__main__":
    B, T, INPUT_SIZE, HIDDEN = 2, 8, 4, 32

    key = jax.random.PRNGKey(0)
    kx, kp = jax.random.split(key)
    x = jax.random.normal(kx, (B, T, INPUT_SIZE), dtype=jnp.float32)
    params = make_params(INPUT_SIZE, HIDDEN, kp)

    mu, log_var = gru_evidential_forward(x, params)
    jax.block_until_ready((mu, log_var))

    mu_ref, lv_ref = _reference_forward(x, params)
    assert mu.shape == (B, 1) and log_var.shape == (B, 1)
    assert jnp.allclose(mu, mu_ref, atol=1e-3, rtol=1e-3)
    assert jnp.allclose(log_var, lv_ref, atol=1e-3, rtol=1e-3)

    print("KERNEL_OK")
</pallas_src>

<mosaic_0001>
module attributes {stable_mosaic.version = 11 : i64} {
  func.func @_gru_evidential_kernel(%arg0: i32, %arg1: memref<8x2x4xf32, #tpu.memory_space<vmem>>, %arg2: memref<4x32xf32, #tpu.memory_space<vmem>>, %arg3: memref<4x32xf32, #tpu.memory_space<vmem>>, %arg4: memref<4x32xf32, #tpu.memory_space<vmem>>, %arg5: memref<32x32xf32, #tpu.memory_space<vmem>>, %arg6: memref<32x32xf32, #tpu.memory_space<vmem>>, %arg7: memref<32x32xf32, #tpu.memory_space<vmem>>, %arg8: memref<1x32xf32, #tpu.memory_space<vmem>>, %arg9: memref<1x32xf32, #tpu.memory_space<vmem>>, %arg10: memref<1x32xf32, #tpu.memory_space<vmem>>, %arg11: memref<1x32xf32, #tpu.memory_space<vmem>>, %arg12: memref<32x32xf32, #tpu.memory_space<vmem>>, %arg13: memref<32x32xf32, #tpu.memory_space<vmem>>, %arg14: memref<32x32xf32, #tpu.memory_space<vmem>>, %arg15: memref<32x32xf32, #tpu.memory_space<vmem>>, %arg16: memref<32x32xf32, #tpu.memory_space<vmem>>, %arg17: memref<32x32xf32, #tpu.memory_space<vmem>>, %arg18: memref<1x32xf32, #tpu.memory_space<vmem>>, %arg19: memref<1x32xf32, #tpu.memory_space<vmem>>, %arg20: memref<1x32xf32, #tpu.memory_space<vmem>>, %arg21: memref<1x32xf32, #tpu.memory_space<vmem>>, %arg22: memref<32x256xf32, #tpu.memory_space<vmem>>, %arg23: memref<1x256xf32, #tpu.memory_space<vmem>>, %arg24: memref<256x128xf32, #tpu.memory_space<vmem>>, %arg25: memref<1x128xf32, #tpu.memory_space<vmem>>, %arg26: memref<128x2xf32, #tpu.memory_space<vmem>>, %arg27: memref<1x2xf32, #tpu.memory_space<vmem>>, %arg28: memref<2x2xf32, #tpu.memory_space<vmem>>) attributes {dimension_semantics = [#tpu.dimension_semantics<parallel>], iteration_bounds = array<i64: 1>, scalar_prefetch = 0 : i64, scratch_operands = 0 : i64, tpu.core_type = #tpu.core_type<tc>, window_params = [{transform_indices = @transform_0, window_bounds = array<i64: 8, 2, 4>}, {pipeline_mode = #tpu.pipeline_mode<synchronous>, transform_indices = @transform_1, window_bounds = array<i64: 4, 32>}, {pipeline_mode = #tpu.pipeline_mode<synchronous>, transform_indices = @transform_2, window_bounds = array<i64: 4, 32>}, {pipeline_mode = #tpu.pipeline_mode<synchronous>, transform_indices = @transform_3, window_bounds = array<i64: 4, 32>}, {pipeline_mode = #tpu.pipeline_mode<synchronous>, transform_indices = @transform_4, window_bounds = array<i64: 32, 32>}, {pipeline_mode = #tpu.pipeline_mode<synchronous>, transform_indices = @transform_5, window_bounds = array<i64: 32, 32>}, {pipeline_mode = #tpu.pipeline_mode<synchronous>, transform_indices = @transform_6, window_bounds = array<i64: 32, 32>}, {pipeline_mode = #tpu.pipeline_mode<synchronous>, transform_indices = @transform_7, window_bounds = array<i64: 1, 32>}, {pipeline_mode = #tpu.pipeline_mode<synchronous>, transform_indices = @transform_8, window_bounds = array<i64: 1, 32>}, {pipeline_mode = #tpu.pipeline_mode<synchronous>, transform_indices = @transform_9, window_bounds = array<i64: 1, 32>}, {pipeline_mode = #tpu.pipeline_mode<synchronous>, transform_indices = @transform_10, window_bounds = array<i64: 1, 32>}, {pipeline_mode = #tpu.pipeline_mode<synchronous>, transform_indices = @transform_11, window_bounds = array<i64: 32, 32>}, {pipeline_mode = #tpu.pipeline_mode<synchronous>, transform_indices = @transform_12, window_bounds = array<i64: 32, 32>}, {pipeline_mode = #tpu.pipeline_mode<synchronous>, transform_indices = @transform_13, window_bounds = array<i64: 32, 32>}, {pipeline_mode = #tpu.pipeline_mode<synchronous>, transform_indices = @transform_14, window_bounds = array<i64: 32, 32>}, {pipeline_mode = #tpu.pipeline_mode<synchronous>, transform_indices = @transform_15, window_bounds = array<i64: 32, 32>}, {pipeline_mode = #tpu.pipeline_mode<synchronous>, transform_indices = @transform_16, window_bounds = array<i64: 32, 32>}, {pipeline_mode = #tpu.pipeline_mode<synchronous>, transform_indices = @transform_17, window_bounds = array<i64: 1, 32>}, {pipeline_mode = #tpu.pipeline_mode<synchronous>, transform_indices = @transform_18, window_bounds = array<i64: 1, 32>}, {pipeline_mode = #tpu.pipeline_mode<synchronous>, transform_indices = @transform_19, window_bounds = array<i64: 1, 32>}, {pipeline_mode = #tpu.pipeline_mode<synchronous>, transform_indices = @transform_20, window_bounds = array<i64: 1, 32>}, {pipeline_mode = #tpu.pipeline_mode<synchronous>, transform_indices = @transform_21, window_bounds = array<i64: 32, 256>}, {pipeline_mode = #tpu.pipeline_mode<synchronous>, transform_indices = @transform_22, window_bounds = array<i64: 1, 256>}, {pipeline_mode = #tpu.pipeline_mode<synchronous>, transform_indices = @transform_23, window_bounds = array<i64: 256, 128>}, {pipeline_mode = #tpu.pipeline_mode<synchronous>, transform_indices = @transform_24, window_bounds = array<i64: 1, 128>}, {pipeline_mode = #tpu.pipeline_mode<synchronous>, transform_indices = @transform_25, window_bounds = array<i64: 128, 2>}, {pipeline_mode = #tpu.pipeline_mode<synchronous>, transform_indices = @transform_26, window_bounds = array<i64: 1, 2>}, {transform_indices = @transform_27, window_bounds = array<i64: 2, 2>}]} {
    %c0 = arith.constant 0 : index
    %c0_0 = arith.constant 0 : index
    %c0_1 = arith.constant 0 : index
    %0 = vector.load %arg1[%c0, %c0_0, %c0_1] : memref<8x2x4xf32, #tpu.memory_space<vmem>>, vector<8x2x4xf32>
    %c0_2 = arith.constant 0 : index
    %c0_3 = arith.constant 0 : index
    %1 = vector.load %arg2[%c0_2, %c0_3] : memref<4x32xf32, #tpu.memory_space<vmem>>, vector<4x32xf32>
    %c0_4 = arith.constant 0 : index
    %c0_5 = arith.constant 0 : index
    %2 = vector.load %arg3[%c0_4, %c0_5] : memref<4x32xf32, #tpu.memory_space<vmem>>, vector<4x32xf32>
    %c0_6 = arith.constant 0 : index
    %c0_7 = arith.constant 0 : index
    %3 = vector.load %arg4[%c0_6, %c0_7] : memref<4x32xf32, #tpu.memory_space<vmem>>, vector<4x32xf32>
    %c0_8 = arith.constant 0 : index
    %c0_9 = arith.constant 0 : index
    %4 = vector.load %arg5[%c0_8, %c0_9] : memref<32x32xf32, #tpu.memory_space<vmem>>, vector<32x32xf32>
    %c0_10 = arith.constant 0 : index
    %c0_11 = arith.constant 0 : index
    %5 = vector.load %arg6[%c0_10, %c0_11] : memref<32x32xf32, #tpu.memory_space<vmem>>, vector<32x32xf32>
    %c0_12 = arith.constant 0 : index
    %c0_13 = arith.constant 0 : index
    %6 = vector.load %arg7[%c0_12, %c0_13] : memref<32x32xf32, #tpu.memory_space<vmem>>, vector<32x32xf32>
    %c0_14 = arith.constant 0 : index
    %c0_15 = arith.constant 0 : index
    %7 = vector.load %arg8[%c0_14, %c0_15] : memref<1x32xf32, #tpu.memory_space<vmem>>, vector<1x32xf32>
    %c0_16 = arith.constant 0 : index
    %c0_17 = arith.constant 0 : index
    %8 = vector.load %arg9[%c0_16, %c0_17] : memref<1x32xf32, #tpu.memory_space<vmem>>, vector<1x32xf32>
    %c0_18 = arith.constant 0 : index
    %c0_19 = arith.constant 0 : index
    %9 = vector.load %arg10[%c0_18, %c0_19] : memref<1x32xf32, #tpu.memory_space<vmem>>, vector<1x32xf32>
    %c0_20 = arith.constant 0 : index
    %c0_21 = arith.constant 0 : index
    %10 = vector.load %arg11[%c0_20, %c0_21] : memref<1x32xf32, #tpu.memory_space<vmem>>, vector<1x32xf32>
    %c0_22 = arith.constant 0 : index
    %c0_23 = arith.constant 0 : index
    %11 = vector.load %arg12[%c0_22, %c0_23] : memref<32x32xf32, #tpu.memory_space<vmem>>, vector<32x32xf32>
    %c0_24 = arith.constant 0 : index
    %c0_25 = arith.constant 0 : index
    %12 = vector.load %arg13[%c0_24, %c0_25] : memref<32x32xf32, #tpu.memory_space<vmem>>, vector<32x32xf32>
    %c0_26 = arith.constant 0 : index
    %c0_27 = arith.constant 0 : index
    %13 = vector.load %arg14[%c0_26, %c0_27] : memref<32x32xf32, #tpu.memory_space<vmem>>, vector<32x32xf32>
    %c0_28 = arith.constant 0 : index
    %c0_29 = arith.constant 0 : index
    %14 = vector.load %arg15[%c0_28, %c0_29] : memref<32x32xf32, #tpu.memory_space<vmem>>, vector<32x32xf32>
    %c0_30 = arith.constant 0 : index
    %c0_31 = arith.constant 0 : index
    %15 = vector.load %arg16[%c0_30, %c0_31] : memref<32x32xf32, #tpu.memory_space<vmem>>, vector<32x32xf32>
    %c0_32 = arith.constant 0 : index
    %c0_33 = arith.constant 0 : index
    %16 = vector.load %arg17[%c0_32, %c0_33] : memref<32x32xf32, #tpu.memory_space<vmem>>, vector<32x32xf32>
    %c0_34 = arith.constant 0 : index
    %c0_35 = arith.constant 0 : index
    %17 = vector.load %arg18[%c0_34, %c0_35] : memref<1x32xf32, #tpu.memory_space<vmem>>, vector<1x32xf32>
    %c0_36 = arith.constant 0 : index
    %c0_37 = arith.constant 0 : index
    %18 = vector.load %arg19[%c0_36, %c0_37] : memref<1x32xf32, #tpu.memory_space<vmem>>, vector<1x32xf32>
    %c0_38 = arith.constant 0 : index
    %c0_39 = arith.constant 0 : index
    %19 = vector.load %arg20[%c0_38, %c0_39] : memref<1x32xf32, #tpu.memory_space<vmem>>, vector<1x32xf32>
    %c0_40 = arith.constant 0 : index
    %c0_41 = arith.constant 0 : index
    %20 = vector.load %arg21[%c0_40, %c0_41] : memref<1x32xf32, #tpu.memory_space<vmem>>, vector<1x32xf32>
    %21 = vector.extract_strided_slice %0 {offsets = [0, 0, 0], sizes = [1, 2, 4], strides = [1, 1, 1]} : vector<8x2x4xf32> to vector<1x2x4xf32>
    %22 = vector.shape_cast %21 : vector<1x2x4xf32> to vector<2x4xf32>
    %cst = arith.constant dense<0.000000e+00> : vector<2x32xf32>
    %23 = tpu.matmul %22, %1, %cst {dimension_numbers = #tpu.dot_dimension_numbers<[1], [0], [0], [1], [0, 0, 1, 1], [], []>} : vector<2x4xf32>, vector<4x32xf32>, vector<2x32xf32> -> vector<2x32xf32>
    %24 = vector.broadcast %7 : vector<1x32xf32> to vector<2x32xf32>
    %25 = arith.addf %23, %24 : vector<2x32xf32>
    %cst_42 = arith.constant dense<0.000000e+00> : vector<2x32xf32>
    %26 = tpu.matmul %22, %2, %cst_42 {dimension_numbers = #tpu.dot_dimension_numbers<[1], [0], [0], [1], [0, 0, 1, 1], [], []>} : vector<2x4xf32>, vector<4x32xf32>, vector<2x32xf32> -> vector<2x32xf32>
    %27 = vector.broadcast %8 : vector<1x32xf32> to vector<2x32xf32>
    %28 = arith.addf %26, %27 : vector<2x32xf32>
    %cst_43 = arith.constant dense<0.000000e+00> : vector<2x32xf32>
    %29 = tpu.matmul %22, %3, %cst_43 {dimension_numbers = #tpu.dot_dimension_numbers<[1], [0], [0], [1], [0, 0, 1, 1], [], []>} : vector<2x4xf32>, vector<4x32xf32>, vector<2x32xf32> -> vector<2x32xf32>
    %30 = vector.broadcast %9 : vector<1x32xf32> to vector<2x32xf32>
    %31 = arith.addf %29, %30 : vector<2x32xf32>
    %32 = vector.extract_strided_slice %0 {offsets = [1, 0, 0], sizes = [1, 2, 4], strides = [1, 1, 1]} : vector<8x2x4xf32> to vector<1x2x4xf32>
    %33 = vector.shape_cast %32 : vector<1x2x4xf32> to vector<2x4xf32>
    %cst_44 = arith.constant dense<0.000000e+00> : vector<2x32xf32>
    %34 = tpu.matmul %33, %1, %cst_44 {dimension_numbers = #tpu.dot_dimension_numbers<[1], [0], [0], [1], [0, 0, 1, 1], [], []>} : vector<2x4xf32>, vector<4x32xf32>, vector<2x32xf32> -> vector<2x32xf32>
    %35 = vector.broadcast %7 : vector<1x32xf32> to vector<2x32xf32>
    %36 = arith.addf %34, %35 : vector<2x32xf32>
    %cst_45 = arith.constant dense<0.000000e+00> : vector<2x32xf32>
    %37 = tpu.matmul %33, %2, %cst_45 {dimension_numbers = #tpu.dot_dimension_numbers<[1], [0], [0], [1], [0, 0, 1, 1], [], []>} : vector<2x4xf32>, vector<4x32xf32>, vector<2x32xf32> -> vector<2x32xf32>
    %38 = vector.broadcast %8 : vector<1x32xf32> to vector<2x32xf32>
    %39 = arith.addf %37, %38 : vector<2x32xf32>
    %cst_46 = arith.constant dense<0.000000e+00> : vector<2x32xf32>
    %40 = tpu.matmul %33, %3, %cst_46 {dimension_numbers = #tpu.dot_dimension_numbers<[1], [0], [0], [1], [0, 0, 1, 1], [], []>} : vector<2x4xf32>, vector<4x32xf32>, vector<2x32xf32> -> vector<2x32xf32>
    %41 = vector.broadcast %9 : vector<1x32xf32> to vector<2x32xf32>
    %42 = arith.addf %40, %41 : vector<2x32xf32>
    %43 = vector.extract_strided_slice %0 {offsets = [2, 0, 0], sizes = [1, 2, 4], strides = [1, 1, 1]} : vector<8x2x4xf32> to vector<1x2x4xf32>
    %44 = vector.shape_cast %43 : vector<1x2x4xf32> to vector<2x4xf32>
    %cst_47 = arith.constant dense<0.000000e+00> : vector<2x32xf32>
    %45 = tpu.matmul %44, %1, %cst_47 {dimension_numbers = #tpu.dot_dimension_numbers<[1], [0], [0], [1], [0, 0, 1, 1], [], []>} : vector<2x4xf32>, vector<4x32xf32>, vector<2x32xf32> -> vector<2x32xf32>
    %46 = vector.broadcast %7 : vector<1x32xf32> to vector<2x32xf32>
    %47 = arith.addf %45, %46 : vector<2x32xf32>
    %cst_48 = arith.constant dense<0.000000e+00> : vector<2x32xf32>
    %48 = tpu.matmul %44, %2, %cst_48 {dimension_numbers = #tpu.dot_dimension_numbers<[1], [0], [0], [1], [0, 0, 1, 1], [], []>} : vector<2x4xf32>, vector<4x32xf32>, vector<2x32xf32> -> vector<2x32xf32>
    %49 = vector.broadcast %8 : vector<1x32xf32> to vector<2x32xf32>
    %50 = arith.addf %48, %49 : vector<2x32xf32>
    %cst_49 = arith.constant dense<0.000000e+00> : vector<2x32xf32>
    %51 = tpu.matmul %44, %3, %cst_49 {dimension_numbers = #tpu.dot_dimension_numbers<[1], [0], [0], [1], [0, 0, 1, 1], [], []>} : vector<2x4xf32>, vector<4x32xf32>, vector<2x32xf32> -> vector<2x32xf32>
    %52 = vector.broadcast %9 : vector<1x32xf32> to vector<2x32xf32>
    %53 = arith.addf %51, %52 : vector<2x32xf32>
    %54 = vector.extract_strided_slice %0 {offsets = [3, 0, 0], sizes = [1, 2, 4], strides = [1, 1, 1]} : vector<8x2x4xf32> to vector<1x2x4xf32>
    %55 = vector.shape_cast %54 : vector<1x2x4xf32> to vector<2x4xf32>
    %cst_50 = arith.constant dense<0.000000e+00> : vector<2x32xf32>
    %56 = tpu.matmul %55, %1, %cst_50 {dimension_numbers = #tpu.dot_dimension_numbers<[1], [0], [0], [1], [0, 0, 1, 1], [], []>} : vector<2x4xf32>, vector<4x32xf32>, vector<2x32xf32> -> vector<2x32xf32>
    %57 = vector.broadcast %7 : vector<1x32xf32> to vector<2x32xf32>
    %58 = arith.addf %56, %57 : vector<2x32xf32>
    %cst_51 = arith.constant dense<0.000000e+00> : vector<2x32xf32>
    %59 = tpu.matmul %55, %2, %cst_51 {dimension_numbers = #tpu.dot_dimension_numbers<[1], [0], [0], [1], [0, 0, 1, 1], [], []>} : vector<2x4xf32>, vector<4x32xf32>, vector<2x32xf32> -> vector<2x32xf32>
    %60 = vector.broadcast %8 : vector<1x32xf32> to vector<2x32xf32>
    %61 = arith.addf %59, %60 : vector<2x32xf32>
    %cst_52 = arith.constant dense<0.000000e+00> : vector<2x32xf32>
    %62 = tpu.matmul %55, %3, %cst_52 {dimension_numbers = #tpu.dot_dimension_numbers<[1], [0], [0], [1], [0, 0, 1, 1], [], []>} : vector<2x4xf32>, vector<4x32xf32>, vector<2x32xf32> -> vector<2x32xf32>
    %63 = vector.broadcast %9 : vector<1x32xf32> to vector<2x32xf32>
    %64 = arith.addf %62, %63 : vector<2x32xf32>
    %65 = vector.extract_strided_slice %0 {offsets = [4, 0, 0], sizes = [1, 2, 4], strides = [1, 1, 1]} : vector<8x2x4xf32> to vector<1x2x4xf32>
    %66 = vector.shape_cast %65 : vector<1x2x4xf32> to vector<2x4xf32>
    %cst_53 = arith.constant dense<0.000000e+00> : vector<2x32xf32>
    %67 = tpu.matmul %66, %1, %cst_53 {dimension_numbers = #tpu.dot_dimension_numbers<[1], [0], [0], [1], [0, 0, 1, 1], [], []>} : vector<2x4xf32>, vector<4x32xf32>, vector<2x32xf32> -> vector<2x32xf32>
    %68 = vector.broadcast %7 : vector<1x32xf32> to vector<2x32xf32>
    %69 = arith.addf %67, %68 : vector<2x32xf32>
    %cst_54 = arith.constant dense<0.000000e+00> : vector<2x32xf32>
    %70 = tpu.matmul %66, %2, %cst_54 {dimension_numbers = #tpu.dot_dimension_numbers<[1], [0], [0], [1], [0, 0, 1, 1], [], []>} : vector<2x4xf32>, vector<4x32xf32>, vector<2x32xf32> -> vector<2x32xf32>
    %71 = vector.broadcast %8 : vector<1x32xf32> to vector<2x32xf32>
    %72 = arith.addf %70, %71 : vector<2x32xf32>
    %cst_55 = arith.constant dense<0.000000e+00> : vector<2x32xf32>
    %73 = tpu.matmul %66, %3, %cst_55 {dimension_numbers = #tpu.dot_dimension_numbers<[1], [0], [0], [1], [0, 0, 1, 1], [], []>} : vector<2x4xf32>, vector<4x32xf32>, vector<2x32xf32> -> vector<2x32xf32>
    %74 = vector.broadcast %9 : vector<1x32xf32> to vector<2x32xf32>
    %75 = arith.addf %73, %74 : vector<2x32xf32>
    %76 = vector.extract_strided_slice %0 {offsets = [5, 0, 0], sizes = [1, 2, 4], strides = [1, 1, 1]} : vector<8x2x4xf32> to vector<1x2x4xf32>
    %77 = vector.shape_cast %76 : vector<1x2x4xf32> to vector<2x4xf32>
    %cst_56 = arith.constant dense<0.000000e+00> : vector<2x32xf32>
    %78 = tpu.matmul %77, %1, %cst_56 {dimension_numbers = #tpu.dot_dimension_numbers<[1], [0], [0], [1], [0, 0, 1, 1], [], []>} : vector<2x4xf32>, vector<4x32xf32>, vector<2x32xf32> -> vector<2x32xf32>
    %79 = vector.broadcast %7 : vector<1x32xf32> to vector<2x32xf32>
    %80 = arith.addf %78, %79 : vector<2x32xf32>
    %cst_57 = arith.constant dense<0.000000e+00> : vector<2x32xf32>
    %81 = tpu.matmul %77, %2, %cst_57 {dimension_numbers = #tpu.dot_dimension_numbers<[1], [0], [0], [1], [0, 0, 1, 1], [], []>} : vector<2x4xf32>, vector<4x32xf32>, vector<2x32xf32> -> vector<2x32xf32>
    %82 = vector.broadcast %8 : vector<1x32xf32> to vector<2x32xf32>
    %83 = arith.addf %81, %82 : vector<2x32xf32>
    %cst_58 = arith.constant dense<0.000000e+00> : vector<2x32xf32>
    %84 = tpu.matmul %77, %3, %cst_58 {dimension_numbers = #tpu.dot_dimension_numbers<[1], [0], [0], [1], [0, 0, 1, 1], [], []>} : vector<2x4xf32>, vector<4x32xf32>, vector<2x32xf32> -> vector<2x32xf32>
    %85 = vector.broadcast %9 : vector<1x32xf32> to vector<2x32xf32>
    %86 = arith.addf %84, %85 : vector<2x32xf32>
    %87 = vector.extract_strided_slice %0 {offsets = [6, 0, 0], sizes = [1, 2, 4], strides = [1, 1, 1]} : vector<8x2x4xf32> to vector<1x2x4xf32>
    %88 = vector.shape_cast %87 : vector<1x2x4xf32> to vector<2x4xf32>
    %cst_59 = arith.constant dense<0.000000e+00> : vector<2x32xf32>
    %89 = tpu.matmul %88, %1, %cst_59 {dimension_numbers = #tpu.dot_dimension_numbers<[1], [0], [0], [1], [0, 0, 1, 1], [], []>} : vector<2x4xf32>, vector<4x32xf32>, vector<2x32xf32> -> vector<2x32xf32>
    %90 = vector.broadcast %7 : vector<1x32xf32> to vector<2x32xf32>
    %91 = arith.addf %89, %90 : vector<2x32xf32>
    %cst_60 = arith.constant dense<0.000000e+00> : vector<2x32xf32>
    %92 = tpu.matmul %88, %2, %cst_60 {dimension_numbers = #tpu.dot_dimension_numbers<[1], [0], [0], [1], [0, 0, 1, 1], [], []>} : vector<2x4xf32>, vector<4x32xf32>, vector<2x32xf32> -> vector<2x32xf32>
    %93 = vector.broadcast %8 : vector<1x32xf32> to vector<2x32xf32>
    %94 = arith.addf %92, %93 : vector<2x32xf32>
    %cst_61 = arith.constant dense<0.000000e+00> : vector<2x32xf32>
    %95 = tpu.matmul %88, %3, %cst_61 {dimension_numbers = #tpu.dot_dimension_numbers<[1], [0], [0], [1], [0, 0, 1, 1], [], []>} : vector<2x4xf32>, vector<4x32xf32>, vector<2x32xf32> -> vector<2x32xf32>
    %96 = vector.broadcast %9 : vector<1x32xf32> to vector<2x32xf32>
    %97 = arith.addf %95, %96 : vector<2x32xf32>
    %98 = vector.extract_strided_slice %0 {offsets = [7, 0, 0], sizes = [1, 2, 4], strides = [1, 1, 1]} : vector<8x2x4xf32> to vector<1x2x4xf32>
    %99 = vector.shape_cast %98 : vector<1x2x4xf32> to vector<2x4xf32>
    %cst_62 = arith.constant dense<0.000000e+00> : vector<2x32xf32>
    %100 = tpu.matmul %99, %1, %cst_62 {dimension_numbers = #tpu.dot_dimension_numbers<[1], [0], [0], [1], [0, 0, 1, 1], [], []>} : vector<2x4xf32>, vector<4x32xf32>, vector<2x32xf32> -> vector<2x32xf32>
    %101 = vector.broadcast %7 : vector<1x32xf32> to vector<2x32xf32>
    %102 = arith.addf %100, %101 : vector<2x32xf32>
    %cst_63 = arith.constant dense<0.000000e+00> : vector<2x32xf32>
    %103 = tpu.matmul %99, %2, %cst_63 {dimension_numbers = #tpu.dot_dimension_numbers<[1], [0], [0], [1], [0, 0, 1, 1], [], []>} : vector<2x4xf32>, vector<4x32xf32>, vector<2x32xf32> -> vector<2x32xf32>
    %104 = vector.broadcast %8 : vector<1x32xf32> to vector<2x32xf32>
    %105 = arith.addf %103, %104 : vector<2x32xf32>
    %cst_64 = arith.constant dense<0.000000e+00> : vector<2x32xf32>
    %106 = tpu.matmul %99, %3, %cst_64 {dimension_numbers = #tpu.dot_dimension_numbers<[1], [0], [0], [1], [0, 0, 1, 1], [], []>} : vector<2x4xf32>, vector<4x32xf32>, vector<2x32xf32> -> vector<2x32xf32>
    %107 = vector.broadcast %9 : vector<1x32xf32> to vector<2x32xf32>
    %108 = arith.addf %106, %107 : vector<2x32xf32>
    %cst_65 = arith.constant 0.000000e+00 : f32
    %109 = vector.broadcast %cst_65 : f32 to vector<2x32xf32>
    %cst_66 = arith.constant 0.000000e+00 : f32
    %110 = vector.broadcast %cst_66 : f32 to vector<2x32xf32>
    %cst_67 = arith.constant dense<0.000000e+00> : vector<2x32xf32>
    %111 = tpu.matmul %109, %4, %cst_67 {dimension_numbers = #tpu.dot_dimension_numbers<[1], [0], [0], [1], [0, 0, 1, 1], [], []>} : vector<2x32xf32>, vector<32x32xf32>, vector<2x32xf32> -> vector<2x32xf32>
    %cst_68 = arith.constant dense<0.000000e+00> : vector<2x32xf32>
    %112 = tpu.matmul %109, %5, %cst_68 {dimension_numbers = #tpu.dot_dimension_numbers<[1], [0], [0], [1], [0, 0, 1, 1], [], []>} : vector<2x32xf32>, vector<32x32xf32>, vector<2x32xf32> -> vector<2x32xf32>
    %cst_69 = arith.constant dense<0.000000e+00> : vector<2x32xf32>
    %113 = tpu.matmul %109, %6, %cst_69 {dimension_numbers = #tpu.dot_dimension_numbers<[1], [0], [0], [1], [0, 0, 1, 1], [], []>} : vector<2x32xf32>, vector<32x32xf32>, vector<2x32xf32> -> vector<2x32xf32>
    %114 = vector.broadcast %10 : vector<1x32xf32> to vector<2x32xf32>
    %115 = arith.addf %113, %114 : vector<2x32xf32>
    %116 = arith.addf %25, %111 : vector<2x32xf32>
    %117 = arith.negf %116 : vector<2x32xf32>
    %118 = math.exp %117 : vector<2x32xf32>
    %cst_70 = arith.constant 1.000000e+00 : f32
    %119 = vector.broadcast %cst_70 : f32 to vector<2x32xf32>
    %120 = arith.addf %119, %118 : vector<2x32xf32>
    %121 = arith.divf %119, %120 : vector<2x32xf32>
    %122 = arith.addf %28, %112 : vector<2x32xf32>
    %123 = arith.negf %122 : vector<2x32xf32>
    %124 = math.exp %123 : vector<2x32xf32>
    %cst_71 = arith.constant 1.000000e+00 : f32
    %125 = vector.broadcast %cst_71 : f32 to vector<2x32xf32>
    %126 = arith.addf %125, %124 : vector<2x32xf32>
    %127 = arith.divf %125, %126 : vector<2x32xf32>
    %128 = arith.mulf %121, %115 : vector<2x32xf32>
    %129 = arith.addf %31, %128 : vector<2x32xf32>
    %130 = math.tanh %129 : vector<2x32xf32>
    %cst_72 = arith.constant 1.000000e+00 : f32
    %131 = vector.broadcast %cst_72 : f32 to vector<2x32xf32>
    %132 = arith.subf %131, %127 : vector<2x32xf32>
    %133 = arith.mulf %132, %130 : vector<2x32xf32>
    %134 = arith.mulf %127, %109 : vector<2x32xf32>
    %135 = arith.addf %133, %134 : vector<2x32xf32>
    %cst_73 = arith.constant dense<0.000000e+00> : vector<2x32xf32>
    %136 = tpu.matmul %135, %11, %cst_73 {dimension_numbers = #tpu.dot_dimension_numbers<[1], [0], [0], [1], [0, 0, 1, 1], [], []>} : vector<2x32xf32>, vector<32x32xf32>, vector<2x32xf32> -> vector<2x32xf32>
    %137 = vector.broadcast %17 : vector<1x32xf32> to vector<2x32xf32>
    %138 = arith.addf %136, %137 : vector<2x32xf32>
    %cst_74 = arith.constant dense<0.000000e+00> : vector<2x32xf32>
    %139 = tpu.matmul %135, %12, %cst_74 {dimension_numbers = #tpu.dot_dimension_numbers<[1], [0], [0], [1], [0, 0, 1, 1], [], []>} : vector<2x32xf32>, vector<32x32xf32>, vector<2x32xf32> -> vector<2x32xf32>
    %140 = vector.broadcast %18 : vector<1x32xf32> to vector<2x32xf32>
    %141 = arith.addf %139, %140 : vector<2x32xf32>
    %cst_75 = arith.constant dense<0.000000e+00> : vector<2x32xf32>
    %142 = tpu.matmul %135, %13, %cst_75 {dimension_numbers = #tpu.dot_dimension_numbers<[1], [0], [0], [1], [0, 0, 1, 1], [], []>} : vector<2x32xf32>, vector<32x32xf32>, vector<2x32xf32> -> vector<2x32xf32>
    %143 = vector.broadcast %19 : vector<1x32xf32> to vector<2x32xf32>
    %144 = arith.addf %142, %143 : vector<2x32xf32>
    %cst_76 = arith.constant dense<0.000000e+00> : vector<2x32xf32>
    %145 = tpu.matmul %110, %14, %cst_76 {dimension_numbers = #tpu.dot_dimension_numbers<[1], [0], [0], [1], [0, 0, 1, 1], [], []>} : vector<2x32xf32>, vector<32x32xf32>, vector<2x32xf32> -> vector<2x32xf32>
    %cst_77 = arith.constant dense<0.000000e+00> : vector<2x32xf32>
    %146 = tpu.matmul %110, %15, %cst_77 {dimension_numbers = #tpu.dot_dimension_numbers<[1], [0], [0], [1], [0, 0, 1, 1], [], []>} : vector<2x32xf32>, vector<32x32xf32>, vector<2x32xf32> -> vector<2x32xf32>
    %cst_78 = arith.constant dense<0.000000e+00> : vector<2x32xf32>
    %147 = tpu.matmul %110, %16, %cst_78 {dimension_numbers = #tpu.dot_dimension_numbers<[1], [0], [0], [1], [0, 0, 1, 1], [], []>} : vector<2x32xf32>, vector<32x32xf32>, vector<2x32xf32> -> vector<2x32xf32>
    %148 = vector.broadcast %20 : vector<1x32xf32> to vector<2x32xf32>
    %149 = arith.addf %147, %148 : vector<2x32xf32>
    %150 = arith.addf %138, %145 : vector<2x32xf32>
    %151 = arith.negf %150 : vector<2x32xf32>
    %152 = math.exp %151 : vector<2x32xf32>
    %cst_79 = arith.constant 1.000000e+00 : f32
    %153 = vector.broadcast %cst_79 : f32 to vector<2x32xf32>
    %154 = arith.addf %153, %152 : vector<2x32xf32>
    %155 = arith.divf %153, %154 : vector<2x32xf32>
    %156 = arith.addf %141, %146 : vector<2x32xf32>
    %157 = arith.negf %156 : vector<2x32xf32>
    %158 = math.exp %157 : vector<2x32xf32>
    %cst_80 = arith.constant 1.000000e+00 : f32
    %159 = vector.broadcast %cst_80 : f32 to vector<2x32xf32>
    %160 = arith.addf %159, %158 : vector<2x32xf32>
    %161 = arith.divf %159, %160 : vector<2x32xf32>
    %162 = arith.mulf %155, %149 : vector<2x32xf32>
    %163 = arith.addf %144, %162 : vector<2x32xf32>
    %164 = math.tanh %163 : vector<2x32xf32>
    %cst_81 = arith.constant 1.000000e+00 : f32
    %165 = vector.broadcast %cst_81 : f32 to vector<2x32xf32>
    %166 = arith.subf %165, %161 : vector<2x32xf32>
    %167 = arith.mulf %166, %164 : vector<2x32xf32>
    %168 = arith.mulf %161, %110 : vector<2x32xf32>
    %169 = arith.addf %167, %168 : vector<2x32xf32>
    %cst_82 = arith.constant dense<0.000000e+00> : vector<2x32xf32>
    %170 = tpu.matmul %135, %4, %cst_82 {dimension_numbers = #tpu.dot_dimension_numbers<[1], [0], [0], [1], [0, 0, 1, 1], [], []>} : vector<2x32xf32>, vector<32x32xf32>, vector<2x32xf32> -> vector<2x32xf32>
    %cst_83 = arith.constant dense<0.000000e+00> : vector<2x32xf32>
    %171 = tpu.matmul %135, %5, %cst_83 {dimension_numbers = #tpu.dot_dimension_numbers<[1], [0], [0], [1], [0, 0, 1, 1], [], []>} : vector<2x32xf32>, vector<32x32xf32>, vector<2x32xf32> -> vector<2x32xf32>
    %cst_84 = arith.constant dense<0.000000e+00> : vector<2x32xf32>
    %172 = tpu.matmul %135, %6, %cst_84 {dimension_numbers = #tpu.dot_dimension_numbers<[1], [0], [0], [1], [0, 0, 1, 1], [], []>} : vector<2x32xf32>, vector<32x32xf32>, vector<2x32xf32> -> vector<2x32xf32>
    %173 = vector.broadcast %10 : vector<1x32xf32> to vector<2x32xf32>
    %174 = arith.addf %172, %173 : vector<2x32xf32>
    %175 = arith.addf %36, %170 : vector<2x32xf32>
    %176 = arith.negf %175 : vector<2x32xf32>
    %177 = math.exp %176 : vector<2x32xf32>
    %cst_85 = arith.constant 1.000000e+00 : f32
    %178 = vector.broadcast %cst_85 : f32 to vector<2x32xf32>
    %179 = arith.addf %178, %177 : vector<2x32xf32>
    %180 = arith.divf %178, %179 : vector<2x32xf32>
    %181 = arith.addf %39, %171 : vector<2x32xf32>
    %182 = arith.negf %181 : vector<2x32xf32>
    %183 = math.exp %182 : vector<2x32xf32>
    %cst_86 = arith.constant 1.000000e+00 : f32
    %184 = vector.broadcast %cst_86 : f32 to vector<2x32xf32>
    %185 = arith.addf %184, %183 : vector<2x32xf32>
    %186 = arith.divf %184, %185 : vector<2x32xf32>
    %187 = arith.mulf %180, %174 : vector<2x32xf32>
    %188 = arith.addf %42, %187 : vector<2x32xf32>
    %189 = math.tanh %188 : vector<2x32xf32>
    %cst_87 = arith.constant 1.000000e+00 : f32
    %190 = vector.broadcast %cst_87 : f32 to vector<2x32xf32>
    %191 = arith.subf %190, %186 : vector<2x32xf32>
    %192 = arith.mulf %191, %189 : vector<2x32xf32>
    %193 = arith.mulf %186, %135 : vector<2x32xf32>
    %194 = arith.addf %192, %193 : vector<2x32xf32>
    %cst_88 = arith.constant dense<0.000000e+00> : vector<2x32xf32>
    %195 = tpu.matmul %194, %11, %cst_88 {dimension_numbers = #tpu.dot_dimension_numbers<[1], [0], [0], [1], [0, 0, 1, 1], [], []>} : vector<2x32xf32>, vector<32x32xf32>, vector<2x32xf32> -> vector<2x32xf32>
    %196 = vector.broadcast %17 : vector<1x32xf32> to vector<2x32xf32>
    %197 = arith.addf %195, %196 : vector<2x32xf32>
    %cst_89 = arith.constant dense<0.000000e+00> : vector<2x32xf32>
    %198 = tpu.matmul %194, %12, %cst_89 {dimension_numbers = #tpu.dot_dimension_numbers<[1], [0], [0], [1], [0, 0, 1, 1], [], []>} : vector<2x32xf32>, vector<32x32xf32>, vector<2x32xf32> -> vector<2x32xf32>
    %199 = vector.broadcast %18 : vector<1x32xf32> to vector<2x32xf32>
    %200 = arith.addf %198, %199 : vector<2x32xf32>
    %cst_90 = arith.constant dense<0.000000e+00> : vector<2x32xf32>
    %201 = tpu.matmul %194, %13, %cst_90 {dimension_numbers = #tpu.dot_dimension_numbers<[1], [0], [0], [1], [0, 0, 1, 1], [], []>} : vector<2x32xf32>, vector<32x32xf32>, vector<2x32xf32> -> vector<2x32xf32>
    %202 = vector.broadcast %19 : vector<1x32xf32> to vector<2x32xf32>
    %203 = arith.addf %201, %202 : vector<2x32xf32>
    %cst_91 = arith.constant dense<0.000000e+00> : vector<2x32xf32>
    %204 = tpu.matmul %169, %14, %cst_91 {dimension_numbers = #tpu.dot_dimension_numbers<[1], [0], [0], [1], [0, 0, 1, 1], [], []>} : vector<2x32xf32>, vector<32x32xf32>, vector<2x32xf32> -> vector<2x32xf32>
    %cst_92 = arith.constant dense<0.000000e+00> : vector<2x32xf32>
    %205 = tpu.matmul %169, %15, %cst_92 {dimension_numbers = #tpu.dot_dimension_numbers<[1], [0], [0], [1], [0, 0, 1, 1], [], []>} : vector<2x32xf32>, vector<32x32xf32>, vector<2x32xf32> -> vector<2x32xf32>
    %cst_93 = arith.constant dense<0.000000e+00> : vector<2x32xf32>
    %206 = tpu.matmul %169, %16, %cst_93 {dimension_numbers = #tpu.dot_dimension_numbers<[1], [0], [0], [1], [0, 0, 1, 1], [], []>} : vector<2x32xf32>, vector<32x32xf32>, vector<2x32xf32> -> vector<2x32xf32>
    %207 = vector.broadcast %20 : vector<1x32xf32> to vector<2x32xf32>
    %208 = arith.addf %206, %207 : vector<2x32xf32>
    %209 = arith.addf %197, %204 : vector<2x32xf32>
    %210 = arith.negf %209 : vector<2x32xf32>
    %211 = math.exp %210 : vector<2x32xf32>
    %cst_94 = arith.constant 1.000000e+00 : f32
    %212 = vector.broadcast %cst_94 : f32 to vector<2x32xf32>
    %213 = arith.addf %212, %211 : vector<2x32xf32>
    %214 = arith.divf %212, %213 : vector<2x32xf32>
    %215 = arith.addf %200, %205 : vector<2x32xf32>
    %216 = arith.negf %215 : vector<2x32xf32>
    %217 = math.exp %216 : vector<2x32xf32>
    %cst_95 = arith.constant 1.000000e+00 : f32
    %218 = vector.broadcast %cst_95 : f32 to vector<2x32xf32>
    %219 = arith.addf %218, %217 : vector<2x32xf32>
    %220 = arith.divf %218, %219 : vector<2x32xf32>
    %221 = arith.mulf %214, %208 : vector<2x32xf32>
    %222 = arith.addf %203, %221 : vector<2x32xf32>
    %223 = math.tanh %222 : vector<2x32xf32>
    %cst_96 = arith.constant 1.000000e+00 : f32
    %224 = vector.broadcast %cst_96 : f32 to vector<2x32xf32>
    %225 = arith.subf %224, %220 : vector<2x32xf32>
    %226 = arith.mulf %225, %223 : vector<2x32xf32>
    %227 = arith.mulf %220, %169 : vector<2x32xf32>
    %228 = arith.addf %226, %227 : vector<2x32xf32>
    %cst_97 = arith.constant dense<0.000000e+00> : vector<2x32xf32>
    %229 = tpu.matmul %194, %4, %cst_97 {dimension_numbers = #tpu.dot_dimension_numbers<[1], [0], [0], [1], [0, 0, 1, 1], [], []>} : vector<2x32xf32>, vector<32x32xf32>, vector<2x32xf32> -> vector<2x32xf32>
    %cst_98 = arith.constant dense<0.000000e+00> : vector<2x32xf32>
    %230 = tpu.matmul %194, %5, %cst_98 {dimension_numbers = #tpu.dot_dimension_numbers<[1], [0], [0], [1], [0, 0, 1, 1], [], []>} : vector<2x32xf32>, vector<32x32xf32>, vector<2x32xf32> -> vector<2x32xf32>
    %cst_99 = arith.constant dense<0.000000e+00> : vector<2x32xf32>
    %231 = tpu.matmul %194, %6, %cst_99 {dimension_numbers = #tpu.dot_dimension_numbers<[1], [0], [0], [1], [0, 0, 1, 1], [], []>} : vector<2x32xf32>, vector<32x32xf32>, vector<2x32xf32> -> vector<2x32xf32>
    %232 = vector.broadcast %10 : vector<1x32xf32> to vector<2x32xf32>
    %233 = arith.addf %231, %232 : vector<2x32xf32>
    %234 = arith.addf %47, %229 : vector<2x32xf32>
    %235 = arith.negf %234 : vector<2x32xf32>
    %236 = math.exp %235 : vector<2x32xf32>
    %cst_100 = arith.constant 1.000000e+00 : f32
    %237 = vector.broadcast %cst_100 : f32 to vector<2x32xf32>
    %238 = arith.addf %237, %236 : vector<2x32xf32>
    %239 = arith.divf %237, %238 : vector<2x32xf32>
    %240 = arith.addf %50, %230 : vector<2x32xf32>
    %241 = arith.negf %240 : vector<2x32xf32>
    %242 = math.exp %241 : vector<2x32xf32>
    %cst_101 = arith.constant 1.000000e+00 : f32
    %243 = vector.broadcast %cst_101 : f32 to vector<2x32xf32>
    %244 = arith.addf %243, %242 : vector<2x32xf32>
    %245 = arith.divf %243, %244 : vector<2x32xf32>
    %246 = arith.mulf %239, %233 : vector<2x32xf32>
    %247 = arith.addf %53, %246 : vector<2x32xf32>
    %248 = math.tanh %247 : vector<2x32xf32>
    %cst_102 = arith.constant 1.000000e+00 : f32
    %249 = vector.broadcast %cst_102 : f32 to vector<2x32xf32>
    %250 = arith.subf %249, %245 : vector<2x32xf32>
    %251 = arith.mulf %250, %248 : vector<2x32xf32>
    %252 = arith.mulf %245, %194 : vector<2x32xf32>
    %253 = arith.addf %251, %252 : vector<2x32xf32>
    %cst_103 = arith.constant dense<0.000000e+00> : vector<2x32xf32>
    %254 = tpu.matmul %253, %11, %cst_103 {dimension_numbers = #tpu.dot_dimension_numbers<[1], [0], [0], [1], [0, 0, 1, 1], [], []>} : vector<2x32xf32>, vector<32x32xf32>, vector<2x32xf32> -> vector<2x32xf32>
    %255 = vector.broadcast %17 : vector<1x32xf32> to vector<2x32xf32>
    %256 = arith.addf %254, %255 : vector<2x32xf32>
    %cst_104 = arith.constant dense<0.000000e+00> : vector<2x32xf32>
    %257 = tpu.matmul %253, %12, %cst_104 {dimension_numbers = #tpu.dot_dimension_numbers<[1], [0], [0], [1], [0, 0, 1, 1], [], []>} : vector<2x32xf32>, vector<32x32xf32>, vector<2x32xf32> -> vector<2x32xf32>
    %258 = vector.broadcast %18 : vector<1x32xf32> to vector<2x32xf32>
    %259 = arith.addf %257, %258 : vector<2x32xf32>
    %cst_105 = arith.constant dense<0.000000e+00> : vector<2x32xf32>
    %260 = tpu.matmul %253, %13, %cst_105 {dimension_numbers = #tpu.dot_dimension_numbers<[1], [0], [0], [1], [0, 0, 1, 1], [], []>} : vector<2x32xf32>, vector<32x32xf32>, vector<2x32xf32> -> vector<2x32xf32>
    %261 = vector.broadcast %19 : vector<1x32xf32> to vector<2x32xf32>
    %262 = arith.addf %260, %261 : vector<2x32xf32>
    %cst_106 = arith.constant dense<0.000000e+00> : vector<2x32xf32>
    %263 = tpu.matmul %228, %14, %cst_106 {dimension_numbers = #tpu.dot_dimension_numbers<[1], [0], [0], [1], [0, 0, 1, 1], [], []>} : vector<2x32xf32>, vector<32x32xf32>, vector<2x32xf32> -> vector<2x32xf32>
    %cst_107 = arith.constant dense<0.000000e+00> : vector<2x32xf32>
    %264 = tpu.matmul %228, %15, %cst_107 {dimension_numbers = #tpu.dot_dimension_numbers<[1], [0], [0], [1], [0, 0, 1, 1], [], []>} : vector<2x32xf32>, vector<32x32xf32>, vector<2x32xf32> -> vector<2x32xf32>
    %cst_108 = arith.constant dense<0.000000e+00> : vector<2x32xf32>
    %265 = tpu.matmul %228, %16, %cst_108 {dimension_numbers = #tpu.dot_dimension_numbers<[1], [0], [0], [1], [0, 0, 1, 1], [], []>} : vector<2x32xf32>, vector<32x32xf32>, vector<2x32xf32> -> vector<2x32xf32>
    %266 = vector.broadcast %20 : vector<1x32xf32> to vector<2x32xf32>
    %267 = arith.addf %265, %266 : vector<2x32xf32>
    %268 = arith.addf %256, %263 : vector<2x32xf32>
    %269 = arith.negf %268 : vector<2x32xf32>
    %270 = math.exp %269 : vector<2x32xf32>
    %cst_109 = arith.constant 1.000000e+00 : f32
    %271 = vector.broadcast %cst_109 : f32 to vector<2x32xf32>
    %272 = arith.addf %271, %270 : vector<2x32xf32>
    %273 = arith.divf %271, %272 : vector<2x32xf32>
    %274 = arith.addf %259, %264 : vector<2x32xf32>
    %275 = arith.negf %274 : vector<2x32xf32>
    %276 = math.exp %275 : vector<2x32xf32>
    %cst_110 = arith.constant 1.000000e+00 : f32
    %277 = vector.broadcast %cst_110 : f32 to vector<2x32xf32>
    %278 = arith.addf %277, %276 : vector<2x32xf32>
    %279 = arith.divf %277, %278 : vector<2x32xf32>
    %280 = arith.mulf %273, %267 : vector<2x32xf32>
    %281 = arith.addf %262, %280 : vector<2x32xf32>
    %282 = math.tanh %281 : vector<2x32xf32>
    %cst_111 = arith.constant 1.000000e+00 : f32
    %283 = vector.broadcast %cst_111 : f32 to vector<2x32xf32>
    %284 = arith.subf %283, %279 : vector<2x32xf32>
    %285 = arith.mulf %284, %282 : vector<2x32xf32>
    %286 = arith.mulf %279, %228 : vector<2x32xf32>
    %287 = arith.addf %285, %286 : vector<2x32xf32>
    %cst_112 = arith.constant dense<0.000000e+00> : vector<2x32xf32>
    %288 = tpu.matmul %253, %4, %cst_112 {dimension_numbers = #tpu.dot_dimension_numbers<[1], [0], [0], [1], [0, 0, 1, 1], [], []>} : vector<2x32xf32>, vector<32x32xf32>, vector<2x32xf32> -> vector<2x32xf32>
    %cst_113 = arith.constant dense<0.000000e+00> : vector<2x32xf32>
    %289 = tpu.matmul %253, %5, %cst_113 {dimension_numbers = #tpu.dot_dimension_numbers<[1], [0], [0], [1], [0, 0, 1, 1], [], []>} : vector<2x32xf32>, vector<32x32xf32>, vector<2x32xf32> -> vector<2x32xf32>
    %cst_114 = arith.constant dense<0.000000e+00> : vector<2x32xf32>
    %290 = tpu.matmul %253, %6, %cst_114 {dimension_numbers = #tpu.dot_dimension_numbers<[1], [0], [0], [1], [0, 0, 1, 1], [], []>} : vector<2x32xf32>, vector<32x32xf32>, vector<2x32xf32> -> vector<2x32xf32>
    %291 = vector.broadcast %10 : vector<1x32xf32> to vector<2x32xf32>
    %292 = arith.addf %290, %291 : vector<2x32xf32>
    %293 = arith.addf %58, %288 : vector<2x32xf32>
    %294 = arith.negf %293 : vector<2x32xf32>
    %295 = math.exp %294 : vector<2x32xf32>
    %cst_115 = arith.constant 1.000000e+00 : f32
    %296 = vector.broadcast %cst_115 : f32 to vector<2x32xf32>
    %297 = arith.addf %296, %295 : vector<2x32xf32>
    %298 = arith.divf %296, %297 : vector<2x32xf32>
    %299 = arith.addf %61, %289 : vector<2x32xf32>
    %300 = arith.negf %299 : vector<2x32xf32>
    %301 = math.exp %300 : vector<2x32xf32>
    %cst_116 = arith.constant 1.000000e+00 : f32
    %302 = vector.broadcast %cst_116 : f32 to vector<2x32xf32>
    %303 = arith.addf %302, %301 : vector<2x32xf32>
    %304 = arith.divf %302, %303 : vector<2x32xf32>
    %305 = arith.mulf %298, %292 : vector<2x32xf32>
    %306 = arith.addf %64, %305 : vector<2x32xf32>
    %307 = math.tanh %306 : vector<2x32xf32>
    %cst_117 = arith.constant 1.000000e+00 : f32
    %308 = vector.broadcast %cst_117 : f32 to vector<2x32xf32>
    %309 = arith.subf %308, %304 : vector<2x32xf32>
    %310 = arith.mulf %309, %307 : vector<2x32xf32>
    %311 = arith.mulf %304, %253 : vector<2x32xf32>
    %312 = arith.addf %310, %311 : vector<2x32xf32>
    %cst_118 = arith.constant dense<0.000000e+00> : vector<2x32xf32>
    %313 = tpu.matmul %312, %11, %cst_118 {dimension_numbers = #tpu.dot_dimension_numbers<[1], [0], [0], [1], [0, 0, 1, 1], [], []>} : vector<2x32xf32>, vector<32x32xf32>, vector<2x32xf32> -> vector<2x32xf32>
    %314 = vector.broadcast %17 : vector<1x32xf32> to vector<2x32xf32>
    %315 = arith.addf %313, %314 : vector<2x32xf32>
    %cst_119 = arith.constant dense<0.000000e+00> : vector<2x32xf32>
    %316 = tpu.matmul %312, %12, %cst_119 {dimension_numbers = #tpu.dot_dimension_numbers<[1], [0], [0], [1], [0, 0, 1, 1], [], []>} : vector<2x32xf32>, vector<32x32xf32>, vector<2x32xf32> -> vector<2x32xf32>
    %317 = vector.broadcast %18 : vector<1x32xf32> to vector<2x32xf32>
    %318 = arith.addf %316, %317 : vector<2x32xf32>
    %cst_120 = arith.constant dense<0.000000e+00> : vector<2x32xf32>
    %319 = tpu.matmul %312, %13, %cst_120 {dimension_numbers = #tpu.dot_dimension_numbers<[1], [0], [0], [1], [0, 0, 1, 1], [], []>} : vector<2x32xf32>, vector<32x32xf32>, vector<2x32xf32> -> vector<2x32xf32>
    %320 = vector.broadcast %19 : vector<1x32xf32> to vector<2x32xf32>
    %321 = arith.addf %319, %320 : vector<2x32xf32>
    %cst_121 = arith.constant dense<0.000000e+00> : vector<2x32xf32>
    %322 = tpu.matmul %287, %14, %cst_121 {dimension_numbers = #tpu.dot_dimension_numbers<[1], [0], [0], [1], [0, 0, 1, 1], [], []>} : vector<2x32xf32>, vector<32x32xf32>, vector<2x32xf32> -> vector<2x32xf32>
    %cst_122 = arith.constant dense<0.000000e+00> : vector<2x32xf32>
    %323 = tpu.matmul %287, %15, %cst_122 {dimension_numbers = #tpu.dot_dimension_numbers<[1], [0], [0], [1], [0, 0, 1, 1], [], []>} : vector<2x32xf32>, vector<32x32xf32>, vector<2x32xf32> -> vector<2x32xf32>
    %cst_123 = arith.constant dense<0.000000e+00> : vector<2x32xf32>
    %324 = tpu.matmul %287, %16, %cst_123 {dimension_numbers = #tpu.dot_dimension_numbers<[1], [0], [0], [1], [0, 0, 1, 1], [], []>} : vector<2x32xf32>, vector<32x32xf32>, vector<2x32xf32> -> vector<2x32xf32>
    %325 = vector.broadcast %20 : vector<1x32xf32> to vector<2x32xf32>
    %326 = arith.addf %324, %325 : vector<2x32xf32>
    %327 = arith.addf %315, %322 : vector<2x32xf32>
    %328 = arith.negf %327 : vector<2x32xf32>
    %329 = math.exp %328 : vector<2x32xf32>
    %cst_124 = arith.constant 1.000000e+00 : f32
    %330 = vector.broadcast %cst_124 : f32 to vector<2x32xf32>
    %331 = arith.addf %330, %329 : vector<2x32xf32>
    %332 = arith.divf %330, %331 : vector<2x32xf32>
    %333 = arith.addf %318, %323 : vector<2x32xf32>
    %334 = arith.negf %333 : vector<2x32xf32>
    %335 = math.exp %334 : vector<2x32xf32>
    %cst_125 = arith.constant 1.000000e+00 : f32
    %336 = vector.broadcast %cst_125 : f32 to vector<2x32xf32>
    %337 = arith.addf %336, %335 : vector<2x32xf32>
    %338 = arith.divf %336, %337 : vector<2x32xf32>
    %339 = arith.mulf %332, %326 : vector<2x32xf32>
    %340 = arith.addf %321, %339 : vector<2x32xf32>
    %341 = math.tanh %340 : vector<2x32xf32>
    %cst_126 = arith.constant 1.000000e+00 : f32
    %342 = vector.broadcast %cst_126 : f32 to vector<2x32xf32>
    %343 = arith.subf %342, %338 : vector<2x32xf32>
    %344 = arith.mulf %343, %341 : vector<2x32xf32>
    %345 = arith.mulf %338, %287 : vector<2x32xf32>
    %346 = arith.addf %344, %345 : vector<2x32xf32>
    %cst_127 = arith.constant dense<0.000000e+00> : vector<2x32xf32>
    %347 = tpu.matmul %312, %4, %cst_127 {dimension_numbers = #tpu.dot_dimension_numbers<[1], [0], [0], [1], [0, 0, 1, 1], [], []>} : vector<2x32xf32>, vector<32x32xf32>, vector<2x32xf32> -> vector<2x32xf32>
    %cst_128 = arith.constant dense<0.000000e+00> : vector<2x32xf32>
    %348 = tpu.matmul %312, %5, %cst_128 {dimension_numbers = #tpu.dot_dimension_numbers<[1], [0], [0], [1], [0, 0, 1, 1], [], []>} : vector<2x32xf32>, vector<32x32xf32>, vector<2x32xf32> -> vector<2x32xf32>
    %cst_129 = arith.constant dense<0.000000e+00> : vector<2x32xf32>
    %349 = tpu.matmul %312, %6, %cst_129 {dimension_numbers = #tpu.dot_dimension_numbers<[1], [0], [0], [1], [0, 0, 1, 1], [], []>} : vector<2x32xf32>, vector<32x32xf32>, vector<2x32xf32> -> vector<2x32xf32>
    %350 = vector.broadcast %10 : vector<1x32xf32> to vector<2x32xf32>
    %351 = arith.addf %349, %350 : vector<2x32xf32>
    %352 = arith.addf %69, %347 : vector<2x32xf32>
    %353 = arith.negf %352 : vector<2x32xf32>
    %354 = math.exp %353 : vector<2x32xf32>
    %cst_130 = arith.constant 1.000000e+00 : f32
    %355 = vector.broadcast %cst_130 : f32 to vector<2x32xf32>
    %356 = arith.addf %355, %354 : vector<2x32xf32>
    %357 = arith.divf %355, %356 : vector<2x32xf32>
    %358 = arith.addf %72, %348 : vector<2x32xf32>
    %359 = arith.negf %358 : vector<2x32xf32>
    %360 = math.exp %359 : vector<2x32xf32>
    %cst_131 = arith.constant 1.000000e+00 : f32
    %361 = vector.broadcast %cst_131 : f32 to vector<2x32xf32>
    %362 = arith.addf %361, %360 : vector<2x32xf32>
    %363 = arith.divf %361, %362 : vector<2x32xf32>
    %364 = arith.mulf %357, %351 : vector<2x32xf32>
    %365 = arith.addf %75, %364 : vector<2x32xf32>
    %366 = math.tanh %365 : vector<2x32xf32>
    %cst_132 = arith.constant 1.000000e+00 : f32
    %367 = vector.broadcast %cst_132 : f32 to vector<2x32xf32>
    %368 = arith.subf %367, %363 : vector<2x32xf32>
    %369 = arith.mulf %368, %366 : vector<2x32xf32>
    %370 = arith.mulf %363, %312 : vector<2x32xf32>
    %371 = arith.addf %369, %370 : vector<2x32xf32>
    %cst_133 = arith.constant dense<0.000000e+00> : vector<2x32xf32>
    %372 = tpu.matmul %371, %11, %cst_133 {dimension_numbers = #tpu.dot_dimension_numbers<[1], [0], [0], [1], [0, 0, 1, 1], [], []>} : vector<2x32xf32>, vector<32x32xf32>, vector<2x32xf32> -> vector<2x32xf32>
    %373 = vector.broadcast %17 : vector<1x32xf32> to vector<2x32xf32>
    %374 = arith.addf %372, %373 : vector<2x32xf32>
    %cst_134 = arith.constant dense<0.000000e+00> : vector<2x32xf32>
    %375 = tpu.matmul %371, %12, %cst_134 {dimension_numbers = #tpu.dot_dimension_numbers<[1], [0], [0], [1], [0, 0, 1, 1], [], []>} : vector<2x32xf32>, vector<32x32xf32>, vector<2x32xf32> -> vector<2x32xf32>
    %376 = vector.broadcast %18 : vector<1x32xf32> to vector<2x32xf32>
    %377 = arith.addf %375, %376 : vector<2x32xf32>
    %cst_135 = arith.constant dense<0.000000e+00> : vector<2x32xf32>
    %378 = tpu.matmul %371, %13, %cst_135 {dimension_numbers = #tpu.dot_dimension_numbers<[1], [0], [0], [1], [0, 0, 1, 1], [], []>} : vector<2x32xf32>, vector<32x32xf32>, vector<2x32xf32> -> vector<2x32xf32>
    %379 = vector.broadcast %19 : vector<1x32xf32> to vector<2x32xf32>
    %380 = arith.addf %378, %379 : vector<2x32xf32>
    %cst_136 = arith.constant dense<0.000000e+00> : vector<2x32xf32>
    %381 = tpu.matmul %346, %14, %cst_136 {dimension_numbers = #tpu.dot_dimension_numbers<[1], [0], [0], [1], [0, 0, 1, 1], [], []>} : vector<2x32xf32>, vector<32x32xf32>, vector<2x32xf32> -> vector<2x32xf32>
    %cst_137 = arith.constant dense<0.000000e+00> : vector<2x32xf32>
    %382 = tpu.matmul %346, %15, %cst_137 {dimension_numbers = #tpu.dot_dimension_numbers<[1], [0], [0], [1], [0, 0, 1, 1], [], []>} : vector<2x32xf32>, vector<32x32xf32>, vector<2x32xf32> -> vector<2x32xf32>
    %cst_138 = arith.constant dense<0.000000e+00> : vector<2x32xf32>
    %383 = tpu.matmul %346, %16, %cst_138 {dimension_numbers = #tpu.dot_dimension_numbers<[1], [0], [0], [1], [0, 0, 1, 1], [], []>} : vector<2x32xf32>, vector<32x32xf32>, vector<2x32xf32> -> vector<2x32xf32>
    %384 = vector.broadcast %20 : vector<1x32xf32> to vector<2x32xf32>
    %385 = arith.addf %383, %384 : vector<2x32xf32>
    %386 = arith.addf %374, %381 : vector<2x32xf32>
    %387 = arith.negf %386 : vector<2x32xf32>
    %388 = math.exp %387 : vector<2x32xf32>
    %cst_139 = arith.constant 1.000000e+00 : f32
    %389 = vector.broadcast %cst_139 : f32 to vector<2x32xf32>
    %390 = arith.addf %389, %388 : vector<2x32xf32>
    %391 = arith.divf %389, %390 : vector<2x32xf32>
    %392 = arith.addf %377, %382 : vector<2x32xf32>
    %393 = arith.negf %392 : vector<2x32xf32>
    %394 = math.exp %393 : vector<2x32xf32>
    %cst_140 = arith.constant 1.000000e+00 : f32
    %395 = vector.broadcast %cst_140 : f32 to vector<2x32xf32>
    %396 = arith.addf %395, %394 : vector<2x32xf32>
    %397 = arith.divf %395, %396 : vector<2x32xf32>
    %398 = arith.mulf %391, %385 : vector<2x32xf32>
    %399 = arith.addf %380, %398 : vector<2x32xf32>
    %400 = math.tanh %399 : vector<2x32xf32>
    %cst_141 = arith.constant 1.000000e+00 : f32
    %401 = vector.broadcast %cst_141 : f32 to vector<2x32xf32>
    %402 = arith.subf %401, %397 : vector<2x32xf32>
    %403 = arith.mulf %402, %400 : vector<2x32xf32>
    %404 = arith.mulf %397, %346 : vector<2x32xf32>
    %405 = arith.addf %403, %404 : vector<2x32xf32>
    %cst_142 = arith.constant dense<0.000000e+00> : vector<2x32xf32>
    %406 = tpu.matmul %371, %4, %cst_142 {dimension_numbers = #tpu.dot_dimension_numbers<[1], [0], [0], [1], [0, 0, 1, 1], [], []>} : vector<2x32xf32>, vector<32x32xf32>, vector<2x32xf32> -> vector<2x32xf32>
    %cst_143 = arith.constant dense<0.000000e+00> : vector<2x32xf32>
    %407 = tpu.matmul %371, %5, %cst_143 {dimension_numbers = #tpu.dot_dimension_numbers<[1], [0], [0], [1], [0, 0, 1, 1], [], []>} : vector<2x32xf32>, vector<32x32xf32>, vector<2x32xf32> -> vector<2x32xf32>
    %cst_144 = arith.constant dense<0.000000e+00> : vector<2x32xf32>
    %408 = tpu.matmul %371, %6, %cst_144 {dimension_numbers = #tpu.dot_dimension_numbers<[1], [0], [0], [1], [0, 0, 1, 1], [], []>} : vector<2x32xf32>, vector<32x32xf32>, vector<2x32xf32> -> vector<2x32xf32>
    %409 = vector.broadcast %10 : vector<1x32xf32> to vector<2x32xf32>
    %410 = arith.addf %408, %409 : vector<2x32xf32>
    %411 = arith.addf %80, %406 : vector<2x32xf32>
    %412 = arith.negf %411 : vector<2x32xf32>
    %413 = math.exp %412 : vector<2x32xf32>
    %cst_145 = arith.constant 1.000000e+00 : f32
    %414 = vector.broadcast %cst_145 : f32 to vector<2x32xf32>
    %415 = arith.addf %414, %413 : vector<2x32xf32>
    %416 = arith.divf %414, %415 : vector<2x32xf32>
    %417 = arith.addf %83, %407 : vector<2x32xf32>
    %418 = arith.negf %417 : vector<2x32xf32>
    %419 = math.exp %418 : vector<2x32xf32>
    %cst_146 = arith.constant 1.000000e+00 : f32
    %420 = vector.broadcast %cst_146 : f32 to vector<2x32xf32>
    %421 = arith.addf %420, %419 : vector<2x32xf32>
    %422 = arith.divf %420, %421 : vector<2x32xf32>
    %423 = arith.mulf %416, %410 : vector<2x32xf32>
    %424 = arith.addf %86, %423 : vector<2x32xf32>
    %425 = math.tanh %424 : vector<2x32xf32>
    %cst_147 = arith.constant 1.000000e+00 : f32
    %426 = vector.broadcast %cst_147 : f32 to vector<2x32xf32>
    %427 = arith.subf %426, %422 : vector<2x32xf32>
    %428 = arith.mulf %427, %425 : vector<2x32xf32>
    %429 = arith.mulf %422, %371 : vector<2x32xf32>
    %430 = arith.addf %428, %429 : vector<2x32xf32>
    %cst_148 = arith.constant dense<0.000000e+00> : vector<2x32xf32>
    %431 = tpu.matmul %430, %11, %cst_148 {dimension_numbers = #tpu.dot_dimension_numbers<[1], [0], [0], [1], [0, 0, 1, 1], [], []>} : vector<2x32xf32>, vector<32x32xf32>, vector<2x32xf32> -> vector<2x32xf32>
    %432 = vector.broadcast %17 : vector<1x32xf32> to vector<2x32xf32>
    %433 = arith.addf %431, %432 : vector<2x32xf32>
    %cst_149 = arith.constant dense<0.000000e+00> : vector<2x32xf32>
    %434 = tpu.matmul %430, %12, %cst_149 {dimension_numbers = #tpu.dot_dimension_numbers<[1], [0], [0], [1], [0, 0, 1, 1], [], []>} : vector<2x32xf32>, vector<32x32xf32>, vector<2x32xf32> -> vector<2x32xf32>
    %435 = vector.broadcast %18 : vector<1x32xf32> to vector<2x32xf32>
    %436 = arith.addf %434, %435 : vector<2x32xf32>
    %cst_150 = arith.constant dense<0.000000e+00> : vector<2x32xf32>
    %437 = tpu.matmul %430, %13, %cst_150 {dimension_numbers = #tpu.dot_dimension_numbers<[1], [0], [0], [1], [0, 0, 1, 1], [], []>} : vector<2x32xf32>, vector<32x32xf32>, vector<2x32xf32> -> vector<2x32xf32>
    %438 = vector.broadcast %19 : vector<1x32xf32> to vector<2x32xf32>
    %439 = arith.addf %437, %438 : vector<2x32xf32>
    %cst_151 = arith.constant dense<0.000000e+00> : vector<2x32xf32>
    %440 = tpu.matmul %405, %14, %cst_151 {dimension_numbers = #tpu.dot_dimension_numbers<[1], [0], [0], [1], [0, 0, 1, 1], [], []>} : vector<2x32xf32>, vector<32x32xf32>, vector<2x32xf32> -> vector<2x32xf32>
    %cst_152 = arith.constant dense<0.000000e+00> : vector<2x32xf32>
    %441 = tpu.matmul %405, %15, %cst_152 {dimension_numbers = #tpu.dot_dimension_numbers<[1], [0], [0], [1], [0, 0, 1, 1], [], []>} : vector<2x32xf32>, vector<32x32xf32>, vector<2x32xf32> -> vector<2x32xf32>
    %cst_153 = arith.constant dense<0.000000e+00> : vector<2x32xf32>
    %442 = tpu.matmul %405, %16, %cst_153 {dimension_numbers = #tpu.dot_dimension_numbers<[1], [0], [0], [1], [0, 0, 1, 1], [], []>} : vector<2x32xf32>, vector<32x32xf32>, vector<2x32xf32> -> vector<2x32xf32>
    %443 = vector.broadcast %20 : vector<1x32xf32> to vector<2x32xf32>
    %444 = arith.addf %442, %443 : vector<2x32xf32>
    %445 = arith.addf %433, %440 : vector<2x32xf32>
    %446 = arith.negf %445 : vector<2x32xf32>
    %447 = math.exp %446 : vector<2x32xf32>
    %cst_154 = arith.constant 1.000000e+00 : f32
    %448 = vector.broadcast %cst_154 : f32 to vector<2x32xf32>
    %449 = arith.addf %448, %447 : vector<2x32xf32>
    %450 = arith.divf %448, %449 : vector<2x32xf32>
    %451 = arith.addf %436, %441 : vector<2x32xf32>
    %452 = arith.negf %451 : vector<2x32xf32>
    %453 = math.exp %452 : vector<2x32xf32>
    %cst_155 = arith.constant 1.000000e+00 : f32
    %454 = vector.broadcast %cst_155 : f32 to vector<2x32xf32>
    %455 = arith.addf %454, %453 : vector<2x32xf32>
    %456 = arith.divf %454, %455 : vector<2x32xf32>
    %457 = arith.mulf %450, %444 : vector<2x32xf32>
    %458 = arith.addf %439, %457 : vector<2x32xf32>
    %459 = math.tanh %458 : vector<2x32xf32>
    %cst_156 = arith.constant 1.000000e+00 : f32
    %460 = vector.broadcast %cst_156 : f32 to vector<2x32xf32>
    %461 = arith.subf %460, %456 : vector<2x32xf32>
    %462 = arith.mulf %461, %459 : vector<2x32xf32>
    %463 = arith.mulf %456, %405 : vector<2x32xf32>
    %464 = arith.addf %462, %463 : vector<2x32xf32>
    %cst_157 = arith.constant dense<0.000000e+00> : vector<2x32xf32>
    %465 = tpu.matmul %430, %4, %cst_157 {dimension_numbers = #tpu.dot_dimension_numbers<[1], [0], [0], [1], [0, 0, 1, 1], [], []>} : vector<2x32xf32>, vector<32x32xf32>, vector<2x32xf32> -> vector<2x32xf32>
    %cst_158 = arith.constant dense<0.000000e+00> : vector<2x32xf32>
    %466 = tpu.matmul %430, %5, %cst_158 {dimension_numbers = #tpu.dot_dimension_numbers<[1], [0], [0], [1], [0, 0, 1, 1], [], []>} : vector<2x32xf32>, vector<32x32xf32>, vector<2x32xf32> -> vector<2x32xf32>
    %cst_159 = arith.constant dense<0.000000e+00> : vector<2x32xf32>
    %467 = tpu.matmul %430, %6, %cst_159 {dimension_numbers = #tpu.dot_dimension_numbers<[1], [0], [0], [1], [0, 0, 1, 1], [], []>} : vector<2x32xf32>, vector<32x32xf32>, vector<2x32xf32> -> vector<2x32xf32>
    %468 = vector.broadcast %10 : vector<1x32xf32> to vector<2x32xf32>
    %469 = arith.addf %467, %468 : vector<2x32xf32>
    %470 = arith.addf %91, %465 : vector<2x32xf32>
    %471 = arith.negf %470 : vector<2x32xf32>
    %472 = math.exp %471 : vector<2x32xf32>
    %cst_160 = arith.constant 1.000000e+00 : f32
    %473 = vector.broadcast %cst_160 : f32 to vector<2x32xf32>
    %474 = arith.addf %473, %472 : vector<2x32xf32>
    %475 = arith.divf %473, %474 : vector<2x32xf32>
    %476 = arith.addf %94, %466 : vector<2x32xf32>
    %477 = arith.negf %476 : vector<2x32xf32>
    %478 = math.exp %477 : vector<2x32xf32>
    %cst_161 = arith.constant 1.000000e+00 : f32
    %479 = vector.broadcast %cst_161 : f32 to vector<2x32xf32>
    %480 = arith.addf %479, %478 : vector<2x32xf32>
    %481 = arith.divf %479, %480 : vector<2x32xf32>
    %482 = arith.mulf %475, %469 : vector<2x32xf32>
    %483 = arith.addf %97, %482 : vector<2x32xf32>
    %484 = math.tanh %483 : vector<2x32xf32>
    %cst_162 = arith.constant 1.000000e+00 : f32
    %485 = vector.broadcast %cst_162 : f32 to vector<2x32xf32>
    %486 = arith.subf %485, %481 : vector<2x32xf32>
    %487 = arith.mulf %486, %484 : vector<2x32xf32>
    %488 = arith.mulf %481, %430 : vector<2x32xf32>
    %489 = arith.addf %487, %488 : vector<2x32xf32>
    %cst_163 = arith.constant dense<0.000000e+00> : vector<2x32xf32>
    %490 = tpu.matmul %489, %11, %cst_163 {dimension_numbers = #tpu.dot_dimension_numbers<[1], [0], [0], [1], [0, 0, 1, 1], [], []>} : vector<2x32xf32>, vector<32x32xf32>, vector<2x32xf32> -> vector<2x32xf32>
    %491 = vector.broadcast %17 : vector<1x32xf32> to vector<2x32xf32>
    %492 = arith.addf %490, %491 : vector<2x32xf32>
    %cst_164 = arith.constant dense<0.000000e+00> : vector<2x32xf32>
    %493 = tpu.matmul %489, %12, %cst_164 {dimension_numbers = #tpu.dot_dimension_numbers<[1], [0], [0], [1], [0, 0, 1, 1], [], []>} : vector<2x32xf32>, vector<32x32xf32>, vector<2x32xf32> -> vector<2x32xf32>
    %494 = vector.broadcast %18 : vector<1x32xf32> to vector<2x32xf32>
    %495 = arith.addf %493, %494 : vector<2x32xf32>
    %cst_165 = arith.constant dense<0.000000e+00> : vector<2x32xf32>
    %496 = tpu.matmul %489, %13, %cst_165 {dimension_numbers = #tpu.dot_dimension_numbers<[1], [0], [0], [1], [0, 0, 1, 1], [], []>} : vector<2x32xf32>, vector<32x32xf32>, vector<2x32xf32> -> vector<2x32xf32>
    %497 = vector.broadcast %19 : vector<1x32xf32> to vector<2x32xf32>
    %498 = arith.addf %496, %497 : vector<2x32xf32>
    %cst_166 = arith.constant dense<0.000000e+00> : vector<2x32xf32>
    %499 = tpu.matmul %464, %14, %cst_166 {dimension_numbers = #tpu.dot_dimension_numbers<[1], [0], [0], [1], [0, 0, 1, 1], [], []>} : vector<2x32xf32>, vector<32x32xf32>, vector<2x32xf32> -> vector<2x32xf32>
    %cst_167 = arith.constant dense<0.000000e+00> : vector<2x32xf32>
    %500 = tpu.matmul %464, %15, %cst_167 {dimension_numbers = #tpu.dot_dimension_numbers<[1], [0], [0], [1], [0, 0, 1, 1], [], []>} : vector<2x32xf32>, vector<32x32xf32>, vector<2x32xf32> -> vector<2x32xf32>
    %cst_168 = arith.constant dense<0.000000e+00> : vector<2x32xf32>
    %501 = tpu.matmul %464, %16, %cst_168 {dimension_numbers = #tpu.dot_dimension_numbers<[1], [0], [0], [1], [0, 0, 1, 1], [], []>} : vector<2x32xf32>, vector<32x32xf32>, vector<2x32xf32> -> vector<2x32xf32>
    %502 = vector.broadcast %20 : vector<1x32xf32> to vector<2x32xf32>
    %503 = arith.addf %501, %502 : vector<2x32xf32>
    %504 = arith.addf %492, %499 : vector<2x32xf32>
    %505 = arith.negf %504 : vector<2x32xf32>
    %506 = math.exp %505 : vector<2x32xf32>
    %cst_169 = arith.constant 1.000000e+00 : f32
    %507 = vector.broadcast %cst_169 : f32 to vector<2x32xf32>
    %508 = arith.addf %507, %506 : vector<2x32xf32>
    %509 = arith.divf %507, %508 : vector<2x32xf32>
    %510 = arith.addf %495, %500 : vector<2x32xf32>
    %511 = arith.negf %510 : vector<2x32xf32>
    %512 = math.exp %511 : vector<2x32xf32>
    %cst_170 = arith.constant 1.000000e+00 : f32
    %513 = vector.broadcast %cst_170 : f32 to vector<2x32xf32>
    %514 = arith.addf %513, %512 : vector<2x32xf32>
    %515 = arith.divf %513, %514 : vector<2x32xf32>
    %516 = arith.mulf %509, %503 : vector<2x32xf32>
    %517 = arith.addf %498, %516 : vector<2x32xf32>
    %518 = math.tanh %517 : vector<2x32xf32>
    %cst_171 = arith.constant 1.000000e+00 : f32
    %519 = vector.broadcast %cst_171 : f32 to vector<2x32xf32>
    %520 = arith.subf %519, %515 : vector<2x32xf32>
    %521 = arith.mulf %520, %518 : vector<2x32xf32>
    %522 = arith.mulf %515, %464 : vector<2x32xf32>
    %523 = arith.addf %521, %522 : vector<2x32xf32>
    %cst_172 = arith.constant dense<0.000000e+00> : vector<2x32xf32>
    %524 = tpu.matmul %489, %4, %cst_172 {dimension_numbers = #tpu.dot_dimension_numbers<[1], [0], [0], [1], [0, 0, 1, 1], [], []>} : vector<2x32xf32>, vector<32x32xf32>, vector<2x32xf32> -> vector<2x32xf32>
    %cst_173 = arith.constant dense<0.000000e+00> : vector<2x32xf32>
    %525 = tpu.matmul %489, %5, %cst_173 {dimension_numbers = #tpu.dot_dimension_numbers<[1], [0], [0], [1], [0, 0, 1, 1], [], []>} : vector<2x32xf32>, vector<32x32xf32>, vector<2x32xf32> -> vector<2x32xf32>
    %cst_174 = arith.constant dense<0.000000e+00> : vector<2x32xf32>
    %526 = tpu.matmul %489, %6, %cst_174 {dimension_numbers = #tpu.dot_dimension_numbers<[1], [0], [0], [1], [0, 0, 1, 1], [], []>} : vector<2x32xf32>, vector<32x32xf32>, vector<2x32xf32> -> vector<2x32xf32>
    %527 = vector.broadcast %10 : vector<1x32xf32> to vector<2x32xf32>
    %528 = arith.addf %526, %527 : vector<2x32xf32>
    %529 = arith.addf %102, %524 : vector<2x32xf32>
    %530 = arith.negf %529 : vector<2x32xf32>
    %531 = math.exp %530 : vector<2x32xf32>
    %cst_175 = arith.constant 1.000000e+00 : f32
    %532 = vector.broadcast %cst_175 : f32 to vector<2x32xf32>
    %533 = arith.addf %532, %531 : vector<2x32xf32>
    %534 = arith.divf %532, %533 : vector<2x32xf32>
    %535 = arith.addf %105, %525 : vector<2x32xf32>
    %536 = arith.negf %535 : vector<2x32xf32>
    %537 = math.exp %536 : vector<2x32xf32>
    %cst_176 = arith.constant 1.000000e+00 : f32
    %538 = vector.broadcast %cst_176 : f32 to vector<2x32xf32>
    %539 = arith.addf %538, %537 : vector<2x32xf32>
    %540 = arith.divf %538, %539 : vector<2x32xf32>
    %541 = arith.mulf %534, %528 : vector<2x32xf32>
    %542 = arith.addf %108, %541 : vector<2x32xf32>
    %543 = math.tanh %542 : vector<2x32xf32>
    %cst_177 = arith.constant 1.000000e+00 : f32
    %544 = vector.broadcast %cst_177 : f32 to vector<2x32xf32>
    %545 = arith.subf %544, %540 : vector<2x32xf32>
    %546 = arith.mulf %545, %543 : vector<2x32xf32>
    %547 = arith.mulf %540, %489 : vector<2x32xf32>
    %548 = arith.addf %546, %547 : vector<2x32xf32>
    %cst_178 = arith.constant dense<0.000000e+00> : vector<2x32xf32>
    %549 = tpu.matmul %548, %11, %cst_178 {dimension_numbers = #tpu.dot_dimension_numbers<[1], [0], [0], [1], [0, 0, 1, 1], [], []>} : vector<2x32xf32>, vector<32x32xf32>, vector<2x32xf32> -> vector<2x32xf32>
    %550 = vector.broadcast %17 : vector<1x32xf32> to vector<2x32xf32>
    %551 = arith.addf %549, %550 : vector<2x32xf32>
    %cst_179 = arith.constant dense<0.000000e+00> : vector<2x32xf32>
    %552 = tpu.matmul %548, %12, %cst_179 {dimension_numbers = #tpu.dot_dimension_numbers<[1], [0], [0], [1], [0, 0, 1, 1], [], []>} : vector<2x32xf32>, vector<32x32xf32>, vector<2x32xf32> -> vector<2x32xf32>
    %553 = vector.broadcast %18 : vector<1x32xf32> to vector<2x32xf32>
    %554 = arith.addf %552, %553 : vector<2x32xf32>
    %cst_180 = arith.constant dense<0.000000e+00> : vector<2x32xf32>
    %555 = tpu.matmul %548, %13, %cst_180 {dimension_numbers = #tpu.dot_dimension_numbers<[1], [0], [0], [1], [0, 0, 1, 1], [], []>} : vector<2x32xf32>, vector<32x32xf32>, vector<2x32xf32> -> vector<2x32xf32>
    %556 = vector.broadcast %19 : vector<1x32xf32> to vector<2x32xf32>
    %557 = arith.addf %555, %556 : vector<2x32xf32>
    %cst_181 = arith.constant dense<0.000000e+00> : vector<2x32xf32>
    %558 = tpu.matmul %523, %14, %cst_181 {dimension_numbers = #tpu.dot_dimension_numbers<[1], [0], [0], [1], [0, 0, 1, 1], [], []>} : vector<2x32xf32>, vector<32x32xf32>, vector<2x32xf32> -> vector<2x32xf32>
    %cst_182 = arith.constant dense<0.000000e+00> : vector<2x32xf32>
    %559 = tpu.matmul %523, %15, %cst_182 {dimension_numbers = #tpu.dot_dimension_numbers<[1], [0], [0], [1], [0, 0, 1, 1], [], []>} : vector<2x32xf32>, vector<32x32xf32>, vector<2x32xf32> -> vector<2x32xf32>
    %cst_183 = arith.constant dense<0.000000e+00> : vector<2x32xf32>
    %560 = tpu.matmul %523, %16, %cst_183 {dimension_numbers = #tpu.dot_dimension_numbers<[1], [0], [0], [1], [0, 0, 1, 1], [], []>} : vector<2x32xf32>, vector<32x32xf32>, vector<2x32xf32> -> vector<2x32xf32>
    %561 = vector.broadcast %20 : vector<1x32xf32> to vector<2x32xf32>
    %562 = arith.addf %560, %561 : vector<2x32xf32>
    %563 = arith.addf %551, %558 : vector<2x32xf32>
    %564 = arith.negf %563 : vector<2x32xf32>
    %565 = math.exp %564 : vector<2x32xf32>
    %cst_184 = arith.constant 1.000000e+00 : f32
    %566 = vector.broadcast %cst_184 : f32 to vector<2x32xf32>
    %567 = arith.addf %566, %565 : vector<2x32xf32>
    %568 = arith.divf %566, %567 : vector<2x32xf32>
    %569 = arith.addf %554, %559 : vector<2x32xf32>
    %570 = arith.negf %569 : vector<2x32xf32>
    %571 = math.exp %570 : vector<2x32xf32>
    %cst_185 = arith.constant 1.000000e+00 : f32
    %572 = vector.broadcast %cst_185 : f32 to vector<2x32xf32>
    %573 = arith.addf %572, %571 : vector<2x32xf32>
    %574 = arith.divf %572, %573 : vector<2x32xf32>
    %575 = arith.mulf %568, %562 : vector<2x32xf32>
    %576 = arith.addf %557, %575 : vector<2x32xf32>
    %577 = math.tanh %576 : vector<2x32xf32>
    %cst_186 = arith.constant 1.000000e+00 : f32
    %578 = vector.broadcast %cst_186 : f32 to vector<2x32xf32>
    %579 = arith.subf %578, %574 : vector<2x32xf32>
    %580 = arith.mulf %579, %577 : vector<2x32xf32>
    %581 = arith.mulf %574, %523 : vector<2x32xf32>
    %582 = arith.addf %580, %581 : vector<2x32xf32>
    %c0_187 = arith.constant 0 : index
    %c0_188 = arith.constant 0 : index
    %583 = vector.load %arg22[%c0_187, %c0_188] : memref<32x256xf32, #tpu.memory_space<vmem>>, vector<32x256xf32>
    %cst_189 = arith.constant dense<0.000000e+00> : vector<2x256xf32>
    %584 = tpu.matmul %582, %583, %cst_189 {dimension_numbers = #tpu.dot_dimension_numbers<[1], [0], [0], [1], [0, 0, 1, 1], [], []>} : vector<2x32xf32>, vector<32x256xf32>, vector<2x256xf32> -> vector<2x256xf32>
    %c0_190 = arith.constant 0 : index
    %c0_191 = arith.constant 0 : index
    %585 = vector.load %arg23[%c0_190, %c0_191] : memref<1x256xf32, #tpu.memory_space<vmem>>, vector<1x256xf32>
    %586 = vector.broadcast %585 : vector<1x256xf32> to vector<2x256xf32>
    %587 = arith.addf %584, %586 : vector<2x256xf32>
    %cst_192 = arith.constant 0.000000e+00 : f32
    %588 = vector.broadcast %cst_192 : f32 to vector<2x256xf32>
    %589 = arith.cmpf ogt, %587, %588 : vector<2x256xf32>
    %590 = math.exp %587 : vector<2x256xf32>
    %cst_193 = arith.constant 1.000000e+00 : f32
    %591 = vector.broadcast %cst_193 : f32 to vector<2x256xf32>
    %592 = arith.subf %590, %591 : vector<2x256xf32>
    %cst_194 = arith.constant 1.67326319 : f32
    %593 = vector.broadcast %cst_194 : f32 to vector<2x256xf32>
    %594 = arith.mulf %593, %592 : vector<2x256xf32>
    %595 = arith.select %589, %587, %594 : vector<2x256xi1>, vector<2x256xf32>
    %cst_195 = arith.constant 1.05070102 : f32
    %596 = vector.broadcast %cst_195 : f32 to vector<2x256xf32>
    %597 = arith.mulf %596, %595 : vector<2x256xf32>
    %c0_196 = arith.constant 0 : index
    %c0_197 = arith.constant 0 : index
    %598 = vector.load %arg24[%c0_196, %c0_197] : memref<256x128xf32, #tpu.memory_space<vmem>>, vector<256x128xf32>
    %cst_198 = arith.constant dense<0.000000e+00> : vector<2x128xf32>
    %599 = tpu.matmul %597, %598, %cst_198 {dimension_numbers = #tpu.dot_dimension_numbers<[1], [0], [0], [1], [0, 0, 1, 1], [], []>} : vector<2x256xf32>, vector<256x128xf32>, vector<2x128xf32> -> vector<2x128xf32>
    %c0_199 = arith.constant 0 : index
    %c0_200 = arith.constant 0 : index
    %600 = vector.load %arg25[%c0_199, %c0_200] : memref<1x128xf32, #tpu.memory_space<vmem>>, vector<1x128xf32>
    %601 = vector.broadcast %600 : vector<1x128xf32> to vector<2x128xf32>
    %602 = arith.addf %599, %601 : vector<2x128xf32>
    %cst_201 = arith.constant 0.000000e+00 : f32
    %603 = vector.broadcast %cst_201 : f32 to vector<2x128xf32>
    %604 = arith.cmpf ogt, %602, %603 : vector<2x128xf32>
    %605 = math.exp %602 : vector<2x128xf32>
    %cst_202 = arith.constant 1.000000e+00 : f32
    %606 = vector.broadcast %cst_202 : f32 to vector<2x128xf32>
    %607 = arith.subf %605, %606 : vector<2x128xf32>
    %cst_203 = arith.constant 1.67326319 : f32
    %608 = vector.broadcast %cst_203 : f32 to vector<2x128xf32>
    %609 = arith.mulf %608, %607 : vector<2x128xf32>
    %610 = arith.select %604, %602, %609 : vector<2x128xi1>, vector<2x128xf32>
    %cst_204 = arith.constant 1.05070102 : f32
    %611 = vector.broadcast %cst_204 : f32 to vector<2x128xf32>
    %612 = arith.mulf %611, %610 : vector<2x128xf32>
    %c0_205 = arith.constant 0 : index
    %c0_206 = arith.constant 0 : index
    %613 = vector.load %arg26[%c0_205, %c0_206] : memref<128x2xf32, #tpu.memory_space<vmem>>, vector<128x2xf32>
    %cst_207 = arith.constant dense<0.000000e+00> : vector<2x2xf32>
    %614 = tpu.matmul %612, %613, %cst_207 {dimension_numbers = #tpu.dot_dimension_numbers<[1], [0], [0], [1], [0, 0, 1, 1], [], []>} : vector<2x128xf32>, vector<128x2xf32>, vector<2x2xf32> -> vector<2x2xf32>
    %c0_208 = arith.constant 0 : index
    %c0_209 = arith.constant 0 : index
    %615 = vector.load %arg27[%c0_208, %c0_209] : memref<1x2xf32, #tpu.memory_space<vmem>>, vector<1x2xf32>
    %616 = vector.broadcast %615 : vector<1x2xf32> to vector<2x2xf32>
    %617 = arith.addf %614, %616 : vector<2x2xf32>
    %c0_210 = arith.constant 0 : index
    %c0_211 = arith.constant 0 : index
    %618 = vector.load %arg28[%c0_210, %c0_211] : memref<2x2xf32, #tpu.memory_space<vmem>>, vector<2x2xf32>
    tpu.vector_store %arg28[%c0_210, %c0_211], %617 {strides = array<i32>} : memref<2x2xf32, #tpu.memory_space<vmem>>, vector<2x2xf32>,
    return
  }
  func.func @transform_0(%arg0: i32) -> (i32, i32, i32) {
    %c0_i32 = arith.constant 0 : i32
    %c0_i32_0 = arith.constant 0 : i32
    %c0_i32_1 = arith.constant 0 : i32
    return %c0_i32, %arg0, %c0_i32_0 : i32, i32, i32
  }
  func.func @transform_1(%arg0: i32) -> (i32, i32) {
    %c0_i32 = arith.constant 0 : i32
    %c0_i32_0 = arith.constant 0 : i32
    %c0_i32_1 = arith.constant 0 : i32
    return %c0_i32, %c0_i32_0 : i32, i32
  }
  func.func @transform_2(%arg0: i32) -> (i32, i32) {
    %c0_i32 = arith.constant 0 : i32
    %c0_i32_0 = arith.constant 0 : i32
    %c0_i32_1 = arith.constant 0 : i32
    return %c0_i32, %c0_i32_0 : i32, i32
  }
  func.func @transform_3(%arg0: i32) -> (i32, i32) {
    %c0_i32 = arith.constant 0 : i32
    %c0_i32_0 = arith.constant 0 : i32
    %c0_i32_1 = arith.constant 0 : i32
    return %c0_i32, %c0_i32_0 : i32, i32
  }
  func.func @transform_4(%arg0: i32) -> (i32, i32) {
    %c0_i32 = arith.constant 0 : i32
    %c0_i32_0 = arith.constant 0 : i32
    %c0_i32_1 = arith.constant 0 : i32
    return %c0_i32, %c0_i32_0 : i32, i32
  }
  func.func @transform_5(%arg0: i32) -> (i32, i32) {
    %c0_i32 = arith.constant 0 : i32
    %c0_i32_0 = arith.constant 0 : i32
    %c0_i32_1 = arith.constant 0 : i32
    return %c0_i32, %c0_i32_0 : i32, i32
  }
  func.func @transform_6(%arg0: i32) -> (i32, i32) {
    %c0_i32 = arith.constant 0 : i32
    %c0_i32_0 = arith.constant 0 : i32
    %c0_i32_1 = arith.constant 0 : i32
    return %c0_i32, %c0_i32_0 : i32, i32
  }
  func.func @transform_7(%arg0: i32) -> (i32, i32) {
    %c0_i32 = arith.constant 0 : i32
    %c0_i32_0 = arith.constant 0 : i32
    %c0_i32_1 = arith.constant 0 : i32
    return %c0_i32, %c0_i32_0 : i32, i32
  }
  func.func @transform_8(%arg0: i32) -> (i32, i32) {
    %c0_i32 = arith.constant 0 : i32
    %c0_i32_0 = arith.constant 0 : i32
    %c0_i32_1 = arith.constant 0 : i32
    return %c0_i32, %c0_i32_0 : i32, i32
  }
  func.func @transform_9(%arg0: i32) -> (i32, i32) {
    %c0_i32 = arith.constant 0 : i32
    %c0_i32_0 = arith.constant 0 : i32
    %c0_i32_1 = arith.constant 0 : i32
    return %c0_i32, %c0_i32_0 : i32, i32
  }
  func.func @transform_10(%arg0: i32) -> (i32, i32) {
    %c0_i32 = arith.constant 0 : i32
    %c0_i32_0 = arith.constant 0 : i32
    %c0_i32_1 = arith.constant 0 : i32
    return %c0_i32, %c0_i32_0 : i32, i32
  }
  func.func @transform_11(%arg0: i32) -> (i32, i32) {
    %c0_i32 = arith.constant 0 : i32
    %c0_i32_0 = arith.constant 0 : i32
    %c0_i32_1 = arith.constant 0 : i32
    return %c0_i32, %c0_i32_0 : i32, i32
  }
  func.func @transform_12(%arg0: i32) -> (i32, i32) {
    %c0_i32 = arith.constant 0 : i32
    %c0_i32_0 = arith.constant 0 : i32
    %c0_i32_1 = arith.constant 0 : i32
    return %c0_i32, %c0_i32_0 : i32, i32
  }
  func.func @transform_13(%arg0: i32) -> (i32, i32) {
    %c0_i32 = arith.constant 0 : i32
    %c0_i32_0 = arith.constant 0 : i32
    %c0_i32_1 = arith.constant 0 : i32
    return %c0_i32, %c0_i32_0 : i32, i32
  }
  func.func @transform_14(%arg0: i32) -> (i32, i32) {
    %c0_i32 = arith.constant 0 : i32
    %c0_i32_0 = arith.constant 0 : i32
    %c0_i32_1 = arith.constant 0 : i32
    return %c0_i32, %c0_i32_0 : i32, i32
  }
  func.func @transform_15(%arg0: i32) -> (i32, i32) {
    %c0_i32 = arith.constant 0 : i32
    %c0_i32_0 = arith.constant 0 : i32
    %c0_i32_1 = arith.constant 0 : i32
    return %c0_i32, %c0_i32_0 : i32, i32
  }
  func.func @transform_16(%arg0: i32) -> (i32, i32) {
    %c0_i32 = arith.constant 0 : i32
    %c0_i32_0 = arith.constant 0 : i32
    %c0_i32_1 = arith.constant 0 : i32
    return %c0_i32, %c0_i32_0 : i32, i32
  }
  func.func @transform_17(%arg0: i32) -> (i32, i32) {
    %c0_i32 = arith.constant 0 : i32
    %c0_i32_0 = arith.constant 0 : i32
    %c0_i32_1 = arith.constant 0 : i32
    return %c0_i32, %c0_i32_0 : i32, i32
  }
  func.func @transform_18(%arg0: i32) -> (i32, i32) {
    %c0_i32 = arith.constant 0 : i32
    %c0_i32_0 = arith.constant 0 : i32
    %c0_i32_1 = arith.constant 0 : i32
    return %c0_i32, %c0_i32_0 : i32, i32
  }
  func.func @transform_19(%arg0: i32) -> (i32, i32) {
    %c0_i32 = arith.constant 0 : i32
    %c0_i32_0 = arith.constant 0 : i32
    %c0_i32_1 = arith.constant 0 : i32
    return %c0_i32, %c0_i32_0 : i32, i32
  }
  func.func @transform_20(%arg0: i32) -> (i32, i32) {
    %c0_i32 = arith.constant 0 : i32
    %c0_i32_0 = arith.constant 0 : i32
    %c0_i32_1 = arith.constant 0 : i32
    return %c0_i32, %c0_i32_0 : i32, i32
  }
  func.func @transform_21(%arg0: i32) -> (i32, i32) {
    %c0_i32 = arith.constant 0 : i32
    %c0_i32_0 = arith.constant 0 : i32
    %c0_i32_1 = arith.constant 0 : i32
    return %c0_i32, %c0_i32_0 : i32, i32
  }
  func.func @transform_22(%arg0: i32) -> (i32, i32) {
    %c0_i32 = arith.constant 0 : i32
    %c0_i32_0 = arith.constant 0 : i32
    %c0_i32_1 = arith.constant 0 : i32
    return %c0_i32, %c0_i32_0 : i32, i32
  }
  func.func @transform_23(%arg0: i32) -> (i32, i32) {
    %c0_i32 = arith.constant 0 : i32
    %c0_i32_0 = arith.constant 0 : i32
    %c0_i32_1 = arith.constant 0 : i32
    return %c0_i32, %c0_i32_0 : i32, i32
  }
  func.func @transform_24(%arg0: i32) -> (i32, i32) {
    %c0_i32 = arith.constant 0 : i32
    %c0_i32_0 = arith.constant 0 : i32
    %c0_i32_1 = arith.constant 0 : i32
    return %c0_i32, %c0_i32_0 : i32, i32
  }
  func.func @transform_25(%arg0: i32) -> (i32, i32) {
    %c0_i32 = arith.constant 0 : i32
    %c0_i32_0 = arith.constant 0 : i32
    %c0_i32_1 = arith.constant 0 : i32
    return %c0_i32, %c0_i32_0 : i32, i32
  }
  func.func @transform_26(%arg0: i32) -> (i32, i32) {
    %c0_i32 = arith.constant 0 : i32
    %c0_i32_0 = arith.constant 0 : i32
    %c0_i32_1 = arith.constant 0 : i32
    return %c0_i32, %c0_i32_0 : i32, i32
  }
  func.func @transform_27(%arg0: i32) -> (i32, i32) {
    %c0_i32 = arith.constant 0 : i32
    %c0_i32_0 = arith.constant 0 : i32
    return %arg0, %c0_i32 : i32, i32
  }
}

</mosaic_0001>

<bundles_post_ra>
// kernel: gru_evidential_forward.1
= control target key start
LH: loop header
LB: loop body
LE: loop exit
PB: predicated region body
PF: predicated region fallthrough
CT: control target
= control target key end

     0   :  { %vm151_vm0 = vcmask 1043456   ;;  %vm147_vm1 = vcmask 31744   ;;  %v9986_v0 = vmov 0.0   ;;  %vm9987_vm2 = vmmov 0   ;;  %s11407_s1 = inlined_call_operand.vmem [shape: f32[4,32], index: 1, kind: input, shape index: {}]   ;;  %s11408_s3 = inlined_call_operand.vmem [shape: f32[4,32], index: 3, kind: input, shape index: {}]   ;;  %s11409_s0 = inlined_call_operand.vmem [shape: f32[8,2,4], index: 0, kind: input, shape index: {}]   ;;  %s11410_s2 = inlined_call_operand.vmem [shape: f32[4,32], index: 2, kind: input, shape index: {}]   ;;  %s11411_s4 = inlined_call_operand.vmem [shape: f32[32,32], index: 4, kind: input, shape index: {}]   ;;  %s11412_s5 = inlined_call_operand.vmem [shape: f32[32,32], index: 5, kind: input, shape index: {}]   ;;  %s11413_s6 = inlined_call_operand.vmem [shape: f32[32,32], index: 6, kind: input, shape index: {}]   ;;  %s11414_s11 = inlined_call_operand.vmem [shape: f32[32,32], index: 11, kind: input, shape index: {}]   ;;  %s11415_s12 = inlined_call_operand.vmem [shape: f32[32,32], index: 12, kind: input, shape index: {}]   ;;  %s11416_s9 = inlined_call_operand.vmem [shape: f32[1,32], index: 9, kind: input, shape index: {}]   ;;  %s11417_s7 = inlined_call_operand.vmem [shape: f32[1,32], index: 7, kind: input, shape index: {}]   ;;  %s11418_s8 = inlined_call_operand.vmem [shape: f32[1,32], index: 8, kind: input, shape index: {}]   ;;  %s11419_s10 = inlined_call_operand.vmem [shape: f32[1,32], index: 10, kind: input, shape index: {}]   ;;  %s11420_s13 = inlined_call_operand.vmem [shape: f32[32,32], index: 13, kind: input, shape index: {}]   ;;  %s11421_s15 = inlined_call_operand.vmem [shape: f32[32,32], index: 15, kind: input, shape index: {}]   ;;  %s11422_s14 = inlined_call_operand.vmem [shape: f32[32,32], index: 14, kind: input, shape index: {}]   ;;  %s11423_s16 = inlined_call_operand.vmem [shape: f32[32,32], index: 16, kind: input, shape index: {}]   ;;  %s11424_s17 = inlined_call_operand.vmem [shape: f32[1,32], index: 17, kind: input, shape index: {}]   ;;  %s11425_s18 = inlined_call_operand.vmem [shape: f32[1,32], index: 18, kind: input, shape index: {}]   ;;  %s11426_s20 = inlined_call_operand.vmem [shape: f32[1,32], index: 20, kind: input, shape index: {}]   ;;  %s11427_s19 = inlined_call_operand.vmem [shape: f32[1,32], index: 19, kind: input, shape index: {}]   ;;  %s11428_s21 = inlined_call_operand.vmem [shape: f32[32,256], index: 21, kind: input, shape index: {}]   ;;  %s11429_s23 = inlined_call_operand.vmem [shape: f32[256,128], index: 23, kind: input, shape index: {}]   ;;  %s11430_s25 = inlined_call_operand.vmem [shape: f32[128,2], index: 25, kind: input, shape index: {}]   ;;  %s11431_s22 = inlined_call_operand.vmem [shape: f32[1,256], index: 22, kind: input, shape index: {}]   ;;  %s11432_s24 = inlined_call_operand.vmem [shape: f32[1,128], index: 24, kind: input, shape index: {}]   ;;  %s11433_s26 = inlined_call_operand.vmem [shape: f32[1,2], index: 26, kind: input, shape index: {}]   ;;  %s11434_s27 = inlined_call_operand.vmem [shape: f32[2,2], index: 27, kind: output, shape index: {}]  }
   0x1   :  { %11443 = sst [smem:[#allocation2_spill]] %s11407_s1  ;;  %8272 = vmatprep.subr.mxu1 %v9986_v0  ;;  %8282 = vmatprep.subr.mxu0 %v9986_v0  ;;  %v9988_v17 = vmov 0.0|0.0   ;;  %vm1874_vm3 = vcmask 261120   ;;  %vm7646_vm7 = vcmask 9216  }
   0x2   :  { %11444 = sst [smem:[#allocation3_spill]] %s11408_s3  ;;  %8274 = vmatprep.mubr.msk.f32.mxu1 %vm9987_vm2, %v9986_v0  ;;  %8284 = vmatprep.mubr.msk.f32.mxu0 %vm9987_vm2, %v9986_v0 }
   0x3   :  { %11445 = sst [smem:[#allocation4_spill]] %s11409_s0 }
   0x4   :  { %11446 = sst [smem:[#allocation5_spill]] %s11410_s2 }
   0x5   :  { %11447 = sst [smem:[#allocation6_spill]] %s11411_s4 }
   0x6   :  { %11448 = sst [smem:[#allocation7_spill]] %s11412_s5  ;;  %s11456_s5 = sld [smem:[#allocation3_spill]] }
   0x7   :  { %11449 = sst [smem:[#allocation8_spill]] %s11413_s6  ;;  %s11458_s6 = sld [smem:[#allocation5_spill]] }
   0x8   :  { %11450 = sst [smem:[#allocation9_spill]] %s11414_s11  ;;  %s11460_s1 = sld [smem:[#allocation7_spill]] }
   0x9   :  { %11451 = sst [smem:[#allocation10_spill]] %s11415_s12  ;;  %s11461_s0 = sld [smem:[#allocation8_spill]] }
   0xa   :  { %11452 = sst [smem:[#allocation11_spill]] %s11416_s9  ;;  %s11455_s12 = sld [smem:[#allocation2_spill]] }
   0xb   :  { %11453 = sst [smem:[#allocation12_spill]] %s11417_s7  ;;  %s11463_s4 = sld [smem:[#allocation10_spill]] }
   0xc   :  { %11454 = sst [smem:[#allocation13_spill]] %s11418_s8  ;;  %v10139_v2 = vld [vmem:[%s11456_s5] sm:$0xf]  ;;  %s11457_s7 = sld [smem:[#allocation4_spill]] }
   0xd   :  { %8283 = vmatpush3.msk.msra.mxu0 %vm151_vm0, %v10139_v2  ;;  %v10155_v4 = vld [vmem:[%s11458_s6] sm:$0xf]  ;;  %s11459_s8 = sld [smem:[#allocation6_spill]]  ;;  %s11462_s6 = sld [smem:[#allocation9_spill]] }
   0xe   :  { %8292 = vmatprep.subr.mxu0 %v9986_v0  ;;  %v101_v19 = vld [vmem:[%s11460_s1] sm:$0xff]  ;;  %v102_v20 = vld [vmem:[%s11460_s1 + $0x8] sm:$0xff]  ;;  %v103_v24 = vld [vmem:[%s11460_s1 + $0x10] sm:$0xff]  ;;  %s11464_s3 = sld [smem:[#allocation11_spill]]  ;;  %s11466_s5 = sld [smem:[#allocation13_spill]] }
   0xf   :  { %v105_v21 = vld [vmem:[%s11461_s0] sm:$0xff]  ;;  %v106_v22 = vld [vmem:[%s11461_s0 + $0x8] sm:$0xff]  ;;  %v10342_v23 = vpack.c.bf16 %v102_v20, %v101_v19  ;;  %v104_v25 = vld [vmem:[%s11460_s1 + $0x18] sm:$0xff] }
  0x10   :  { %v10134_v1 = vld [vmem:[%s11455_s12] sm:$0xf]  ;;  %v10355_v26 = vpack.c.bf16 %v106_v22, %v105_v21  ;;  %v107_v27 = vld [vmem:[%s11461_s0 + $0x10] sm:$0xff]  ;;  %v108_v28 = vld [vmem:[%s11461_s0 + $0x18] sm:$0xff]  ;;  %v10366_v29 = vpack.c.bf16 %v104_v25, %v103_v24  ;;  %s11465_s12 = sld [smem:[#allocation12_spill]] }
  0x11   :  { %8273 = vmatpush3.msk.msra.mxu1 %vm151_vm0, %v10134_v1  ;;  %v10372_v30 = vpack.c.bf16 %v108_v28, %v107_v27  ;;  %v117_v33 = vld [vmem:[%s11463_s4] sm:$0xff]  ;;  %v118_v35 = vld [vmem:[%s11463_s4 + $0x8] sm:$0xff]  ;;  %v119_v39 = vld [vmem:[%s11463_s4 + $0x10] sm:$0xff] }
  0x12   :  { %v86_v3 = vld [vmem:[%s11457_s7] sm:$0x3]  ;;  %8277 = vmatprep.subr.mxu1 %v9986_v0  ;;  %v87_v5 = vld [vmem:[%s11457_s7 + $0x2] sm:$0x3]  ;;  %v88_v6 = vld [vmem:[%s11457_s7 + $0x4] sm:$0x3]  ;;  %v10401_v36 = vpack.c.bf16 %v118_v35, %v117_v33 }
  0x13   :  { %8275 = vmatmul.mubr.msk.f32.vlgmr.msra.gmra.mrb[0].mxu1 %vm147_vm1, %v86_v3  ;;  %8285 = vmatmul.mubr.msk.f32.vlgmr.msra.gmra.mrb[0].mxu0 %vm147_vm1, %v86_v3  ;;  %v89_v7 = vld [vmem:[%s11457_s7 + $0x6] sm:$0x3]  ;;  %v90_v8 = vld [vmem:[%s11457_s7 + $0x8] sm:$0x3]  ;;  %v91_v9 = vld [vmem:[%s11457_s7 + $0xa] sm:$0x3] }
  0x14   :  { %8293 = vmatpush3.msk.msra.mxu0 %vm151_vm0, %v10155_v4  ;;  %8278 = vmatpush3.msk.msra.mxu1 %vm151_vm0, %v10155_v4  ;;  %v92_v10 = vld [vmem:[%s11457_s7 + $0xc] sm:$0x3]  ;;  %v97_v11 = vld [vmem:[%s11459_s8] sm:$0xff]  ;;  %v93_v13 = vld [vmem:[%s11457_s7 + $0xe] sm:$0x3] }
  0x15   :  { %8279 = vmatprep.mubr.msk.f32.mxu1 %vm9987_vm2, %v9986_v0  ;;  %8294 = vmatprep.mubr.msk.f32.mxu0 %vm9987_vm2, %v9986_v0  ;;  %v98_v12 = vld [vmem:[%s11459_s8 + $0x8] sm:$0xff]  ;;  %v99_v15 = vld [vmem:[%s11459_s8 + $0x10] sm:$0xff]  ;;  %v100_v16 = vld [vmem:[%s11459_s8 + $0x18] sm:$0xff] }
  0x16   :  { %8302 = vmatprep.subr.mxu0 %v9986_v0  ;;  %8287 = vmatprep.subr.mxu1 %v9986_v0  ;;  %v10300_v14 = vpack.c.bf16 %v98_v12, %v97_v11  ;;  %v10319_v18 = vpack.c.bf16 %v100_v16, %v99_v15  ;;  %v113_v31 = vld [vmem:[%s11462_s6] sm:$0xff]  ;;  %v114_v32 = vld [vmem:[%s11462_s6 + $0x8] sm:$0xff]  ;;  %v115_v37 = vld [vmem:[%s11462_s6 + $0x10] sm:$0xff] }
  0x17   :  { %8280 = vmatmul.mubr.msk.f32.vlgmr.msra.gmra.mrb[2].mxu1 %vm147_vm1, %v86_v3  ;;  %8295 = vmatmul.mubr.msk.f32.vlgmr.msra.gmra.mrb[2].mxu0 %vm147_vm1, %v87_v5  ;;  %v10396_v34 = vpack.c.bf16 %v114_v32, %v113_v31  ;;  %v116_v38 = vld [vmem:[%s11462_s6 + $0x18] sm:$0xff]  ;;  %v7658_v47 = vld [vmem:[%s11464_s3] ss:$0 sm:$0xff] }
  0x18   :  { %8303 = vmatpush3.msk.msra.mxu0 %vm151_vm0, %v10134_v1  ;;  %8288 = vmatpush3.msk.msra.mxu1 %vm151_vm0, %v10134_v1  ;;  %v10416_v40 = vpack.c.bf16 %v116_v38, %v115_v37  ;;  %v120_v41 = vld [vmem:[%s11463_s4 + $0x18] sm:$0xff]  ;;  %v10445_v3 = vld [vmem:[%s11465_s12] ss:$0 sm:$0xff] }
  0x19   :  { %8289 = vmatprep.mubr.msk.f32.mxu1 %vm9987_vm2, %v9986_v0  ;;  %8304 = vmatprep.mubr.msk.f32.mxu0 %vm9987_vm2, %v9986_v0  ;;  %v10421_v42 = vpack.c.bf16 %v120_v41, %v119_v39  ;;  %v10453_v12 = vld [vmem:[%s11466_s5] ss:$0 sm:$0xff] }
  0x1a   :  { %8312 = vmatprep.subr.mxu0 %v9986_v0  ;;  %8297 = vmatprep.subr.mxu1 %v9986_v0  ;;  %v10459_v27 = vld [vmem:[%s11419_s10] ss:$0 sm:$0xff] }
  0x1b   :  { %8290 = vmatmul.mubr.msk.f32.vlgmr.msra.gmra.mrb[4].mxu1 %vm147_vm1, %v87_v5  ;;  %8305 = vmatmul.mubr.msk.f32.vlgmr.msra.gmra.mrb[4].mxu0 %vm147_vm1, %v88_v6  ;;  %v121_v39 = vld [vmem:[%s11420_s13] sm:$0xff] }
  0x1c   :  { %8313 = vmatpush3.msk.msra.mxu0 %vm151_vm0, %v10139_v2  ;;  %8298 = vmatpush3.msk.msra.mxu1 %vm151_vm0, %v10139_v2 }
  0x1d   :  { %8299 = vmatprep.mubr.msk.f32.mxu1 %vm9987_vm2, %v9986_v0  ;;  %8314 = vmatprep.mubr.msk.f32.mxu0 %vm9987_vm2, %v9986_v0 }
  0x1e   :  { %8322 = vmatprep.subr.mxu0 %v9986_v0  ;;  %8307 = vmatprep.subr.mxu1 %v9986_v0 }
  0x1f   :  { %8300 = vmatmul.mubr.msk.f32.vlgmr.msra.gmra.mrb[6].mxu1 %vm147_vm1, %v87_v5  ;;  %8315 = vmatmul.mubr.msk.f32.vlgmr.msra.gmra.mrb[6].mxu0 %vm147_vm1, %v88_v6 }
  0x20   :  { %8323 = vmatpush3.msk.msra.mxu0 %vm151_vm0, %v10155_v4  ;;  %8308 = vmatpush3.msk.msra.mxu1 %vm151_vm0, %v10155_v4 }
  0x21   :  { %8309 = vmatprep.mubr.msk.f32.mxu1 %vm9987_vm2, %v9986_v0  ;;  %8324 = vmatprep.mubr.msk.f32.mxu0 %vm9987_vm2, %v9986_v0 }
  0x22   :  { %8332 = vmatprep.subr.mxu0 %v9986_v0  ;;  %8317 = vmatprep.subr.mxu1 %v9986_v0 }
  0x23   :  { %8310 = vmatmul.mubr.msk.f32.vlgmr.msra.gmra.mrb[8].mxu1 %vm147_vm1, %v88_v6  ;;  %8325 = vmatmul.mubr.msk.f32.vlgmr.msra.gmra.mrb[8].mxu0 %vm147_vm1, %v89_v7 }
  0x24   :  { %8333 = vmatpush3.msk.msra.mxu0 %vm151_vm0, %v10134_v1  ;;  %8318 = vmatpush3.msk.msra.mxu1 %vm151_vm0, %v10134_v1 }
  0x25   :  { %8319 = vmatprep.mubr.msk.f32.mxu1 %vm9987_vm2, %v9986_v0  ;;  %8334 = vmatprep.mubr.msk.f32.mxu0 %vm9987_vm2, %v9986_v0 }
  0x26   :  { %8342 = vmatprep.subr.mxu0 %v9986_v0  ;;  %8327 = vmatprep.subr.mxu1 %v9986_v0 }
  0x27   :  { %8320 = vmatmul.mubr.msk.f32.vlgmr.msra.gmra.mrb[10].mxu1 %vm147_vm1, %v89_v7  ;;  %8335 = vmatmul.mubr.msk.f32.vlgmr.msra.gmra.mrb[10].mxu0 %vm147_vm1, %v90_v8 }
  0x28   :  { %8343 = vmatpush3.msk.msra.mxu0 %vm151_vm0, %v10139_v2  ;;  %8328 = vmatpush3.msk.msra.mxu1 %vm151_vm0, %v10139_v2 }
  0x29   :  { %8329 = vmatprep.mubr.msk.f32.mxu1 %vm9987_vm2, %v9986_v0  ;;  %8344 = vmatprep.mubr.msk.f32.mxu0 %vm9987_vm2, %v9986_v0 }
  0x2a   :  { %8352 = vmatprep.subr.mxu0 %v9986_v0  ;;  %8337 = vmatprep.subr.mxu1 %v9986_v0 }
  0x2b   :  { %8330 = vmatmul.mubr.msk.f32.vlgmr.msra.gmra.mrb[12].mxu1 %vm147_vm1, %v89_v7  ;;  %8345 = vmatmul.mubr.msk.f32.vlgmr.msra.gmra.mrb[12].mxu0 %vm147_vm1, %v90_v8 }
  0x2c   :  { %8353 = vmatpush3.msk.msra.mxu0 %vm151_vm0, %v10155_v4  ;;  %8338 = vmatpush3.msk.msra.mxu1 %vm151_vm0, %v10155_v4 }
  0x2d   :  { %8339 = vmatprep.mubr.msk.f32.mxu1 %vm9987_vm2, %v9986_v0  ;;  %8354 = vmatprep.mubr.msk.f32.mxu0 %vm9987_vm2, %v9986_v0 }
  0x2e   :  { %8362 = vmatprep.subr.mxu0 %v9986_v0  ;;  %8347 = vmatprep.subr.mxu1 %v9986_v0 }
  0x2f   :  { %8340 = vmatmul.mubr.msk.f32.vlgmr.msra.gmra.mrb[14].mxu1 %vm147_vm1, %v90_v8  ;;  %8355 = vmatmul.mubr.msk.f32.vlgmr.msra.gmra.mrb[14].mxu0 %vm147_vm1, %v91_v9 }
  0x30   :  { %8363 = vmatpush3.msk.msra.mxu0 %vm151_vm0, %v10134_v1  ;;  %8348 = vmatpush3.msk.msra.mxu1 %vm151_vm0, %v10134_v1 }
  0x31   :  { %8349 = vmatprep.mubr.msk.f32.mxu1 %vm9987_vm2, %v9986_v0  ;;  %8364 = vmatprep.mubr.msk.f32.mxu0 %vm9987_vm2, %v9986_v0 }
  0x32   :  { %8372 = vmatprep.subr.mxu0 %v9986_v0  ;;  %8357 = vmatprep.subr.mxu1 %v9986_v0 }
  0x33   :  { %8350 = vmatmul.mubr.msk.f32.vlgmr.msra.gmra.mrb[16].mxu1 %vm147_vm1, %v91_v9  ;;  %8365 = vmatmul.mubr.msk.f32.vlgmr.msra.gmra.mrb[16].mxu0 %vm147_vm1, %v92_v10 }
  0x34   :  { %8373 = vmatpush3.msk.msra.mxu0 %vm151_vm0, %v10139_v2  ;;  %8358 = vmatpush3.msk.msra.mxu1 %vm151_vm0, %v10139_v2 }
  0x35   :  { %8359 = vmatprep.mubr.msk.f32.mxu1 %vm9987_vm2, %v9986_v0  ;;  %8374 = vmatprep.mubr.msk.f32.mxu0 %vm9987_vm2, %v9986_v0 }
  0x36   :  { %8382 = vmatprep.subr.mxu0 %v9986_v0  ;;  %8367 = vmatprep.subr.mxu1 %v9986_v0 }
  0x37   :  { %8360 = vmatmul.mubr.msk.f32.vlgmr.msra.gmra.mrb[18].mxu1 %vm147_vm1, %v91_v9  ;;  %8375 = vmatmul.mubr.msk.f32.vlgmr.msra.gmra.mrb[18].mxu0 %vm147_vm1, %v92_v10 }
  0x38   :  { %8383 = vmatpush3.msk.msra.mxu0 %vm151_vm0, %v10155_v4  ;;  %8368 = vmatpush3.msk.msra.mxu1 %vm151_vm0, %v10155_v4 }
  0x39   :  { %8369 = vmatprep.mubr.msk.f32.mxu1 %vm9987_vm2, %v9986_v0  ;;  %8384 = vmatprep.mubr.msk.f32.mxu0 %vm9987_vm2, %v9986_v0 }
  0x3a   :  { %9219 = vmatprep.subr.bf16.mxu0 %v9988_v17  ;;  %8377 = vmatprep.subr.mxu1 %v9986_v0 }
  0x3b   :  { %8370 = vmatmul.mubr.msk.f32.vlgmr.msra.gmra.mrb[20].mxu1 %vm147_vm1, %v92_v10  ;;  %8385 = vmatmul.mubr.msk.f32.vlgmr.msra.gmra.mrb[20].mxu0 %vm147_vm1, %v93_v13 }
  0x3c   :  { %9221 = vmatpush3.bf16.msra.mxu0 %v10300_v14  ;;  %8378 = vmatpush3.msk.msra.mxu1 %vm151_vm0, %v10134_v1 }
  0x3d   :  { %8379 = vmatprep.mubr.msk.f32.mxu1 %vm9987_vm2, %v9986_v0  ;;  %9222 = vmatprep.subr.bf16.mxu0 %v9988_v17 }
  0x3e   :  { %8387 = vmatprep.subr.mxu1 %v9986_v0  ;;  %8400 = vmatprep.mubr.msk.f32.mxu0 %vm9987_vm2, %v9986_v0 }
  0x3f   :  { %8380 = vmatmul.mubr.msk.f32.vlgmr.msra.gmra.mrb[22].mxu1 %vm147_vm1, %v93_v13 }
  0x40   :  { %8388 = vmatpush3.msk.msra.mxu1 %vm151_vm0, %v10139_v2  ;;  %9224 = vmatpush3.bf16.msra.mxu0 %v10319_v18 }
  0x41   :  { %8389 = vmatprep.mubr.msk.f32.mxu1 %vm9987_vm2, %v9986_v0  ;;  %9225 = vmatprep.subr.bf16.mxu1 %v9988_v17 }
  0x42   :  { %9231 = vmatprep.subr.bf16.mxu0 %v9988_v17 }
  0x43   :  { %8390 = vmatmul.mubr.msk.f32.vlgmr.msra.gmra.mrb[24].mxu1 %vm147_vm1, %v93_v13  ;;  %8401 = vmatmul.mubr.f32.vlgmr.msra.gmra.mrb[22].mxu0 %v9986_v0 }
  0x44   :  { %9227 = vmatpush3.bf16.msra.mxu1 %v10342_v23  ;;  %8411 = vmatprep.mubr.msk.f32.mxu1 %vm9987_vm2, %v9986_v0 }
  0x45   :  { %9228 = vmatprep.subr.bf16.mxu1 %v9988_v17  ;;  %9233 = vmatpush3.bf16.msra.mxu0 %v10355_v26 }
  0x46   :  { %8422 = vmatprep.mubr.msk.f32.mxu0 %vm9987_vm2, %v9986_v0  ;;  %9234 = vmatprep.subr.bf16.mxu0 %v9988_v17 }
  0x48   :  { %9230 = vmatpush3.bf16.msra.mxu1 %v10366_v29 }
  0x49   :  { %9237 = vmatprep.subr.bf16.mxu1 %v9988_v17  ;;  %9236 = vmatpush3.bf16.msra.mxu0 %v10372_v30 }
  0x4a   :  { %9243 = vmatprep.subr.bf16.mxu0 %v9988_v17 }
  0x4b   :  { %8412 = vmatmul.mubr.f32.vlgmr.msra.gmra.mrb[2].mxu1 %v9986_v0 }
  0x4c   :  { %8433 = vmatprep.mubr.msk.f32.mxu1 %vm9987_vm2, %v9986_v0  ;;  %8423 = vmatmul.mubr.f32.vlgmr.msra.gmra.mrb[24].mxu0 %v9986_v0 }
  0x4d   :  { %8444 = vmatprep.mubr.msk.f32.mxu0 %vm9987_vm2, %v9986_v0  ;;  %9239 = vmatpush3.bf16.msra.mxu1 %v10396_v34 }
  0x4e   :  { %9245 = vmatpush3.bf16.msra.mxu0 %v10401_v36  ;;  %9240 = vmatprep.subr.bf16.mxu1 %v9988_v17 }
  0x4f   :  { %9246 = vmatprep.subr.bf16.mxu0 %v9988_v17 }
  0x51   :  { %9242 = vmatpush3.bf16.msra.mxu1 %v10416_v40 }
  0x52   :  { %9248 = vmatpush3.bf16.msra.mxu0 %v10421_v42  ;;  %9249 = vmatprep.subr.bf16.mxu1 %v9988_v17 }
  0x53   :  { %9261 = vmatprep.subr.bf16.mxu0 %v9988_v17 }
  0xe6   :  { %v379_v43 = vpop.f32.mrb[0].mxu0  ;;  %v221_v44 = vpop.f32.mrb[0].mxu1 }
  0xe7   :  { %v8286_v45 = vpop.f32.mrb[1].mxu0  ;;  %v8276_v46 = vpop.f32.mrb[1].mxu1  ;;  %v222_v4 = vadd.f32 %v10445_v3, %v221_v44  ;;  %v380_v33 = vadd.f32 %v7658_v47, %v379_v43  ;;  %v122_v44 = vld [vmem:[%s11420_s13 + $0x8] sm:$0xff] }
  0xe8   :  { %v129_v45 = vld [vmem:[%s11421_s15] sm:$0xff]  ;;  %v130_v43 = vld [vmem:[%s11421_s15 + $0x8] sm:$0xff] }
  0xf2   :  { %v805_v48 = vpop.f32.mrb[6].mxu0  ;;  %v592_v49 = vpop.f32.mrb[6].mxu1 }
  0xf3   :  { %v10430_v50 = vadd.f32 %v7658_v47, %v805_v48  ;;  %v8316_v51 = vpop.f32.mrb[7].mxu0  ;;  %v10432_v52 = vadd.f32 %v7658_v47, %v592_v49  ;;  %v8301_v53 = vpop.f32.mrb[7].mxu1  ;;  %v10474_v49 = vpack.c.bf16 %v122_v44, %v121_v39 }
  0xf4   :  { %v10476_v51 = vpack.c.bf16 %v130_v43, %v129_v45  ;;  %v123_v53 = vld [vmem:[%s11420_s13 + $0x10] sm:$0xff] }
  0xfe   :  { %v1231_v54 = vpop.f32.mrb[12].mxu0  ;;  %v1018_v55 = vpop.f32.mrb[12].mxu1 }
  0xff   :  { %v10434_v56 = vadd.f32 %v7658_v47, %v1231_v54  ;;  %v8346_v57 = vpop.f32.mrb[13].mxu0  ;;  %v10436_v58 = vadd.f32 %v7658_v47, %v1018_v55  ;;  %v8331_v59 = vpop.f32.mrb[13].mxu1  ;;  %v124_v55 = vld [vmem:[%s11420_s13 + $0x18] sm:$0xff] }
 0x100   :  { %v131_v57 = vld [vmem:[%s11421_s15 + $0x10] sm:$0xff]  ;;  %v132_v59 = vld [vmem:[%s11421_s15 + $0x18] sm:$0xff] }
 0x10a   :  { %v1657_v60 = vpop.f32.mrb[18].mxu0  ;;  %v1444_v61 = vpop.f32.mrb[18].mxu1 }
 0x10b   :  { %v10438_v62 = vadd.f32 %v7658_v47, %v1657_v60  ;;  %v8376_v63 = vpop.f32.mrb[19].mxu0  ;;  %v10440_v1 = vadd.f32 %v7658_v47, %v1444_v61  ;;  %v8361_v2 = vpop.f32.mrb[19].mxu1  ;;  %v10498_v60 = vpack.c.bf16 %v124_v55, %v123_v53  ;;  %v10500_v61 = vpack.c.bf16 %v132_v59, %v131_v57 }
 0x10c   :  { %v125_v63 = vld [vmem:[%s11422_s14] sm:$0xff]  ;;  %v126_v2 = vld [vmem:[%s11422_s14 + $0x8] sm:$0xff] }
 0x116   :  { %v1870_v5 = vpop.f32.mrb[24].mxu1  ;;  %v1944_v6 = vpop.f32.mrb[22].mxu0 }
 0x117   :  { %v10448_v7 = vadd.f32 %v7658_v47, %v1870_v5  ;;  %v8391_v8 = vpop.f32.mrb[25].mxu1  ;;  %v2094_v9 = vadd.f32 %v1944_v6, %v222_v4  ;;  %v8402_v10 = vpop.f32.mrb[23].mxu0  ;;  %v133_v4 = vld [vmem:[%s11423_s16] sm:$0xff]  ;;  %v134_v5 = vld [vmem:[%s11423_s16 + $0x8] sm:$0xff]  ;;  %v10522_v6 = vpack.c.bf16 %v126_v2, %v125_v63 }
 0x118   :  { %v10524_v8 = vpack.c.bf16 %v134_v5, %v133_v4  ;;  %v128_v10 = vld [vmem:[%s11422_s14 + $0x18] sm:$0xff]  ;;  %v10614_v5 = vld [vmem:[%s11426_s20] ss:$0 sm:$0xff] }
 0x119   :  { %v7704_v11 = vmul.f32 -1.442695, %v2094_v9  ;;  %v127_v9 = vld [vmem:[%s11422_s14 + $0x10] sm:$0xff] }
 0x11b   :  { %9813 = vpow2.f32 %v7704_v11  ;;  %v135_v11 = vld [vmem:[%s11423_s16 + $0x10] sm:$0xff] }
 0x11e   :  { %v2014_v13 = vpop.f32.mrb[2].mxu1 }
 0x11f   :  { %v9717_v15 = vadd.f32 %v10453_v12, %v2014_v13  ;;  %v8413_v16 = vpop.f32.mrb[3].mxu1  ;;  %v2090_v19 = vpop.f32.mrb[24].mxu0  ;;  %v136_v13 = vld [vmem:[%s11423_s16 + $0x18] sm:$0xff] }
 0x120   :  { %v8424_v21 = vpop.f32.mrb[25].mxu0  ;;  %v2091_v31 = vadd.f32 %v10459_v27, %v2090_v19  ;;  %v10547_v16 = vpack.c.bf16 %v136_v13, %v135_v11  ;;  %v10619_v11 = vld [vmem:[%s11427_s19] ss:$0 sm:$0xff] }
 0x121   :  { %v7705_v20 = vmul.f32 -1.442695, %v9717_v15  ;;  %v10545_v15 = vpack.c.bf16 %v128_v10, %v127_v9 }
 0x123   :  { %9815 = vpow2.f32 %v7705_v20 }
 0x125   :  { %v9814_v22 = vpop.eup %9813 }
 0x126   :  { %v2098_v24 = vadd.f32 1.0, %v9814_v22 }
 0x128   :  { %9817 = vrcp.f32 %v2098_v24  ;;  %v10600_v24 = vld [vmem:[%s11424_s17] ss:$0 sm:$0xff] }
 0x12d   :  { %v9816_v25 = vpop.eup %9815 }
 0x12e   :  { %v2105_v28 = vadd.f32 1.0, %v9816_v25 }
 0x130   :  { %9819 = vrcp.f32 %v2105_v28 }
 0x132   :  { %v9818_v32 = vpop.eup %9817 }
 0x133   :  { %v2108_v35 = vmul.f32 %v9818_v32, %v2091_v31  ;;  %v10605_v31 = vld [vmem:[%s11425_s18] ss:$0 sm:$0xff] }
 0x135   :  { %v2109_v37 = vadd.f32 %v2108_v35, %v380_v33 }
 0x137   :  { %9821 = vtanh.f32 %v2109_v37 }
 0x13a   :  { %v9820_v38 = vpop.eup %9819 }
 0x13b   :  { %v2111_v41 = vsub.f32 1.0, %v9820_v38  ;;  %v2113_v47 = vmul.f32 0.0, %v9820_v38 }
 0x141   :  { %v9822_v46 = vpop.eup %9821 }
 0x142   :  { %v2112_v48 = vmul.f32 %v9822_v46, %v2111_v41 }
 0x144   :  { %v10481_v54 = vadd.f32 %v2113_v47, %v2112_v48 }
 0x146   :  { %8434 = vmatmul.mubr.msk.f32.vlgmr.msra.gmra.mrb[26].mxu1 %vm1874_vm3, %v10481_v54  ;;  %8445 = vmatmul.mubr.msk.f32.vlgmr.msra.gmra.mrb[26].mxu0 %vm1874_vm3, %v10481_v54 }
 0x147   :  { %9251 = vmatpush3.bf16.msra.mxu1 %v10474_v49  ;;  %9263 = vmatpush3.bf16.msra.mxu0 %v10476_v51 }
 0x148   :  { %9252 = vmatprep.subr.bf16.mxu1 %v9988_v17  ;;  %9264 = vmatprep.subr.bf16.mxu0 %v9988_v17 }
 0x149   :  { %8455 = vmatprep.mubr.msk.f32.mxu1 %vm9987_vm2, %v9986_v0  ;;  %8477 = vmatprep.mubr.msk.f32.mxu0 %vm9987_vm2, %v9986_v0 }
 0x14b   :  { %9254 = vmatpush3.bf16.msra.mxu1 %v10498_v60  ;;  %9266 = vmatpush3.bf16.msra.mxu0 %v10500_v61 }
 0x14c   :  { %9255 = vmatprep.subr.bf16.mxu1 %v9988_v17  ;;  %9267 = vmatprep.subr.bf16.mxu0 %v9988_v17 }
 0x14e   :  { %8456 = vmatmul.mubr.msk.f32.vlgmr.msra.gmra.mrb[28].mxu1 %vm1874_vm3, %v10481_v54  ;;  %8478 = vmatmul.mubr.f32.vlgmr.msra.gmra.mrb[26].mxu0 %v9986_v0 }
 0x14f   :  { %9257 = vmatpush3.bf16.msra.mxu1 %v10522_v6  ;;  %9269 = vmatpush3.bf16.msra.mxu0 %v10524_v8 }
 0x150   :  { %9258 = vmatprep.subr.bf16.mxu1 %v9988_v17  ;;  %9270 = vmatprep.subr.bf16.mxu0 %v9988_v17 }
 0x151   :  { %8466 = vmatprep.mubr.msk.f32.mxu1 %vm9987_vm2, %v9986_v0  ;;  %8488 = vmatprep.mubr.msk.f32.mxu0 %vm9987_vm2, %v9986_v0 }
 0x153   :  { %9260 = vmatpush3.bf16.msra.mxu1 %v10545_v15  ;;  %9272 = vmatpush3.bf16.msra.mxu0 %v10547_v16 }
 0x154   :  { %9273 = vmatprep.subr.bf16.mxu1 %v9988_v17  ;;  %9279 = vmatprep.subr.bf16.mxu0 %v9988_v17 }
 0x156   :  { %8467 = vmatmul.mubr.f32.vlgmr.msra.gmra.mrb[26].mxu1 %v9986_v0  ;;  %8489 = vmatmul.mubr.f32.vlgmr.msra.gmra.mrb[28].mxu0 %v9986_v0 }
 0x157   :  { %9275 = vmatpush3.bf16.msra.mxu1 %v10300_v14  ;;  %9281 = vmatpush3.bf16.msra.mxu0 %v10342_v23 }
 0x158   :  { %9276 = vmatprep.subr.bf16.mxu1 %v9988_v17  ;;  %9282 = vmatprep.subr.bf16.mxu0 %v9988_v17 }
 0x159   :  { %8499 = vmatprep.mubr.msk.f32.mxu1 %vm9987_vm2, %v9986_v0  ;;  %8510 = vmatprep.mubr.msk.f32.mxu0 %vm9987_vm2, %v9986_v0 }
 0x15b   :  { %9278 = vmatpush3.bf16.msra.mxu1 %v10319_v18  ;;  %9284 = vmatpush3.bf16.msra.mxu0 %v10366_v29 }
 0x15c   :  { %9285 = vmatprep.subr.bf16.mxu1 %v9988_v17  ;;  %9291 = vmatprep.subr.bf16.mxu0 %v9988_v17 }
 0x15e   :  { %8500 = vmatmul.mubr.msk.f32.vlgmr.msra.gmra.mrb[4].mxu1 %vm1874_vm3, %v10481_v54  ;;  %8511 = vmatmul.mubr.msk.f32.vlgmr.msra.gmra.mrb[2].mxu0 %vm1874_vm3, %v10481_v54 }
 0x15f   :  { %9287 = vmatpush3.bf16.msra.mxu1 %v10355_v26  ;;  %8521 = vmatprep.mubr.msk.f32.mxu1 %vm9987_vm2, %v9986_v0 }
 0x160   :  { %9288 = vmatprep.subr.bf16.mxu1 %v9988_v17  ;;  %9293 = vmatpush3.bf16.msra.mxu0 %v10396_v34 }
 0x161   :  { %9294 = vmatprep.subr.bf16.mxu0 %v9988_v17  ;;  %8532 = vmatprep.mubr.msk.f32.mxu0 %vm9987_vm2, %v9986_v0 }
 0x163   :  { %9290 = vmatpush3.bf16.msra.mxu1 %v10372_v30 }
 0x164   :  { %9297 = vmatprep.subr.bf16.mxu1 %v9988_v17  ;;  %9296 = vmatpush3.bf16.msra.mxu0 %v10416_v40 }
 0x165   :  { %9303 = vmatprep.subr.bf16.mxu0 %v9988_v17 }
 0x166   :  { %8522 = vmatmul.mubr.msk.f32.vlgmr.msra.gmra.mrb[30].mxu1 %vm1874_vm3, %v10481_v54 }
 0x167   :  { %9299 = vmatpush3.bf16.msra.mxu1 %v10401_v36  ;;  %8543 = vmatprep.mubr.msk.f32.mxu1 %vm9987_vm2, %v9986_v0 }
 0x168   :  { %9300 = vmatprep.subr.bf16.mxu1 %v9988_v17 }
 0x16b   :  { %9302 = vmatpush3.bf16.msra.mxu1 %v10421_v42 }
 0x16c   :  { %9315 = vmatprep.subr.bf16.mxu1 %v9988_v17 }
 0x221   :  { %v2342_v19 = vpop.f32.mrb[28].mxu1  ;;  %v2482_v20 = vpop.f32.mrb[26].mxu0 }
 0x222   :  { %v8457_v21 = vpop.f32.mrb[29].mxu1  ;;  %v8479_v22 = vpop.f32.mrb[27].mxu0  ;;  %v9733_v38 = vadd.f32 %v10605_v31, %v2482_v20 }
 0x223   :  { %v2343_v21 = vadd.f32 %v10619_v11, %v2342_v19 }
 0x224   :  { %v7714_v39 = vmul.f32 -1.442695, %v9733_v38 }
 0x229   :  { %v2412_v25 = vpop.f32.mrb[26].mxu1  ;;  %v2558_v28 = vpop.f32.mrb[28].mxu0 }
 0x22a   :  { %v9732_v32 = vadd.f32 %v10600_v24, %v2412_v25  ;;  %v8468_v33 = vpop.f32.mrb[27].mxu1  ;;  %v8490_v35 = vpop.f32.mrb[29].mxu0  ;;  %v2559_v13 = vadd.f32 %v10614_v5, %v2558_v28 }
 0x22c   :  { %v7713_v37 = vmul.f32 -1.442695, %v9732_v32 }
 0x22e   :  { %9823 = vpow2.f32 %v7713_v37 }
 0x22f   :  { %9825 = vpow2.f32 %v7714_v39 }
 0x231   :  { %v2649_v41 = vpop.f32.mrb[4].mxu1  ;;  %v2719_v44 = vpop.f32.mrb[2].mxu0 }
 0x232   :  { %v9718_v45 = vadd.f32 %v10445_v3, %v2649_v41  ;;  %v8501_v43 = vpop.f32.mrb[5].mxu1  ;;  %v8512_v46 = vpop.f32.mrb[3].mxu0  ;;  %v9719_v48 = vadd.f32 %v10453_v12, %v2719_v44 }
 0x234   :  { %v7718_v47 = vmul.f32 -1.442695, %v9718_v45  ;;  %v7719_v57 = vmul.f32 -1.442695, %v9719_v48 }
 0x236   :  { %9827 = vpow2.f32 %v7718_v47 }
 0x238   :  { %v9824_v53 = vpop.eup %9823 }
 0x239   :  { %v2566_v55 = vadd.f32 1.0, %v9824_v53  ;;  %v2789_v59 = vpop.f32.mrb[30].mxu1  ;;  %v9826_v2 = vpop.eup %9825 }
 0x23a   :  { %v8523_v63 = vpop.f32.mrb[31].mxu1  ;;  %v2573_v10 = vadd.f32 1.0, %v9826_v2  ;;  %v2790_v35 = vadd.f32 %v10459_v27, %v2789_v59 }
 0x23b   :  { %9829 = vrcp.f32 %v2566_v55 }
 0x23c   :  { %9831 = vpow2.f32 %v7719_v57 }
 0x240   :  { %v9828_v4 = vpop.eup %9827 }
 0x241   :  { %v2797_v9 = vadd.f32 1.0, %v9828_v4 }
 0x243   :  { %9833 = vrcp.f32 %v2797_v9 }
 0x244   :  { %9835 = vrcp.f32 %v2573_v10 }
 0x245   :  { %v9830_v20 = vpop.eup %9829 }
 0x246   :  { %v2576_v22 = vmul.f32 %v9830_v20, %v2559_v13  ;;  %v9832_v25 = vpop.eup %9831 }
 0x247   :  { %v2804_v33 = vadd.f32 1.0, %v9832_v25 }
 0x248   :  { %v2577_v32 = vadd.f32 %v2576_v22, %v2343_v21 }
 0x24a   :  { %9837 = vtanh.f32 %v2577_v32 }
 0x24b   :  { %9839 = vrcp.f32 %v2804_v33 }
 0x24d   :  { %v9834_v37 = vpop.eup %9833 }
 0x24e   :  { %v2807_v38 = vmul.f32 %v9834_v37, %v2790_v35  ;;  %v9836_v39 = vpop.eup %9835 }
 0x24f   :  { %v2579_v44 = vsub.f32 1.0, %v9836_v39  ;;  %v2581_v43 = vmul.f32 0.0, %v9836_v39 }
 0x250   :  { %v2808_v41 = vadd.f32 %v2807_v38, %v10432_v52 }
 0x252   :  { %9841 = vtanh.f32 %v2808_v41 }
 0x254   :  { %v9838_v28 = vpop.eup %9837 }
 0x255   :  { %v2580_v45 = vmul.f32 %v9838_v28, %v2579_v44  ;;  %v9840_v46 = vpop.eup %9839 }
 0x256   :  { %v2810_v47 = vsub.f32 1.0, %v9840_v46  ;;  %v2812_v53 = vmul.f32 %v9840_v46, %v10481_v54 }
 0x257   :  { %v10625_v19 = vadd.f32 %v2581_v43, %v2580_v45 }
 0x25c   :  { %v9842_v48 = vpop.eup %9841 }
 0x25d   :  { %v2811_v55 = vmul.f32 %v9842_v48, %v2810_v47 }
 0x25f   :  { %v10628_v57 = vadd.f32 %v2812_v53, %v2811_v55 }
 0x261   :  { %8533 = vmatmul.mubr.msk.f32.vlgmr.msra.gmra.mrb[30].mxu0 %vm1874_vm3, %v10628_v57  ;;  %8544 = vmatmul.mubr.msk.f32.vlgmr.msra.gmra.mrb[32].mxu1 %vm1874_vm3, %v10628_v57 }
 0x262   :  { %9305 = vmatpush3.bf16.msra.mxu0 %v10474_v49  ;;  %9317 = vmatpush3.bf16.msra.mxu1 %v10476_v51 }
 0x263   :  { %9306 = vmatprep.subr.bf16.mxu0 %v9988_v17  ;;  %9318 = vmatprep.subr.bf16.mxu1 %v9988_v17 }
 0x264   :  { %8554 = vmatprep.mubr.msk.f32.mxu0 %vm9987_vm2, %v9986_v0  ;;  %8576 = vmatprep.mubr.msk.f32.mxu1 %vm9987_vm2, %v9986_v0 }
 0x266   :  { %9308 = vmatpush3.bf16.msra.mxu0 %v10498_v60  ;;  %9320 = vmatpush3.bf16.msra.mxu1 %v10500_v61 }
 0x267   :  { %9309 = vmatprep.subr.bf16.mxu0 %v9988_v17  ;;  %9321 = vmatprep.subr.bf16.mxu1 %v9988_v17 }
 0x269   :  { %8555 = vmatmul.mubr.msk.f32.vlgmr.msra.gmra.mrb[32].mxu0 %vm1874_vm3, %v10628_v57  ;;  %8577 = vmatmul.mubr.msk.f32.vlgmr.msra.gmra.mrb[32].mxu1 %vm1874_vm3, %v10625_v19 }
 0x26a   :  { %9311 = vmatpush3.bf16.msra.mxu0 %v10522_v6  ;;  %9323 = vmatpush3.bf16.msra.mxu1 %v10524_v8 }
 0x26b   :  { %9312 = vmatprep.subr.bf16.mxu0 %v9988_v17  ;;  %9324 = vmatprep.subr.bf16.mxu1 %v9988_v17 }
 0x26c   :  { %8565 = vmatprep.mubr.msk.f32.mxu0 %vm9987_vm2, %v9986_v0  ;;  %8587 = vmatprep.mubr.msk.f32.mxu1 %vm9987_vm2, %v9986_v0 }
 0x26e   :  { %9314 = vmatpush3.bf16.msra.mxu0 %v10545_v15  ;;  %9326 = vmatpush3.bf16.msra.mxu1 %v10547_v16 }
 0x26f   :  { %9327 = vmatprep.subr.bf16.mxu0 %v9988_v17  ;;  %9333 = vmatprep.subr.bf16.mxu1 %v9988_v17 }
 0x271   :  { %8566 = vmatmul.mubr.msk.f32.vlgmr.msra.gmra.mrb[30].mxu0 %vm1874_vm3, %v10625_v19  ;;  %8588 = vmatmul.mubr.msk.f32.vlgmr.msra.gmra.mrb[34].mxu1 %vm1874_vm3, %v10625_v19 }
 0x272   :  { %9329 = vmatpush3.bf16.msra.mxu0 %v10300_v14  ;;  %9335 = vmatpush3.bf16.msra.mxu1 %v10342_v23 }
 0x273   :  { %9330 = vmatprep.subr.bf16.mxu0 %v9988_v17  ;;  %9336 = vmatprep.subr.bf16.mxu1 %v9988_v17 }
 0x274   :  { %8598 = vmatprep.mubr.msk.f32.mxu0 %vm9987_vm2, %v9986_v0  ;;  %8609 = vmatprep.mubr.msk.f32.mxu1 %vm9987_vm2, %v9986_v0 }
 0x276   :  { %9332 = vmatpush3.bf16.msra.mxu0 %v10319_v18  ;;  %9338 = vmatpush3.bf16.msra.mxu1 %v10366_v29 }
 0x277   :  { %9339 = vmatprep.subr.bf16.mxu0 %v9988_v17  ;;  %9345 = vmatprep.subr.bf16.mxu1 %v9988_v17 }
 0x279   :  { %8599 = vmatmul.mubr.msk.f32.vlgmr.msra.gmra.mrb[4].mxu0 %vm1874_vm3, %v10628_v57  ;;  %8610 = vmatmul.mubr.msk.f32.vlgmr.msra.gmra.mrb[8].mxu1 %vm1874_vm3, %v10628_v57 }
 0x27a   :  { %9341 = vmatpush3.bf16.msra.mxu0 %v10355_v26  ;;  %8620 = vmatprep.mubr.msk.f32.mxu0 %vm9987_vm2, %v9986_v0 }
 0x27b   :  { %9342 = vmatprep.subr.bf16.mxu0 %v9988_v17  ;;  %9347 = vmatpush3.bf16.msra.mxu1 %v10396_v34 }
 0x27c   :  { %9348 = vmatprep.subr.bf16.mxu1 %v9988_v17  ;;  %8631 = vmatprep.mubr.msk.f32.mxu1 %vm9987_vm2, %v9986_v0 }
 0x27e   :  { %9344 = vmatpush3.bf16.msra.mxu0 %v10372_v30 }
 0x27f   :  { %9351 = vmatprep.subr.bf16.mxu0 %v9988_v17  ;;  %9350 = vmatpush3.bf16.msra.mxu1 %v10416_v40 }
 0x280   :  { %9357 = vmatprep.subr.bf16.mxu1 %v9988_v17 }
 0x281   :  { %8621 = vmatmul.mubr.msk.f32.vlgmr.msra.gmra.mrb[34].mxu0 %vm1874_vm3, %v10628_v57 }
 0x282   :  { %9353 = vmatpush3.bf16.msra.mxu0 %v10401_v36  ;;  %8642 = vmatprep.mubr.msk.f32.mxu0 %vm9987_vm2, %v9986_v0 }
 0x283   :  { %9354 = vmatprep.subr.bf16.mxu0 %v9988_v17 }
 0x286   :  { %9356 = vmatpush3.bf16.msra.mxu0 %v10421_v42 }
 0x287   :  { %9369 = vmatprep.subr.bf16.mxu0 %v9988_v17 }
 0x33c   :  { %v3023_v52 = vpop.f32.mrb[32].mxu0  ;;  %v3166_v54 = vpop.f32.mrb[32].mxu1 }
 0x33d   :  { %v8556_v59 = vpop.f32.mrb[33].mxu0  ;;  %v8578_v63 = vpop.f32.mrb[33].mxu1  ;;  %v9735_v21 = vadd.f32 %v10605_v31, %v3166_v54 }
 0x33e   :  { %v3024_v59 = vadd.f32 %v10619_v11, %v3023_v52 }
 0x33f   :  { %v7727_v22 = vmul.f32 -1.442695, %v9735_v21 }
 0x344   :  { %v3096_v2 = vpop.f32.mrb[30].mxu0  ;;  %v3236_v4 = vpop.f32.mrb[34].mxu1 }
 0x345   :  { %v9734_v9 = vadd.f32 %v10600_v24, %v3096_v2  ;;  %v8567_v10 = vpop.f32.mrb[31].mxu0  ;;  %v8589_v13 = vpop.f32.mrb[35].mxu1  ;;  %v3237_v55 = vadd.f32 %v10614_v5, %v3236_v4 }
 0x347   :  { %v7726_v20 = vmul.f32 -1.442695, %v9734_v9 }
 0x349   :  { %9843 = vpow2.f32 %v7726_v20 }
 0x34a   :  { %9845 = vpow2.f32 %v7727_v22 }
 0x34c   :  { %v3327_v25 = vpop.f32.mrb[4].mxu0  ;;  %v3397_v32 = vpop.f32.mrb[8].mxu1 }
 0x34d   :  { %v9720_v33 = vadd.f32 %v10445_v3, %v3327_v25  ;;  %v8600_v35 = vpop.f32.mrb[5].mxu0  ;;  %v8611_v37 = vpop.f32.mrb[9].mxu1  ;;  %v9721_v39 = vadd.f32 %v10453_v12, %v3397_v32 }
 0x34f   :  { %v7731_v38 = vmul.f32 -1.442695, %v9720_v33  ;;  %v7732_v28 = vmul.f32 -1.442695, %v9721_v39 }
 0x351   :  { %9847 = vpow2.f32 %v7731_v38 }
 0x353   :  { %v9844_v41 = vpop.eup %9843 }
 0x354   :  { %v3244_v44 = vadd.f32 1.0, %v9844_v41  ;;  %v3467_v45 = vpop.f32.mrb[34].mxu0  ;;  %v9846_v46 = vpop.eup %9845 }
 0x355   :  { %v8622_v43 = vpop.f32.mrb[35].mxu0  ;;  %v3251_v53 = vadd.f32 1.0, %v9846_v46  ;;  %v3468_v13 = vadd.f32 %v10459_v27, %v3467_v45 }
 0x356   :  { %9849 = vrcp.f32 %v3244_v44 }
 0x357   :  { %9851 = vpow2.f32 %v7732_v28 }
 0x35b   :  { %v9848_v47 = vpop.eup %9847 }
 0x35c   :  { %v3475_v48 = vadd.f32 1.0, %v9848_v47 }
 0x35e   :  { %9853 = vrcp.f32 %v3475_v48 }
 0x35f   :  { %9855 = vrcp.f32 %v3251_v53 }
 0x360   :  { %v9850_v54 = vpop.eup %9849 }
 0x361   :  { %v3254_v63 = vmul.f32 %v9850_v54, %v3237_v55  ;;  %v9852_v2 = vpop.eup %9851 }
 0x362   :  { %v3482_v10 = vadd.f32 1.0, %v9852_v2 }
 0x363   :  { %v3255_v9 = vadd.f32 %v3254_v63, %v3024_v59 }
 0x365   :  { %9857 = vtanh.f32 %v3255_v9 }
 0x366   :  { %9859 = vrcp.f32 %v3482_v10 }
 0x368   :  { %v9854_v20 = vpop.eup %9853 }
 0x369   :  { %v3485_v21 = vmul.f32 %v9854_v20, %v3468_v13  ;;  %v9856_v22 = vpop.eup %9855 }
 0x36a   :  { %v3257_v32 = vsub.f32 1.0, %v9856_v22  ;;  %v3259_v52 = vmul.f32 %v9856_v22, %v10625_v19 }
 0x36b   :  { %v3486_v25 = vadd.f32 %v3485_v21, %v10430_v50 }
 0x36d   :  { %9861 = vtanh.f32 %v3486_v25 }
 0x36f   :  { %v9858_v4 = vpop.eup %9857 }
 0x370   :  { %v3258_v33 = vmul.f32 %v9858_v4, %v3257_v32  ;;  %v9860_v37 = vpop.eup %9859 }
 0x371   :  { %v3488_v38 = vsub.f32 1.0, %v9860_v37  ;;  %v3490_v41 = vmul.f32 %v9860_v37, %v10628_v57 }
 0x372   :  { %v10711_v35 = vadd.f32 %v3259_v52, %v3258_v33 }
 0x377   :  { %v9862_v39 = vpop.eup %9861 }
 0x378   :  { %v3489_v44 = vmul.f32 %v9862_v39, %v3488_v38 }
 0x37a   :  { %v10714_v28 = vadd.f32 %v3490_v41, %v3489_v44 }
 0x37c   :  { %8632 = vmatmul.mubr.msk.f32.vlgmr.msra.gmra.mrb[36].mxu1 %vm1874_vm3, %v10714_v28  ;;  %8643 = vmatmul.mubr.msk.f32.vlgmr.msra.gmra.mrb[36].mxu0 %vm1874_vm3, %v10714_v28 }
 0x37d   :  { %9359 = vmatpush3.bf16.msra.mxu1 %v10474_v49  ;;  %9371 = vmatpush3.bf16.msra.mxu0 %v10476_v51 }
 0x37e   :  { %9360 = vmatprep.subr.bf16.mxu1 %v9988_v17  ;;  %9372 = vmatprep.subr.bf16.mxu0 %v9988_v17 }
 0x37f   :  { %8653 = vmatprep.mubr.msk.f32.mxu1 %vm9987_vm2, %v9986_v0  ;;  %8675 = vmatprep.mubr.msk.f32.mxu0 %vm9987_vm2, %v9986_v0 }
 0x381   :  { %9362 = vmatpush3.bf16.msra.mxu1 %v10498_v60  ;;  %9374 = vmatpush3.bf16.msra.mxu0 %v10500_v61 }
 0x382   :  { %9363 = vmatprep.subr.bf16.mxu1 %v9988_v17  ;;  %9375 = vmatprep.subr.bf16.mxu0 %v9988_v17 }
 0x384   :  { %8654 = vmatmul.mubr.msk.f32.vlgmr.msra.gmra.mrb[38].mxu1 %vm1874_vm3, %v10714_v28  ;;  %8676 = vmatmul.mubr.msk.f32.vlgmr.msra.gmra.mrb[36].mxu0 %vm1874_vm3, %v10711_v35 }
 0x385   :  { %9365 = vmatpush3.bf16.msra.mxu1 %v10522_v6  ;;  %9377 = vmatpush3.bf16.msra.mxu0 %v10524_v8 }
 0x386   :  { %9366 = vmatprep.subr.bf16.mxu1 %v9988_v17  ;;  %9378 = vmatprep.subr.bf16.mxu0 %v9988_v17 }
 0x387   :  { %8664 = vmatprep.mubr.msk.f32.mxu1 %vm9987_vm2, %v9986_v0  ;;  %8686 = vmatprep.mubr.msk.f32.mxu0 %vm9987_vm2, %v9986_v0 }
 0x389   :  { %9368 = vmatpush3.bf16.msra.mxu1 %v10545_v15  ;;  %9380 = vmatpush3.bf16.msra.mxu0 %v10547_v16 }
 0x38a   :  { %9381 = vmatprep.subr.bf16.mxu1 %v9988_v17  ;;  %9387 = vmatprep.subr.bf16.mxu0 %v9988_v17 }
 0x38c   :  { %8665 = vmatmul.mubr.msk.f32.vlgmr.msra.gmra.mrb[36].mxu1 %vm1874_vm3, %v10711_v35  ;;  %8687 = vmatmul.mubr.msk.f32.vlgmr.msra.gmra.mrb[38].mxu0 %vm1874_vm3, %v10711_v35 }
 0x38d   :  { %9383 = vmatpush3.bf16.msra.mxu1 %v10300_v14  ;;  %9389 = vmatpush3.bf16.msra.mxu0 %v10342_v23 }
 0x38e   :  { %9384 = vmatprep.subr.bf16.mxu1 %v9988_v17  ;;  %9390 = vmatprep.subr.bf16.mxu0 %v9988_v17 }
 0x38f   :  { %8697 = vmatprep.mubr.msk.f32.mxu1 %vm9987_vm2, %v9986_v0  ;;  %8708 = vmatprep.mubr.msk.f32.mxu0 %vm9987_vm2, %v9986_v0 }
 0x391   :  { %9386 = vmatpush3.bf16.msra.mxu1 %v10319_v18  ;;  %9392 = vmatpush3.bf16.msra.mxu0 %v10366_v29 }
 0x392   :  { %9393 = vmatprep.subr.bf16.mxu1 %v9988_v17  ;;  %9399 = vmatprep.subr.bf16.mxu0 %v9988_v17 }
 0x394   :  { %8698 = vmatmul.mubr.msk.f32.vlgmr.msra.gmra.mrb[10].mxu1 %vm1874_vm3, %v10714_v28  ;;  %8709 = vmatmul.mubr.msk.f32.vlgmr.msra.gmra.mrb[8].mxu0 %vm1874_vm3, %v10714_v28 }
 0x395   :  { %9395 = vmatpush3.bf16.msra.mxu1 %v10355_v26  ;;  %8719 = vmatprep.mubr.msk.f32.mxu1 %vm9987_vm2, %v9986_v0 }
 0x396   :  { %9396 = vmatprep.subr.bf16.mxu1 %v9988_v17  ;;  %9401 = vmatpush3.bf16.msra.mxu0 %v10396_v34 }
 0x397   :  { %9402 = vmatprep.subr.bf16.mxu0 %v9988_v17  ;;  %8730 = vmatprep.mubr.msk.f32.mxu0 %vm9987_vm2, %v9986_v0 }
 0x399   :  { %9398 = vmatpush3.bf16.msra.mxu1 %v10372_v30 }
 0x39a   :  { %9405 = vmatprep.subr.bf16.mxu1 %v9988_v17  ;;  %9404 = vmatpush3.bf16.msra.mxu0 %v10416_v40 }
 0x39b   :  { %9411 = vmatprep.subr.bf16.mxu0 %v9988_v17 }
 0x39c   :  { %8720 = vmatmul.mubr.msk.f32.vlgmr.msra.gmra.mrb[40].mxu1 %vm1874_vm3, %v10714_v28 }
 0x39d   :  { %9407 = vmatpush3.bf16.msra.mxu1 %v10401_v36  ;;  %8741 = vmatprep.mubr.msk.f32.mxu1 %vm9987_vm2, %v9986_v0 }
 0x39e   :  { %9408 = vmatprep.subr.bf16.mxu1 %v9988_v17 }
 0x3a1   :  { %9410 = vmatpush3.bf16.msra.mxu1 %v10421_v42 }
 0x3a2   :  { %9423 = vmatprep.subr.bf16.mxu1 %v9988_v17 }
 0x457   :  { %v3701_v50 = vpop.f32.mrb[38].mxu1  ;;  %v3844_v19 = vpop.f32.mrb[36].mxu0 }
 0x458   :  { %v8655_v57 = vpop.f32.mrb[39].mxu1  ;;  %v8677_v45 = vpop.f32.mrb[37].mxu0  ;;  %v9737_v54 = vadd.f32 %v10605_v31, %v3844_v19  ;;  %v3702_v19 = vadd.f32 %v10619_v11, %v3701_v50 }
 0x45a   :  { %v7740_v59 = vmul.f32 -1.442695, %v9737_v54 }
 0x45f   :  { %v3774_v43 = vpop.f32.mrb[36].mxu1  ;;  %v3914_v46 = vpop.f32.mrb[38].mxu0 }
 0x460   :  { %v9736_v47 = vadd.f32 %v10600_v24, %v3774_v43  ;;  %v8666_v48 = vpop.f32.mrb[37].mxu1  ;;  %v8688_v53 = vpop.f32.mrb[39].mxu0  ;;  %v3915_v41 = vadd.f32 %v10614_v5, %v3914_v46 }
 0x462   :  { %v7739_v55 = vmul.f32 -1.442695, %v9736_v47 }
 0x464   :  { %9863 = vpow2.f32 %v7739_v55 }
 0x465   :  { %9865 = vpow2.f32 %v7740_v59 }
 0x467   :  { %v4005_v63 = vpop.f32.mrb[10].mxu1  ;;  %v4075_v2 = vpop.f32.mrb[8].mxu0 }
 0x468   :  { %v9722_v9 = vadd.f32 %v10445_v3, %v4005_v63  ;;  %v8699_v10 = vpop.f32.mrb[11].mxu1  ;;  %v8710_v13 = vpop.f32.mrb[9].mxu0  ;;  %v9723_v21 = vadd.f32 %v10453_v12, %v4075_v2 }
 0x46a   :  { %v7744_v20 = vmul.f32 -1.442695, %v9722_v9  ;;  %v7745_v32 = vmul.f32 -1.442695, %v9723_v21 }
 0x46c   :  { %9867 = vpow2.f32 %v7744_v20 }
 0x46e   :  { %v9864_v22 = vpop.eup %9863 }
 0x46f   :  { %v3922_v25 = vadd.f32 1.0, %v9864_v22  ;;  %v4145_v4 = vpop.f32.mrb[40].mxu1  ;;  %v9866_v52 = vpop.eup %9865 }
 0x470   :  { %v8721_v33 = vpop.f32.mrb[41].mxu1  ;;  %v3929_v39 = vadd.f32 1.0, %v9866_v52  ;;  %v4146_v48 = vadd.f32 %v10459_v27, %v4145_v4 }
 0x471   :  { %9869 = vrcp.f32 %v3922_v25 }
 0x472   :  { %9871 = vpow2.f32 %v7745_v32 }
 0x476   :  { %v9868_v37 = vpop.eup %9867 }
 0x477   :  { %v4153_v38 = vadd.f32 1.0, %v9868_v37 }
 0x479   :  { %9873 = vrcp.f32 %v4153_v38 }
 0x47a   :  { %9875 = vrcp.f32 %v3929_v39 }
 0x47b   :  { %v9870_v44 = vpop.eup %9869 }
 0x47c   :  { %v3932_v57 = vmul.f32 %v9870_v44, %v3915_v41  ;;  %v9872_v45 = vpop.eup %9871 }
 0x47d   :  { %v4160_v47 = vadd.f32 1.0, %v9872_v45 }
 0x47e   :  { %v3933_v43 = vadd.f32 %v3932_v57, %v3702_v19 }
 0x480   :  { %9877 = vtanh.f32 %v3933_v43 }
 0x481   :  { %9879 = vrcp.f32 %v4160_v47 }
 0x483   :  { %v9874_v53 = vpop.eup %9873 }
 0x484   :  { %v4163_v55 = vmul.f32 %v9874_v53, %v4146_v48  ;;  %v9876_v54 = vpop.eup %9875 }
 0x485   :  { %v3935_v63 = vsub.f32 1.0, %v9876_v54  ;;  %v3937_v50 = vmul.f32 %v9876_v54, %v10711_v35 }
 0x486   :  { %v4164_v59 = vadd.f32 %v4163_v55, %v10436_v58 }
 0x488   :  { %9881 = vtanh.f32 %v4164_v59 }
 0x48a   :  { %v9878_v46 = vpop.eup %9877 }
 0x48b   :  { %v3936_v2 = vmul.f32 %v9878_v46, %v3935_v63  ;;  %v9880_v10 = vpop.eup %9879 }
 0x48c   :  { %v4166_v13 = vsub.f32 1.0, %v9880_v10  ;;  %v4168_v21 = vmul.f32 %v9880_v10, %v10714_v28 }
 0x48d   :  { %v10797_v9 = vadd.f32 %v3937_v50, %v3936_v2 }
 0x492   :  { %v9882_v20 = vpop.eup %9881 }
 0x493   :  { %v4167_v22 = vmul.f32 %v9882_v20, %v4166_v13 }
 0x495   :  { %v10800_v25 = vadd.f32 %v4168_v21, %v4167_v22 }
 0x497   :  { %8731 = vmatmul.mubr.msk.f32.vlgmr.msra.gmra.mrb[40].mxu0 %vm1874_vm3, %v10800_v25  ;;  %8742 = vmatmul.mubr.msk.f32.vlgmr.msra.gmra.mrb[42].mxu1 %vm1874_vm3, %v10800_v25 }
 0x498   :  { %9413 = vmatpush3.bf16.msra.mxu0 %v10474_v49  ;;  %9425 = vmatpush3.bf16.msra.mxu1 %v10476_v51 }
 0x499   :  { %9414 = vmatprep.subr.bf16.mxu0 %v9988_v17  ;;  %9426 = vmatprep.subr.bf16.mxu1 %v9988_v17 }
 0x49a   :  { %8752 = vmatprep.mubr.msk.f32.mxu0 %vm9987_vm2, %v9986_v0  ;;  %8774 = vmatprep.mubr.msk.f32.mxu1 %vm9987_vm2, %v9986_v0 }
 0x49c   :  { %9416 = vmatpush3.bf16.msra.mxu0 %v10498_v60  ;;  %9428 = vmatpush3.bf16.msra.mxu1 %v10500_v61 }
 0x49d   :  { %9417 = vmatprep.subr.bf16.mxu0 %v9988_v17  ;;  %9429 = vmatprep.subr.bf16.mxu1 %v9988_v17 }
 0x49f   :  { %8753 = vmatmul.mubr.msk.f32.vlgmr.msra.gmra.mrb[42].mxu0 %vm1874_vm3, %v10800_v25  ;;  %8775 = vmatmul.mubr.msk.f32.vlgmr.msra.gmra.mrb[42].mxu1 %vm1874_vm3, %v10797_v9 }
 0x4a0   :  { %9419 = vmatpush3.bf16.msra.mxu0 %v10522_v6  ;;  %9431 = vmatpush3.bf16.msra.mxu1 %v10524_v8 }
 0x4a1   :  { %9420 = vmatprep.subr.bf16.mxu0 %v9988_v17  ;;  %9432 = vmatprep.subr.bf16.mxu1 %v9988_v17 }
 0x4a2   :  { %8763 = vmatprep.mubr.msk.f32.mxu0 %vm9987_vm2, %v9986_v0  ;;  %8785 = vmatprep.mubr.msk.f32.mxu1 %vm9987_vm2, %v9986_v0 }
 0x4a4   :  { %9422 = vmatpush3.bf16.msra.mxu0 %v10545_v15  ;;  %9434 = vmatpush3.bf16.msra.mxu1 %v10547_v16 }
 0x4a5   :  { %9435 = vmatprep.subr.bf16.mxu0 %v9988_v17  ;;  %9441 = vmatprep.subr.bf16.mxu1 %v9988_v17 }
 0x4a7   :  { %8764 = vmatmul.mubr.msk.f32.vlgmr.msra.gmra.mrb[40].mxu0 %vm1874_vm3, %v10797_v9  ;;  %8786 = vmatmul.mubr.msk.f32.vlgmr.msra.gmra.mrb[44].mxu1 %vm1874_vm3, %v10797_v9 }
 0x4a8   :  { %9437 = vmatpush3.bf16.msra.mxu0 %v10300_v14  ;;  %9443 = vmatpush3.bf16.msra.mxu1 %v10342_v23 }
 0x4a9   :  { %9438 = vmatprep.subr.bf16.mxu0 %v9988_v17  ;;  %9444 = vmatprep.subr.bf16.mxu1 %v9988_v17 }
 0x4aa   :  { %8796 = vmatprep.mubr.msk.f32.mxu0 %vm9987_vm2, %v9986_v0  ;;  %8807 = vmatprep.mubr.msk.f32.mxu1 %vm9987_vm2, %v9986_v0 }
 0x4ac   :  { %9440 = vmatpush3.bf16.msra.mxu0 %v10319_v18  ;;  %9446 = vmatpush3.bf16.msra.mxu1 %v10366_v29 }
 0x4ad   :  { %9447 = vmatprep.subr.bf16.mxu0 %v9988_v17  ;;  %9453 = vmatprep.subr.bf16.mxu1 %v9988_v17 }
 0x4af   :  { %8797 = vmatmul.mubr.msk.f32.vlgmr.msra.gmra.mrb[10].mxu0 %vm1874_vm3, %v10800_v25  ;;  %8808 = vmatmul.mubr.msk.f32.vlgmr.msra.gmra.mrb[14].mxu1 %vm1874_vm3, %v10800_v25 }
 0x4b0   :  { %9449 = vmatpush3.bf16.msra.mxu0 %v10355_v26  ;;  %8818 = vmatprep.mubr.msk.f32.mxu0 %vm9987_vm2, %v9986_v0 }
 0x4b1   :  { %9450 = vmatprep.subr.bf16.mxu0 %v9988_v17  ;;  %9455 = vmatpush3.bf16.msra.mxu1 %v10396_v34 }
 0x4b2   :  { %9456 = vmatprep.subr.bf16.mxu1 %v9988_v17  ;;  %8829 = vmatprep.mubr.msk.f32.mxu1 %vm9987_vm2, %v9986_v0 }
 0x4b4   :  { %9452 = vmatpush3.bf16.msra.mxu0 %v10372_v30 }
 0x4b5   :  { %9459 = vmatprep.subr.bf16.mxu0 %v9988_v17  ;;  %9458 = vmatpush3.bf16.msra.mxu1 %v10416_v40 }
 0x4b6   :  { %9465 = vmatprep.subr.bf16.mxu1 %v9988_v17 }
 0x4b7   :  { %8819 = vmatmul.mubr.msk.f32.vlgmr.msra.gmra.mrb[44].mxu0 %vm1874_vm3, %v10800_v25 }
 0x4b8   :  { %9461 = vmatpush3.bf16.msra.mxu0 %v10401_v36  ;;  %8840 = vmatprep.mubr.msk.f32.mxu0 %vm9987_vm2, %v9986_v0 }
 0x4b9   :  { %9462 = vmatprep.subr.bf16.mxu0 %v9988_v17 }
 0x4bc   :  { %9464 = vmatpush3.bf16.msra.mxu0 %v10421_v42 }
 0x4bd   :  { %9477 = vmatprep.subr.bf16.mxu0 %v9988_v17 }
 0x572   :  { %v4379_v58 = vpop.f32.mrb[42].mxu0  ;;  %v4522_v35 = vpop.f32.mrb[42].mxu1 }
 0x573   :  { %v8754_v28 = vpop.f32.mrb[43].mxu0  ;;  %v8776_v32 = vpop.f32.mrb[43].mxu1  ;;  %v9739_v41 = vadd.f32 %v10605_v31, %v4522_v35  ;;  %v4380_v21 = vadd.f32 %v10619_v11, %v4379_v58 }
 0x575   :  { %v7753_v44 = vmul.f32 -1.442695, %v9739_v41 }
 0x57a   :  { %v4452_v4 = vpop.f32.mrb[40].mxu0  ;;  %v4592_v33 = vpop.f32.mrb[44].mxu1 }
 0x57b   :  { %v9738_v52 = vadd.f32 %v10600_v24, %v4452_v4  ;;  %v8765_v37 = vpop.f32.mrb[41].mxu0  ;;  %v8787_v38 = vpop.f32.mrb[45].mxu1 }
 0x57d   :  { %v7752_v39 = vmul.f32 -1.442695, %v9738_v52 }
 0x57f   :  { %9883 = vpow2.f32 %v7752_v39 }
 0x580   :  { %9885 = vpow2.f32 %v7753_v44 }
 0x582   :  { %v4683_v19 = vpop.f32.mrb[10].mxu0  ;;  %v4753_v57 = vpop.f32.mrb[14].mxu1 }
 0x583   :  { %v9724_v45 = vadd.f32 %v10445_v3, %v4683_v19  ;;  %v8798_v43 = vpop.f32.mrb[11].mxu0  ;;  %v8809_v47 = vpop.f32.mrb[15].mxu1  ;;  %v9725_v53 = vadd.f32 %v10453_v12, %v4753_v57  ;;  %v4593_v3 = vadd.f32 %v10614_v5, %v4592_v33 }
 0x585   :  { %v7757_v48 = vmul.f32 -1.442695, %v9724_v45  ;;  %v7758_v59 = vmul.f32 -1.442695, %v9725_v53 }
 0x587   :  { %9887 = vpow2.f32 %v7757_v48 }
 0x589   :  { %v9884_v55 = vpop.eup %9883 }
 0x58a   :  { %v4600_v54 = vadd.f32 1.0, %v9884_v55  ;;  %v4823_v63 = vpop.f32.mrb[44].mxu0  ;;  %v9886_v2 = vpop.eup %9885 }
 0x58b   :  { %v8820_v46 = vpop.f32.mrb[45].mxu0  ;;  %v4607_v13 = vadd.f32 1.0, %v9886_v2  ;;  %v4824_v32 = vadd.f32 %v10459_v27, %v4823_v63 }
 0x58c   :  { %9889 = vrcp.f32 %v4600_v54 }
 0x58d   :  { %9891 = vpow2.f32 %v7758_v59 }
 0x591   :  { %v9888_v50 = vpop.eup %9887 }
 0x592   :  { %v4831_v10 = vadd.f32 1.0, %v9888_v50 }
 0x594   :  { %9893 = vrcp.f32 %v4831_v10 }
 0x595   :  { %9895 = vrcp.f32 %v4607_v13 }
 0x596   :  { %v9890_v20 = vpop.eup %9889 }
 0x597   :  { %v4610_v12 = vmul.f32 %v9890_v20, %v4593_v3  ;;  %v9892_v22 = vpop.eup %9891  ;;  %v10965_v3 = vld [vmem:[%s11465_s12] ss:$0 sm:$0xff] }
 0x598   :  { %v4838_v28 = vadd.f32 1.0, %v9892_v22 }
 0x599   :  { %v4611_v35 = vadd.f32 %v4610_v12, %v4380_v21 }
 0x59b   :  { %9897 = vtanh.f32 %v4611_v35 }
 0x59c   :  { %9899 = vrcp.f32 %v4838_v28 }
 0x59e   :  { %v9894_v4 = vpop.eup %9893 }
 0x59f   :  { %v4841_v52 = vmul.f32 %v9894_v4, %v4824_v32  ;;  %v9896_v37 = vpop.eup %9895 }
 0x5a0   :  { %v4613_v39 = vsub.f32 1.0, %v9896_v37  ;;  %v4615_v58 = vmul.f32 %v9896_v37, %v10797_v9 }
 0x5a1   :  { %v4842_v38 = vadd.f32 %v4841_v52, %v10434_v56 }
 0x5a3   :  { %9901 = vtanh.f32 %v4842_v38 }
 0x5a5   :  { %v9898_v33 = vpop.eup %9897 }
 0x5a6   :  { %v4614_v41 = vmul.f32 %v9898_v33, %v4613_v39  ;;  %v9900_v19 = vpop.eup %9899 }
 0x5a7   :  { %v4844_v57 = vsub.f32 1.0, %v9900_v19  ;;  %v4846_v43 = vmul.f32 %v9900_v19, %v10800_v25 }
 0x5a8   :  { %v10883_v44 = vadd.f32 %v4615_v58, %v4614_v41 }
 0x5ad   :  { %v9902_v45 = vpop.eup %9901 }
 0x5ae   :  { %v4845_v27 = vmul.f32 %v9902_v45, %v4844_v57 }
 0x5b0   :  { %v10886_v47 = vadd.f32 %v4846_v43, %v4845_v27 }
 0x5b2   :  { %8830 = vmatmul.mubr.msk.f32.vlgmr.msra.gmra.mrb[46].mxu1 %vm1874_vm3, %v10886_v47  ;;  %8841 = vmatmul.mubr.msk.f32.vlgmr.msra.gmra.mrb[46].mxu0 %vm1874_vm3, %v10886_v47 }
 0x5b3   :  { %9467 = vmatpush3.bf16.msra.mxu1 %v10474_v49  ;;  %9479 = vmatpush3.bf16.msra.mxu0 %v10476_v51 }
 0x5b4   :  { %9468 = vmatprep.subr.bf16.mxu1 %v9988_v17  ;;  %9480 = vmatprep.subr.bf16.mxu0 %v9988_v17 }
 0x5b5   :  { %8851 = vmatprep.mubr.msk.f32.mxu1 %vm9987_vm2, %v9986_v0  ;;  %8873 = vmatprep.mubr.msk.f32.mxu0 %vm9987_vm2, %v9986_v0 }
 0x5b7   :  { %9470 = vmatpush3.bf16.msra.mxu1 %v10498_v60  ;;  %9482 = vmatpush3.bf16.msra.mxu0 %v10500_v61 }
 0x5b8   :  { %9471 = vmatprep.subr.bf16.mxu1 %v9988_v17  ;;  %9483 = vmatprep.subr.bf16.mxu0 %v9988_v17 }
 0x5ba   :  { %8852 = vmatmul.mubr.msk.f32.vlgmr.msra.gmra.mrb[48].mxu1 %vm1874_vm3, %v10886_v47  ;;  %8874 = vmatmul.mubr.msk.f32.vlgmr.msra.gmra.mrb[46].mxu0 %vm1874_vm3, %v10883_v44 }
 0x5bb   :  { %9473 = vmatpush3.bf16.msra.mxu1 %v10522_v6  ;;  %9485 = vmatpush3.bf16.msra.mxu0 %v10524_v8 }
 0x5bc   :  { %9474 = vmatprep.subr.bf16.mxu1 %v9988_v17  ;;  %9486 = vmatprep.subr.bf16.mxu0 %v9988_v17 }
 0x5bd   :  { %8862 = vmatprep.mubr.msk.f32.mxu1 %vm9987_vm2, %v9986_v0  ;;  %8884 = vmatprep.mubr.msk.f32.mxu0 %vm9987_vm2, %v9986_v0 }
 0x5bf   :  { %9476 = vmatpush3.bf16.msra.mxu1 %v10545_v15  ;;  %9488 = vmatpush3.bf16.msra.mxu0 %v10547_v16 }
 0x5c0   :  { %9489 = vmatprep.subr.bf16.mxu1 %v9988_v17  ;;  %9495 = vmatprep.subr.bf16.mxu0 %v9988_v17 }
 0x5c2   :  { %8863 = vmatmul.mubr.msk.f32.vlgmr.msra.gmra.mrb[46].mxu1 %vm1874_vm3, %v10883_v44  ;;  %8885 = vmatmul.mubr.msk.f32.vlgmr.msra.gmra.mrb[48].mxu0 %vm1874_vm3, %v10883_v44 }
 0x5c3   :  { %9491 = vmatpush3.bf16.msra.mxu1 %v10300_v14  ;;  %9497 = vmatpush3.bf16.msra.mxu0 %v10342_v23 }
 0x5c4   :  { %9492 = vmatprep.subr.bf16.mxu1 %v9988_v17  ;;  %9498 = vmatprep.subr.bf16.mxu0 %v9988_v17 }
 0x5c5   :  { %8895 = vmatprep.mubr.msk.f32.mxu1 %vm9987_vm2, %v9986_v0  ;;  %8906 = vmatprep.mubr.msk.f32.mxu0 %vm9987_vm2, %v9986_v0 }
 0x5c7   :  { %9494 = vmatpush3.bf16.msra.mxu1 %v10319_v18  ;;  %9500 = vmatpush3.bf16.msra.mxu0 %v10366_v29 }
 0x5c8   :  { %9501 = vmatprep.subr.bf16.mxu1 %v9988_v17  ;;  %9507 = vmatprep.subr.bf16.mxu0 %v9988_v17 }
 0x5ca   :  { %8896 = vmatmul.mubr.msk.f32.vlgmr.msra.gmra.mrb[16].mxu1 %vm1874_vm3, %v10886_v47  ;;  %8907 = vmatmul.mubr.msk.f32.vlgmr.msra.gmra.mrb[14].mxu0 %vm1874_vm3, %v10886_v47 }
 0x5cb   :  { %9503 = vmatpush3.bf16.msra.mxu1 %v10355_v26  ;;  %8917 = vmatprep.mubr.msk.f32.mxu1 %vm9987_vm2, %v9986_v0 }
 0x5cc   :  { %9504 = vmatprep.subr.bf16.mxu1 %v9988_v17  ;;  %9509 = vmatpush3.bf16.msra.mxu0 %v10396_v34 }
 0x5cd   :  { %9510 = vmatprep.subr.bf16.mxu0 %v9988_v17  ;;  %8928 = vmatprep.mubr.msk.f32.mxu0 %vm9987_vm2, %v9986_v0 }
 0x5cf   :  { %9506 = vmatpush3.bf16.msra.mxu1 %v10372_v30 }
 0x5d0   :  { %9513 = vmatprep.subr.bf16.mxu1 %v9988_v17  ;;  %9512 = vmatpush3.bf16.msra.mxu0 %v10416_v40 }
 0x5d1   :  { %9519 = vmatprep.subr.bf16.mxu0 %v9988_v17 }
 0x5d2   :  { %8918 = vmatmul.mubr.msk.f32.vlgmr.msra.gmra.mrb[50].mxu1 %vm1874_vm3, %v10886_v47 }
 0x5d3   :  { %9515 = vmatpush3.bf16.msra.mxu1 %v10401_v36  ;;  %8939 = vmatprep.mubr.msk.f32.mxu1 %vm9987_vm2, %v9986_v0 }
 0x5d4   :  { %9516 = vmatprep.subr.bf16.mxu1 %v9988_v17 }
 0x5d7   :  { %9518 = vmatpush3.bf16.msra.mxu1 %v10421_v42 }
 0x5d8   :  { %9531 = vmatprep.subr.bf16.mxu1 %v9988_v17 }
 0x68d   :  { %v5057_v56 = vpop.f32.mrb[48].mxu1  ;;  %v5200_v9 = vpop.f32.mrb[46].mxu0 }
 0x68e   :  { %v8853_v25 = vpop.f32.mrb[49].mxu1  ;;  %v8875_v48 = vpop.f32.mrb[47].mxu0  ;;  %v9741_v2 = vadd.f32 %v10605_v31, %v5200_v9  ;;  %v5058_v19 = vadd.f32 %v10619_v11, %v5057_v56  ;;  %v10979_v9 = vld [vmem:[%s11419_s10] ss:$0 sm:$0xff] }
 0x690   :  { %v7766_v50 = vmul.f32 -1.442695, %v9741_v2 }
 0x695   :  { %v5130_v53 = vpop.f32.mrb[46].mxu1  ;;  %v5270_v55 = vpop.f32.mrb[48].mxu0 }
 0x696   :  { %v9740_v54 = vadd.f32 %v10600_v24, %v5130_v53  ;;  %v8864_v59 = vpop.f32.mrb[47].mxu1  ;;  %v8886_v63 = vpop.f32.mrb[49].mxu0  ;;  %v10971_v24 = vld [vmem:[%s11466_s5] ss:$0 sm:$0xff]  ;;  %v5271_v41 = vadd.f32 %v10614_v5, %v5270_v55 }
 0x698   :  { %v7765_v46 = vmul.f32 -1.442695, %v9740_v54 }
 0x69a   :  { %9903 = vpow2.f32 %v7765_v46 }
 0x69b   :  { %9905 = vpow2.f32 %v7766_v50 }
 0x69d   :  { %v5361_v10 = vpop.f32.mrb[16].mxu1  ;;  %v5431_v13 = vpop.f32.mrb[14].mxu0 }
 0x69e   :  { %v9726_v20 = vadd.f32 %v10965_v3, %v5361_v10  ;;  %v8897_v21 = vpop.f32.mrb[17].mxu1  ;;  %v8908_v12 = vpop.f32.mrb[15].mxu0  ;;  %v9727_v31 = vadd.f32 %v10971_v24, %v5431_v13 }
 0x6a0   :  { %v7770_v22 = vmul.f32 -1.442695, %v9726_v20  ;;  %v7771_v32 = vmul.f32 -1.442695, %v9727_v31  ;;  %v11064_v31 = vld [vmem:[%s11424_s17] ss:$0 sm:$0xff] }
 0x6a2   :  { %9907 = vpow2.f32 %v7770_v22 }
 0x6a4   :  { %v9904_v35 = vpop.eup %9903 }
 0x6a5   :  { %v5278_v28 = vadd.f32 1.0, %v9904_v35  ;;  %v5501_v4 = vpop.f32.mrb[50].mxu1  ;;  %v9906_v37 = vpop.eup %9905 }
 0x6a6   :  { %v8919_v52 = vpop.f32.mrb[51].mxu1  ;;  %v5285_v33 = vadd.f32 1.0, %v9906_v37  ;;  %v5502_v25 = vadd.f32 %v10979_v9, %v5501_v4 }
 0x6a7   :  { %9909 = vrcp.f32 %v5278_v28  ;;  %v11070_v52 = vld [vmem:[%s11425_s18] ss:$0 sm:$0xff] }
 0x6a8   :  { %9911 = vpow2.f32 %v7771_v32 }
 0x6ac   :  { %v9908_v38 = vpop.eup %9907 }
 0x6ad   :  { %v5509_v39 = vadd.f32 1.0, %v9908_v38 }
 0x6af   :  { %9913 = vrcp.f32 %v5509_v39 }
 0x6b0   :  { %9915 = vrcp.f32 %v5285_v33 }
 0x6b1   :  { %v9910_v58 = vpop.eup %9909 }
 0x6b2   :  { %v5288_v57 = vmul.f32 %v9910_v58, %v5271_v41  ;;  %v9912_v45 = vpop.eup %9911 }
 0x6b3   :  { %v5516_v27 = vadd.f32 1.0, %v9912_v45 }
 0x6b4   :  { %v5289_v43 = vadd.f32 %v5288_v57, %v5058_v19 }
 0x6b6   :  { %9917 = vtanh.f32 %v5289_v43 }
 0x6b7   :  { %9919 = vrcp.f32 %v5516_v27 }
 0x6b9   :  { %v9914_v48 = vpop.eup %9913 }
 0x6ba   :  { %v5519_v53 = vmul.f32 %v9914_v48, %v5502_v25  ;;  %v9916_v5 = vpop.eup %9915 }
 0x6bb   :  { %v5291_v11 = vsub.f32 1.0, %v9916_v5  ;;  %v5293_v59 = vmul.f32 %v9916_v5, %v10883_v44 }
 0x6bc   :  { %v5520_v55 = vadd.f32 %v5519_v53, %v10440_v1 }
 0x6be   :  { %9921 = vtanh.f32 %v5520_v55 }
 0x6c0   :  { %v9918_v56 = vpop.eup %9917 }
 0x6c1   :  { %v5292_v54 = vmul.f32 %v9918_v56, %v5291_v11  ;;  %v9920_v46 = vpop.eup %9919 }
 0x6c2   :  { %v5522_v2 = vsub.f32 1.0, %v9920_v46  ;;  %v5524_v10 = vmul.f32 %v9920_v46, %v10886_v47 }
 0x6c3   :  { %v10984_v63 = vadd.f32 %v5293_v59, %v5292_v54  ;;  %v11078_v54 = vld [vmem:[%s11426_s20] ss:$0 sm:$0xff] }
 0x6c8   :  { %v9922_v50 = vpop.eup %9921 }
 0x6c9   :  { %v5523_v13 = vmul.f32 %v9922_v50, %v5522_v2  ;;  %v11084_v2 = vld [vmem:[%s11427_s19] ss:$0 sm:$0xff] }
 0x6cb   :  { %v10987_v20 = vadd.f32 %v5524_v10, %v5523_v13 }
 0x6cd   :  { %8929 = vmatmul.mubr.msk.f32.vlgmr.msra.gmra.mrb[50].mxu0 %vm1874_vm3, %v10987_v20  ;;  %8940 = vmatmul.mubr.msk.f32.vlgmr.msra.gmra.mrb[52].mxu1 %vm1874_vm3, %v10987_v20 }
 0x6ce   :  { %9521 = vmatpush3.bf16.msra.mxu0 %v10474_v49  ;;  %9533 = vmatpush3.bf16.msra.mxu1 %v10476_v51 }
 0x6cf   :  { %9522 = vmatprep.subr.bf16.mxu0 %v9988_v17  ;;  %9534 = vmatprep.subr.bf16.mxu1 %v9988_v17 }
 0x6d0   :  { %8950 = vmatprep.mubr.msk.f32.mxu0 %vm9987_vm2, %v9986_v0  ;;  %8972 = vmatprep.mubr.msk.f32.mxu1 %vm9987_vm2, %v9986_v0 }
 0x6d2   :  { %9524 = vmatpush3.bf16.msra.mxu0 %v10498_v60  ;;  %9536 = vmatpush3.bf16.msra.mxu1 %v10500_v61 }
 0x6d3   :  { %9525 = vmatprep.subr.bf16.mxu0 %v9988_v17  ;;  %9537 = vmatprep.subr.bf16.mxu1 %v9988_v17 }
 0x6d5   :  { %8951 = vmatmul.mubr.msk.f32.vlgmr.msra.gmra.mrb[52].mxu0 %vm1874_vm3, %v10987_v20  ;;  %8973 = vmatmul.mubr.msk.f32.vlgmr.msra.gmra.mrb[52].mxu1 %vm1874_vm3, %v10984_v63 }
 0x6d6   :  { %9527 = vmatpush3.bf16.msra.mxu0 %v10522_v6  ;;  %9539 = vmatpush3.bf16.msra.mxu1 %v10524_v8 }
 0x6d7   :  { %9528 = vmatprep.subr.bf16.mxu0 %v9988_v17  ;;  %9540 = vmatprep.subr.bf16.mxu1 %v9988_v17 }
 0x6d8   :  { %8961 = vmatprep.mubr.msk.f32.mxu0 %vm9987_vm2, %v9986_v0  ;;  %8983 = vmatprep.mubr.msk.f32.mxu1 %vm9987_vm2, %v9986_v0 }
 0x6da   :  { %9530 = vmatpush3.bf16.msra.mxu0 %v10545_v15  ;;  %9542 = vmatpush3.bf16.msra.mxu1 %v10547_v16 }
 0x6db   :  { %9543 = vmatprep.subr.bf16.mxu0 %v9988_v17  ;;  %9549 = vmatprep.subr.bf16.mxu1 %v9988_v17 }
 0x6dd   :  { %8962 = vmatmul.mubr.msk.f32.vlgmr.msra.gmra.mrb[50].mxu0 %vm1874_vm3, %v10984_v63  ;;  %8984 = vmatmul.mubr.msk.f32.vlgmr.msra.gmra.mrb[54].mxu1 %vm1874_vm3, %v10984_v63 }
 0x6de   :  { %9545 = vmatpush3.bf16.msra.mxu0 %v10300_v14  ;;  %9551 = vmatpush3.bf16.msra.mxu1 %v10342_v23 }
 0x6df   :  { %9546 = vmatprep.subr.bf16.mxu0 %v9988_v17  ;;  %9552 = vmatprep.subr.bf16.mxu1 %v9988_v17 }
 0x6e0   :  { %8994 = vmatprep.mubr.msk.f32.mxu0 %vm9987_vm2, %v9986_v0  ;;  %9005 = vmatprep.mubr.msk.f32.mxu1 %vm9987_vm2, %v9986_v0 }
 0x6e2   :  { %9548 = vmatpush3.bf16.msra.mxu0 %v10319_v18  ;;  %9554 = vmatpush3.bf16.msra.mxu1 %v10366_v29 }
 0x6e3   :  { %9555 = vmatprep.subr.bf16.mxu0 %v9988_v17  ;;  %9561 = vmatprep.subr.bf16.mxu1 %v9988_v17 }
 0x6e5   :  { %8995 = vmatmul.mubr.msk.f32.vlgmr.msra.gmra.mrb[16].mxu0 %vm1874_vm3, %v10987_v20  ;;  %9006 = vmatmul.mubr.msk.f32.vlgmr.msra.gmra.mrb[20].mxu1 %vm1874_vm3, %v10987_v20 }
 0x6e6   :  { %9557 = vmatpush3.bf16.msra.mxu0 %v10355_v26  ;;  %9016 = vmatprep.mubr.msk.f32.mxu0 %vm9987_vm2, %v9986_v0 }
 0x6e7   :  { %9558 = vmatprep.subr.bf16.mxu0 %v9988_v17  ;;  %9563 = vmatpush3.bf16.msra.mxu1 %v10396_v34 }
 0x6e8   :  { %9564 = vmatprep.subr.bf16.mxu1 %v9988_v17  ;;  %9027 = vmatprep.mubr.msk.f32.mxu1 %vm9987_vm2, %v9986_v0 }
 0x6ea   :  { %9560 = vmatpush3.bf16.msra.mxu0 %v10372_v30 }
 0x6eb   :  { %9567 = vmatprep.subr.bf16.mxu0 %v9988_v17  ;;  %9566 = vmatpush3.bf16.msra.mxu1 %v10416_v40 }
 0x6ec   :  { %9573 = vmatprep.subr.bf16.mxu1 %v9988_v17 }
 0x6ed   :  { %9017 = vmatmul.mubr.msk.f32.vlgmr.msra.gmra.mrb[54].mxu0 %vm1874_vm3, %v10987_v20 }
 0x6ee   :  { %9569 = vmatpush3.bf16.msra.mxu0 %v10401_v36  ;;  %9038 = vmatprep.mubr.msk.f32.mxu0 %vm9987_vm2, %v9986_v0 }
 0x6ef   :  { %9570 = vmatprep.subr.bf16.mxu0 %v9988_v17 }
 0x6f2   :  { %9572 = vmatpush3.bf16.msra.mxu0 %v10421_v42 }
 0x6f3   :  { %9585 = vmatprep.subr.bf16.mxu0 %v9988_v17 }
 0x7a8   :  { %v5735_v1 = vpop.f32.mrb[52].mxu0  ;;  %v5878_v44 = vpop.f32.mrb[52].mxu1 }
 0x7a9   :  { %v8952_v47 = vpop.f32.mrb[53].mxu0  ;;  %v8974_v21 = vpop.f32.mrb[53].mxu1  ;;  %v9743_v37 = vadd.f32 %v11070_v52, %v5878_v44  ;;  %v5736_v50 = vadd.f32 %v11084_v2, %v5735_v1 }
 0x7ab   :  { %v7779_v38 = vmul.f32 -1.442695, %v9743_v37 }
 0x7b0   :  { %v5808_v12 = vpop.f32.mrb[50].mxu0  ;;  %v5948_v22 = vpop.f32.mrb[54].mxu1 }
 0x7b1   :  { %v9742_v35 = vadd.f32 %v11064_v31, %v5808_v12  ;;  %v8963_v28 = vpop.f32.mrb[51].mxu0  ;;  %v8985_v32 = vpop.f32.mrb[55].mxu1  ;;  %v5949_v59 = vadd.f32 %v11078_v54, %v5948_v22 }
 0x7b3   :  { %v7778_v4 = vmul.f32 -1.442695, %v9742_v35 }
 0x7b5   :  { %9923 = vpow2.f32 %v7778_v4 }
 0x7b6   :  { %9925 = vpow2.f32 %v7779_v38 }
 0x7b8   :  { %v6039_v39 = vpop.f32.mrb[16].mxu0  ;;  %v6109_v33 = vpop.f32.mrb[20].mxu1 }
 0x7b9   :  { %v9728_v41 = vadd.f32 %v10965_v3, %v6039_v39  ;;  %v8996_v58 = vpop.f32.mrb[17].mxu0  ;;  %v9007_v19 = vpop.f32.mrb[21].mxu1  ;;  %v9729_v45 = vadd.f32 %v10971_v24, %v6109_v33 }
 0x7bb   :  { %v7783_v57 = vmul.f32 -1.442695, %v9728_v41  ;;  %v7784_v25 = vmul.f32 -1.442695, %v9729_v45 }
 0x7bd   :  { %9927 = vpow2.f32 %v7783_v57 }
 0x7bf   :  { %v9924_v43 = vpop.eup %9923 }
 0x7c0   :  { %v5956_v27 = vadd.f32 1.0, %v9924_v43  ;;  %v6179_v48 = vpop.f32.mrb[54].mxu0  ;;  %v9926_v5 = vpop.eup %9925 }
 0x7c1   :  { %v9018_v53 = vpop.f32.mrb[55].mxu0  ;;  %v5963_v56 = vadd.f32 1.0, %v9926_v5  ;;  %v6180_v21 = vadd.f32 %v10979_v9, %v6179_v48 }
 0x7c2   :  { %9929 = vrcp.f32 %v5956_v27 }
 0x7c3   :  { %9931 = vpow2.f32 %v7784_v25 }
 0x7c7   :  { %v9928_v55 = vpop.eup %9927 }
 0x7c8   :  { %v6187_v11 = vadd.f32 1.0, %v9928_v55 }
 0x7ca   :  { %9933 = vrcp.f32 %v6187_v11 }
 0x7cb   :  { %9935 = vrcp.f32 %v5963_v56 }
 0x7cc   :  { %v9930_v46 = vpop.eup %9929 }
 0x7cd   :  { %v5966_v10 = vmul.f32 %v9930_v46, %v5949_v59  ;;  %v9932_v13 = vpop.eup %9931 }
 0x7ce   :  { %v6194_v47 = vadd.f32 1.0, %v9932_v13 }
 0x7cf   :  { %v5967_v44 = vadd.f32 %v5966_v10, %v5736_v50 }
 0x7d1   :  { %9937 = vtanh.f32 %v5967_v44 }
 0x7d2   :  { %9939 = vrcp.f32 %v6194_v47 }
 0x7d4   :  { %v9934_v12 = vpop.eup %9933 }
 0x7d5   :  { %v6197_v35 = vmul.f32 %v9934_v12, %v6180_v21  ;;  %v9936_v22 = vpop.eup %9935 }
 0x7d6   :  { %v5969_v32 = vsub.f32 1.0, %v9936_v22  ;;  %v5971_v1 = vmul.f32 %v9936_v22, %v10984_v63 }
 0x7d7   :  { %v6198_v28 = vadd.f32 %v6197_v35, %v10438_v62 }
 0x7d9   :  { %9941 = vtanh.f32 %v6198_v28 }
 0x7db   :  { %v9938_v4 = vpop.eup %9937 }
 0x7dc   :  { %v5970_v37 = vmul.f32 %v9938_v4, %v5969_v32  ;;  %v9940_v39 = vpop.eup %9939 }
 0x7dd   :  { %v6200_v33 = vsub.f32 1.0, %v9940_v39  ;;  %v6202_v58 = vmul.f32 %v9940_v39, %v10987_v20 }
 0x7de   :  { %v11090_v38 = vadd.f32 %v5971_v1, %v5970_v37 }
 0x7e3   :  { %v9942_v41 = vpop.eup %9941 }
 0x7e4   :  { %v6201_v19 = vmul.f32 %v9942_v41, %v6200_v33 }
 0x7e6   :  { %v11093_v57 = vadd.f32 %v6202_v58, %v6201_v19 }
 0x7e8   :  { %9028 = vmatmul.mubr.msk.f32.vlgmr.msra.gmra.mrb[56].mxu1 %vm1874_vm3, %v11093_v57  ;;  %9039 = vmatmul.mubr.msk.f32.vlgmr.msra.gmra.mrb[56].mxu0 %vm1874_vm3, %v11093_v57 }
 0x7e9   :  { %9575 = vmatpush3.bf16.msra.mxu1 %v10474_v49  ;;  %9587 = vmatpush3.bf16.msra.mxu0 %v10476_v51 }
 0x7ea   :  { %9576 = vmatprep.subr.bf16.mxu1 %v9988_v17  ;;  %9588 = vmatprep.subr.bf16.mxu0 %v9988_v17 }
 0x7eb   :  { %9049 = vmatprep.mubr.msk.f32.mxu1 %vm9987_vm2, %v9986_v0  ;;  %9071 = vmatprep.mubr.msk.f32.mxu0 %vm9987_vm2, %v9986_v0 }
 0x7ed   :  { %9578 = vmatpush3.bf16.msra.mxu1 %v10498_v60  ;;  %9590 = vmatpush3.bf16.msra.mxu0 %v10500_v61 }
 0x7ee   :  { %9579 = vmatprep.subr.bf16.mxu1 %v9988_v17  ;;  %9591 = vmatprep.subr.bf16.mxu0 %v9988_v17 }
 0x7f0   :  { %9050 = vmatmul.mubr.msk.f32.vlgmr.msra.gmra.mrb[58].mxu1 %vm1874_vm3, %v11093_v57  ;;  %9072 = vmatmul.mubr.msk.f32.vlgmr.msra.gmra.mrb[56].mxu0 %vm1874_vm3, %v11090_v38 }
 0x7f1   :  { %9581 = vmatpush3.bf16.msra.mxu1 %v10522_v6  ;;  %9593 = vmatpush3.bf16.msra.mxu0 %v10524_v8 }
 0x7f2   :  { %9582 = vmatprep.subr.bf16.mxu1 %v9988_v17  ;;  %9594 = vmatprep.subr.bf16.mxu0 %v9988_v17 }
 0x7f3   :  { %9060 = vmatprep.mubr.msk.f32.mxu1 %vm9987_vm2, %v9986_v0  ;;  %9082 = vmatprep.mubr.msk.f32.mxu0 %vm9987_vm2, %v9986_v0 }
 0x7f5   :  { %9584 = vmatpush3.bf16.msra.mxu1 %v10545_v15  ;;  %9596 = vmatpush3.bf16.msra.mxu0 %v10547_v16 }
 0x7f6   :  { %9597 = vmatprep.subr.bf16.mxu1 %v9988_v17  ;;  %9603 = vmatprep.subr.bf16.mxu0 %v9988_v17 }
 0x7f8   :  { %9061 = vmatmul.mubr.msk.f32.vlgmr.msra.gmra.mrb[56].mxu1 %vm1874_vm3, %v11090_v38  ;;  %9083 = vmatmul.mubr.msk.f32.vlgmr.msra.gmra.mrb[58].mxu0 %vm1874_vm3, %v11090_v38 }
 0x7f9   :  { %9599 = vmatpush3.bf16.msra.mxu1 %v10300_v14  ;;  %9605 = vmatpush3.bf16.msra.mxu0 %v10342_v23 }
 0x7fa   :  { %9600 = vmatprep.subr.bf16.mxu1 %v9988_v17  ;;  %9606 = vmatprep.subr.bf16.mxu0 %v9988_v17 }
 0x7fb   :  { %9093 = vmatprep.mubr.msk.f32.mxu1 %vm9987_vm2, %v9986_v0  ;;  %9104 = vmatprep.mubr.msk.f32.mxu0 %vm9987_vm2, %v9986_v0 }
 0x7fd   :  { %9602 = vmatpush3.bf16.msra.mxu1 %v10319_v18  ;;  %9608 = vmatpush3.bf16.msra.mxu0 %v10366_v29 }
 0x7fe   :  { %9609 = vmatprep.subr.bf16.mxu1 %v9988_v17  ;;  %9615 = vmatprep.subr.bf16.mxu0 %v9988_v17 }
 0x800   :  { %9094 = vmatmul.mubr.msk.f32.vlgmr.msra.gmra.mrb[22].mxu1 %vm1874_vm3, %v11093_v57  ;;  %9105 = vmatmul.mubr.msk.f32.vlgmr.msra.gmra.mrb[20].mxu0 %vm1874_vm3, %v11093_v57 }
 0x801   :  { %9611 = vmatpush3.bf16.msra.mxu1 %v10355_v26  ;;  %9115 = vmatprep.mubr.msk.f32.mxu1 %vm9987_vm2, %v9986_v0 }
 0x802   :  { %9612 = vmatprep.subr.bf16.mxu1 %v9988_v17  ;;  %9617 = vmatpush3.bf16.msra.mxu0 %v10396_v34 }
 0x803   :  { %9618 = vmatprep.subr.bf16.mxu0 %v9988_v17  ;;  %9126 = vmatprep.mubr.msk.f32.mxu0 %vm9987_vm2, %v9986_v0 }
 0x805   :  { %9614 = vmatpush3.bf16.msra.mxu1 %v10372_v30 }
 0x806   :  { %9621 = vmatprep.subr.bf16.mxu1 %v9988_v17  ;;  %9620 = vmatpush3.bf16.msra.mxu0 %v10416_v40 }
 0x807   :  { %9627 = vmatprep.subr.bf16.mxu0 %v9988_v17 }
 0x808   :  { %9116 = vmatmul.mubr.msk.f32.vlgmr.msra.gmra.mrb[60].mxu1 %vm1874_vm3, %v11093_v57 }
 0x809   :  { %9623 = vmatpush3.bf16.msra.mxu1 %v10401_v36  ;;  %9137 = vmatprep.mubr.msk.f32.mxu1 %vm9987_vm2, %v9986_v0 }
 0x80a   :  { %9624 = vmatprep.subr.bf16.mxu1 %v9988_v17 }
 0x80d   :  { %9626 = vmatpush3.bf16.msra.mxu1 %v10421_v42 }
 0x80e   :  { %9639 = vmatprep.subr.bf16.mxu1 %v9988_v17 }
 0x8c3   :  { %v6413_v14 = vpop.f32.mrb[58].mxu1  ;;  %v6556_v18 = vpop.f32.mrb[56].mxu0 }
 0x8c4   :  { %v9051_v23 = vpop.f32.mrb[59].mxu1  ;;  %v9073_v26 = vpop.f32.mrb[57].mxu0  ;;  %v9745_v63 = vadd.f32 %v11070_v52, %v6556_v18  ;;  %v6414_v47 = vadd.f32 %v11084_v2, %v6413_v14 }
 0x8c6   :  { %v7792_v20 = vmul.f32 -1.442695, %v9745_v63  ;;  %v7455_v63 = vld [vmem:[%s11429_s23 + $0x90] sm:$0xff] }
 0x8cb   :  { %v6486_v29 = vpop.f32.mrb[56].mxu1  ;;  %v6626_v30 = vpop.f32.mrb[58].mxu0 }
 0x8cc   :  { %v9744_v34 = vadd.f32 %v11064_v31, %v6486_v29  ;;  %v9062_v40 = vpop.f32.mrb[57].mxu1  ;;  %v9084_v62 = vpop.f32.mrb[59].mxu0 }
 0x8cd   :  { %v7437_v40 = vld [vmem:[%s11429_s23] sm:$0xff] }
 0x8ce   :  { %v7791_v36 = vmul.f32 -1.442695, %v9744_v34  ;;  %v7454_v34 = vld [vmem:[%s11429_s23 + $0x88] sm:$0xff] }
 0x8d0   :  { %9943 = vpow2.f32 %v7791_v36  ;;  %v7438_v36 = vld [vmem:[%s11429_s23 + $0x8] sm:$0xff] }
 0x8d1   :  { %9945 = vpow2.f32 %v7792_v20  ;;  %v7456_v20 = vld [vmem:[%s11429_s23 + $0x98] sm:$0xff] }
 0x8d3   :  { %v6717_v45 = vpop.f32.mrb[22].mxu1  ;;  %v6787_v43 = vpop.f32.mrb[20].mxu0 }
 0x8d4   :  { %v9730_v42 = vadd.f32 %v10965_v3, %v6717_v45  ;;  %v9095_v27 = vpop.f32.mrb[23].mxu1  ;;  %v9106_v25 = vpop.f32.mrb[21].mxu0  ;;  %v9731_v53 = vadd.f32 %v10971_v24, %v6787_v43  ;;  %v6627_v3 = vadd.f32 %v11078_v54, %v6626_v30  ;;  %v7453_v30 = vld [vmem:[%s11429_s23 + $0x80] sm:$0xff]  ;;  %v9661_v45 = vpack.c.bf16 %v7438_v36, %v7437_v40  ;;  %v7450_v36 = vld [vmem:[%s11429_s23 + $0x68] sm:$0xff] }
 0x8d5   :  { %v9659_v62 = vpack.c.bf16 %v7454_v34, %v7453_v30  ;;  %v9663_v43 = vpack.c.bf16 %v7456_v20, %v7455_v63  ;;  %v7440_v27 = vld [vmem:[%s11429_s23 + $0x18] sm:$0xff]  ;;  %v7465_v30 = vld [vmem:[%s11429_s23 + $0xe0] sm:$0xff]  ;;  %v7466_v34 = vld [vmem:[%s11429_s23 + $0xe8] sm:$0xff] }
 0x8d6   :  { %v7796_v48 = vmul.f32 -1.442695, %v9730_v42  ;;  %v7797_v11 = vmul.f32 -1.442695, %v9731_v53  ;;  %v7439_v42 = vld [vmem:[%s11429_s23 + $0x10] sm:$0xff]  ;;  %v9683_v40 = vpack.c.bf16 %v7466_v34, %v7465_v30 }
 0x8d7   :  { %v9665_v25 = vpack.c.bf16 %v7440_v27, %v7439_v42  ;;  %v7467_v20 = vld [vmem:[%s11429_s23 + $0xf0] sm:$0xff]  ;;  %v7452_v27 = vld [vmem:[%s11429_s23 + $0x78] sm:$0xff] }
 0x8d8   :  { %9947 = vpow2.f32 %v7796_v48  ;;  %v7451_v42 = vld [vmem:[%s11429_s23 + $0x70] sm:$0xff] }
 0x8da   :  { %v9944_v5 = vpop.eup %9943 }
 0x8db   :  { %v6634_v55 = vadd.f32 1.0, %v9944_v5  ;;  %v6857_v56 = vpop.f32.mrb[60].mxu1  ;;  %v9946_v46 = vpop.eup %9945 }
 0x8dc   :  { %v9117_v59 = vpop.f32.mrb[61].mxu1  ;;  %v6641_v13 = vadd.f32 1.0, %v9946_v46  ;;  %v6858_v22 = vadd.f32 %v10979_v9, %v6857_v56 }
 0x8dd   :  { %9949 = vrcp.f32 %v6634_v55 }
 0x8de   :  { %9951 = vpow2.f32 %v7797_v11 }
 0x8e2   :  { %v9948_v50 = vpop.eup %9947 }
 0x8e3   :  { %v6865_v10 = vadd.f32 1.0, %v9948_v50 }
 0x8e5   :  { %9953 = vrcp.f32 %v6865_v10 }
 0x8e6   :  { %9955 = vrcp.f32 %v6641_v13 }
 0x8e7   :  { %v9950_v44 = vpop.eup %9949 }
 0x8e8   :  { %v6644_v24 = vmul.f32 %v9950_v44, %v6627_v3  ;;  %v9952_v21 = vpop.eup %9951 }
 0x8e9   :  { %v6872_v35 = vadd.f32 1.0, %v9952_v21 }
 0x8ea   :  { %v6645_v12 = vadd.f32 %v6644_v24, %v6414_v47 }
 0x8ec   :  { %9957 = vtanh.f32 %v6645_v12 }
 0x8ed   :  { %9959 = vrcp.f32 %v6872_v35 }
 0x8ef   :  { %v9954_v28 = vpop.eup %9953 }
 0x8f0   :  { %v6875_v32 = vmul.f32 %v9954_v28, %v6858_v22  ;;  %v9956_v4 = vpop.eup %9955 }
 0x8f1   :  { %v6647_v1 = vsub.f32 1.0, %v9956_v4  ;;  %v6649_v41 = vmul.f32 %v9956_v4, %v11090_v38  ;;  %v7333_v38 = vld [vmem:[%s11428_s21 + $0x20] sm:$0xff] }
 0x8f2   :  { %v6876_v37 = vadd.f32 %v6875_v32, %v10448_v7  ;;  %v7330_v7 = vld [vmem:[%s11428_s21 + $0x8] sm:$0xff] }
 0x8f4   :  { %9961 = vtanh.f32 %v6876_v37 }
 0x8f6   :  { %v9958_v39 = vpop.eup %9957 }
 0x8f7   :  { %v6648_v33 = vmul.f32 %v9958_v39, %v6647_v1  ;;  %v9960_v19 = vpop.eup %9959 }
 0x8f8   :  { %v6878_v14 = vsub.f32 1.0, %v9960_v19  ;;  %v6880_v9 = vmul.f32 %v9960_v19, %v11093_v57  ;;  %v7335_v57 = vld [vmem:[%s11428_s21 + $0x30] sm:$0xff] }
 0x8f9   :  { %v11176_v58 = vadd.f32 %v6649_v41, %v6648_v33  ;;  %v9657_v29 = vpack.c.bf16 %v7335_v57, %v7333_v38  ;;  %v7441_v41 = vld [vmem:[%s11429_s23 + $0x20] sm:$0xff]  ;;  %v7447_v38 = vld [vmem:[%s11429_s23 + $0x50] sm:$0xff]  ;;  %v7448_v57 = vld [vmem:[%s11429_s23 + $0x58] sm:$0xff] }
 0x8fe   :  { %v9962_v18 = vpop.eup %9961 }
 0x8ff   :  { %v6879_v23 = vmul.f32 %v9962_v18, %v6878_v14  ;;  %v7460_v14 = vld [vmem:[%s11429_s23 + $0xb8] sm:$0xff] }
 0x901   :  { %v6881_v26 = vadd.f32 %v6880_v9, %v6879_v23  ;;  %v7443_v23 = vld [vmem:[%s11429_s23 + $0x30] sm:$0xff]  ;;  %v7444_v9 = vld [vmem:[%s11429_s23 + $0x38] sm:$0xff] }
 0x903   :  { %9127 = vmatmul.mubr.msk.f32.vlgmr.msra.gmra.mrb[60].mxu0 %vm1874_vm3, %v6881_v26  ;;  %9138 = vmatmul.mubr.msk.f32.vlgmr.msra.gmra.mrb[62].mxu1 %vm1874_vm3, %v6881_v26 }
 0x904   :  { %9629 = vmatpush3.bf16.msra.mxu0 %v10474_v49  ;;  %9641 = vmatpush3.bf16.msra.mxu1 %v10476_v51  ;;  %v7332_v49 = vld [vmem:[%s11428_s21 + $0x18] sm:$0xff]  ;;  %v7329_v51 = vld [vmem:[%s11428_s21] sm:$0xff] }
 0x905   :  { %9630 = vmatprep.subr.bf16.mxu0 %v9988_v17  ;;  %9642 = vmatprep.subr.bf16.mxu1 %v9988_v17 }
 0x906   :  { %9148 = vmatprep.mubr.msk.f32.mxu0 %vm9987_vm2, %v9986_v0  ;;  %9170 = vmatprep.mubr.msk.f32.mxu1 %vm9987_vm2, %v9986_v0 }
 0x908   :  { %9632 = vmatpush3.bf16.msra.mxu0 %v10498_v60  ;;  %9644 = vmatpush3.bf16.msra.mxu1 %v10500_v61  ;;  %v9651_v60 = vpack.c.bf16 %v7332_v49, %v7330_v7  ;;  %v7331_v61 = vld [vmem:[%s11428_s21 + $0x10] sm:$0xff]  ;;  %v7461_v7 = vld [vmem:[%s11429_s23 + $0xc0] sm:$0xff]  ;;  %v7462_v49 = vld [vmem:[%s11429_s23 + $0xc8] sm:$0xff] }
 0x909   :  { %9633 = vmatprep.subr.bf16.mxu0 %v9988_v17  ;;  %9645 = vmatprep.subr.bf16.mxu1 %v9988_v17 }
 0x90b   :  { %9149 = vmatmul.mubr.msk.f32.vlgmr.msra.gmra.mrb[62].mxu0 %vm1874_vm3, %v6881_v26  ;;  %9171 = vmatmul.mubr.msk.f32.vlgmr.msra.gmra.mrb[62].mxu1 %vm1874_vm3, %v11176_v58  ;;  %v9673_v26 = vpack.c.bf16 %v7444_v9, %v7443_v23  ;;  %v7562_v23 = vld [vmem:[%s11430_s25 + $0x48] sm:$0xff] }
 0x90c   :  { %9635 = vmatpush3.bf16.msra.mxu0 %v10522_v6  ;;  %9647 = vmatpush3.bf16.msra.mxu1 %v10524_v8  ;;  %v7334_v6 = vld [vmem:[%s11428_s21 + $0x28] sm:$0xff]  ;;  %v7336_v8 = vld [vmem:[%s11428_s21 + $0x38] sm:$0xff] }
 0x90d   :  { %9636 = vmatprep.subr.bf16.mxu0 %v9988_v17  ;;  %9648 = vmatprep.subr.bf16.mxu1 %v9988_v17 }
 0x90e   :  { %9159 = vmatprep.mubr.msk.f32.mxu0 %vm9987_vm2, %v9986_v0  ;;  %9181 = vmatprep.mubr.msk.f32.mxu1 %vm9987_vm2, %v9986_v0 }
 0x910   :  { %9638 = vmatpush3.bf16.msra.mxu0 %v10545_v15  ;;  %9650 = vmatpush3.bf16.msra.mxu1 %v10547_v16  ;;  %v9653_v15 = vpack.c.bf16 %v7331_v61, %v7329_v51  ;;  %v9655_v16 = vpack.c.bf16 %v7336_v8, %v7334_v6  ;;  %v9675_v51 = vpack.c.bf16 %v7462_v49, %v7461_v7  ;;  %v7446_v61 = vld [vmem:[%s11429_s23 + $0x48] sm:$0xff]  ;;  %v7463_v8 = vld [vmem:[%s11429_s23 + $0xd0] sm:$0xff]  ;;  %v7564_v7 = vld [vmem:[%s11430_s25 + $0x58] sm:$0xff] }
 0x911   :  { %9652 = vmatprep.subr.bf16.mxu0 %v9651_v60  ;;  %9660 = vmatprep.subr.bf16.mxu1 %v9659_v62  ;;  %v7445_v60 = vld [vmem:[%s11429_s23 + $0x40] sm:$0xff] }
 0x912   :  { %v9677_v6 = vpack.c.bf16 %v7446_v61, %v7445_v60  ;;  %v7449_v62 = vld [vmem:[%s11429_s23 + $0x60] sm:$0xff]  ;;  %v7566_v60 = vld [vmem:[%s11430_s25 + $0x68] sm:$0xff] }
 0x913   :  { %9160 = vmatmul.mubr.msk.f32.vlgmr.msra.gmra.mrb[60].mxu0 %vm1874_vm3, %v11176_v58  ;;  %9182 = vmatmul.mubr.msk.f32.vlgmr.msra.gmra.mrb[64].mxu1 %vm1874_vm3, %v11176_v58  ;;  %v9685_v63 = vpack.c.bf16 %v7450_v36, %v7449_v62 }
 0x914   :  { %7416 = vmatprep.mubr.f32.mxu0 %v9986_v0  ;;  %9654 = vmatpush1.bf16.msra.mxu0 %v9653_v15  ;;  %v7464_v15 = vld [vmem:[%s11429_s23 + $0xd8] sm:$0xff] }
 0x915   :  { %9656 = vmatprep.subr.bf16.mxu0 %v9655_v16  ;;  %9662 = vmatpush3.bf16.msra.mxu1 %v9661_v45  ;;  %v9679_v16 = vpack.c.bf16 %v7464_v15, %v7463_v8  ;;  %v7468_v45 = vld [vmem:[%s11429_s23 + $0xf8] sm:$0xff] }
 0x916   :  { %9664 = vmatprep.subr.bf16.mxu1 %v9663_v43  ;;  %v9687_v43 = vpack.c.bf16 %v7468_v45, %v7467_v20  ;;  %v7568_v8 = vld [vmem:[%s11430_s25 + $0x78] sm:$0xff]  ;;  %v7811_v20 = vld [vmem:[%s11433_s26] ss:$0 sm:$0xff] }
 0x918   :  { %9658 = vmatpush1.bf16.msra.mxu0 %v9657_v29  ;;  %v9681_v29 = vpack.c.bf16 %v7448_v57, %v7447_v38  ;;  %v7809_v38 = vld [vmem:[%s11432_s24] ss:$0 sm:$0xff] }
 0x919   :  { %9691 = vmatprep.subr.bf16.mxu0 %v9988_v17  ;;  %9666 = vmatpush3.bf16.msra.mxu1 %v9665_v25  ;;  %v9689_v25 = vpack.c.bf16 %v7452_v27, %v7451_v42 }
 0x9de   :  { %v7091_v48 = vpop.f32.mrb[62].mxu0  ;;  %v7234_v53 = vpop.f32.mrb[62].mxu1 }
 0x9df   :  { %v9150_v5 = vpop.f32.mrb[63].mxu0  ;;  %v9172_v55 = vpop.f32.mrb[63].mxu1  ;;  %v9747_v13 = vadd.f32 %v11070_v52, %v7234_v53  ;;  %v7092_v22 = vadd.f32 %v11084_v2, %v7091_v48  ;;  %v7458_v2 = vld [vmem:[%s11429_s23 + $0xa8] sm:$0xff]  ;;  %v7553_v48 = vld [vmem:[%s11430_s25] sm:$0xff] }
 0x9e0   :  { %v7554_v53 = vld [vmem:[%s11430_s25 + $0x8] sm:$0xff]  ;;  %v7555_v5 = vld [vmem:[%s11430_s25 + $0x10] sm:$0xff] }
 0x9e1   :  { %v7805_v3 = vmul.f32 -1.442695, %v9747_v13  ;;  %v9692_v55 = vpack.c.bf16 %v7554_v53, %v7553_v48 }
 0x9e6   :  { %v7164_v11 = vpop.f32.mrb[60].mxu0  ;;  %v7304_v56 = vpop.f32.mrb[64].mxu1 }
 0x9e7   :  { %v9746_v59 = vadd.f32 %v11064_v31, %v7164_v11  ;;  %v9161_v46 = vpop.f32.mrb[61].mxu0  ;;  %v9183_v50 = vpop.f32.mrb[65].mxu1  ;;  %v7305_v12 = vadd.f32 %v11078_v54, %v7304_v56  ;;  %v7457_v54 = vld [vmem:[%s11429_s23 + $0xa0] sm:$0xff]  ;;  %v7556_v11 = vld [vmem:[%s11430_s25 + $0x18] sm:$0xff] }
 0x9e8   :  { %v9667_v33 = vpack.c.bf16 %v7458_v2, %v7457_v54  ;;  %v9695_v56 = vpack.c.bf16 %v7556_v11, %v7555_v5 }
 0x9e9   :  { %v7804_v10 = vmul.f32 -1.442695, %v9746_v59  ;;  %v7339_v59 = vlaneseq }
 0x9ea   :  { %9668 = vmatprep.subr.bf16.mxu1 %v9667_v33  ;;  %v7557_v33 = vld [vmem:[%s11430_s25 + $0x20] sm:$0xff] }
 0x9eb   :  { %9963 = vpow2.f32 %v7804_v10  ;;  %v7340_v46 = vshrl.u32 %v7339_v59, 7  ;;  %v7337_v10 = vld [vmem:[%s11431_s22] sm:$0x3] }
 0x9ec   :  { %9965 = vpow2.f32 %v7805_v3 }
 0x9ed   :  { %v7341_v50 = vsub.s32 0, %v7340_v46  ;;  %v7345_v13 = vsub.s32 1, %v7340_v46 }
 0x9ef   :  { %v7342_v3 = vrot.slane %v7337_v10, %v7341_v50 }
 0x9f5   :  { %v9964_v44 = vpop.eup %9963 }
 0x9f6   :  { %v7312_v47 = vadd.f32 1.0, %v9964_v44  ;;  %v9966_v24 = vpop.eup %9965  ;;  %v7346_v44 = vrot.slane %v7337_v10, %v7345_v13 }
 0x9f7   :  { %v7319_v21 = vadd.f32 1.0, %v9966_v24 }
 0x9f8   :  { %9967 = vrcp.f32 %v7312_v47 }
 0x9f9   :  { %9969 = vrcp.f32 %v7319_v21 }
 0xa02   :  { %v9968_v35 = vpop.eup %9967 }
 0xa03   :  { %v7322_v31 = vmul.f32 %v9968_v35, %v7305_v12  ;;  %v9970_v32 = vpop.eup %9969 }
 0xa04   :  { %v7325_v4 = vsub.f32 1.0, %v9970_v32  ;;  %v7327_v1 = vmul.f32 %v9970_v32, %v11176_v58  ;;  %v7442_v58 = vld [vmem:[%s11429_s23 + $0x28] sm:$0xff] }
 0xa05   :  { %v7323_v28 = vadd.f32 %v7322_v31, %v7092_v22  ;;  %v9669_v19 = vpack.c.bf16 %v7442_v58, %v7441_v41  ;;  %v7558_v41 = vld [vmem:[%s11430_s25 + $0x28] sm:$0xff] }
 0xa06   :  { %v9698_v58 = vpack.c.bf16 %v7558_v41, %v7557_v33 }
 0xa07   :  { %9971 = vtanh.f32 %v7323_v28  ;;  %9670 = vmatpush3.bf16.msra.mxu1 %v9669_v19  ;;  %v7559_v19 = vld [vmem:[%s11430_s25 + $0x30] sm:$0xff] }
 0xa11   :  { %v9972_v52 = vpop.eup %9971 }
 0xa12   :  { %v7326_v37 = vmul.f32 %v9972_v52, %v7325_v4 }
 0xa14   :  { %v7328_v39 = vadd.f32 %v7327_v1, %v7326_v37 }
 0xa16   :  { %7806 = vmatmul.mubr.msk.f32.vlgmr.msra.gmra.mrb[64].mxu0 %vm1874_vm3, %v7328_v39 }
 0xa17   :  { %9216 = vmatprep.mubr.msk.f32.mxu0 %vm9987_vm2, %v9986_v0  ;;  %v7459_v0 = vld [vmem:[%s11429_s23 + $0xb0] sm:$0xff]  ;;  %9693 = vmatpush3.bf16.msra.mxu0 %v9692_v55 }
 0xa18   :  { %v9671_v18 = vpack.c.bf16 %v7460_v14, %v7459_v0  ;;  %9694 = vmatprep.subr.bf16.mxu0 %v9988_v17  ;;  %v7560_v0 = vld [vmem:[%s11430_s25 + $0x38] sm:$0xff] }
 0xa19   :  { %v9701_v14 = vpack.c.bf16 %v7560_v0, %v7559_v19 }
 0xa1a   :  { %9672 = vmatprep.subr.bf16.mxu1 %v9671_v18  ;;  %v7561_v18 = vld [vmem:[%s11430_s25 + $0x40] sm:$0xff] }
 0xa1b   :  { %9674 = vmatpush3.bf16.msra.mxu1 %v9673_v26  ;;  %9696 = vmatpush3.bf16.msra.mxu0 %v9695_v56  ;;  %v9704_v9 = vpack.c.bf16 %v7562_v23, %v7561_v18  ;;  %v7563_v26 = vld [vmem:[%s11430_s25 + $0x50] sm:$0xff] }
 0xa1c   :  { %9676 = vmatprep.subr.bf16.mxu1 %v9675_v51  ;;  %9697 = vmatprep.subr.bf16.mxu0 %v9988_v17  ;;  %v9707_v49 = vpack.c.bf16 %v7564_v7, %v7563_v26  ;;  %v7565_v51 = vld [vmem:[%s11430_s25 + $0x60] sm:$0xff] }
 0xa1d   :  { %v9710_v61 = vpack.c.bf16 %v7566_v60, %v7565_v51 }
 0xa1f   :  { %9678 = vmatpush3.bf16.msra.mxu1 %v9677_v6  ;;  %9699 = vmatpush3.bf16.msra.mxu0 %v9698_v58  ;;  %v7567_v6 = vld [vmem:[%s11430_s25 + $0x70] sm:$0xff] }
 0xa20   :  { %9680 = vmatprep.subr.bf16.mxu1 %v9679_v16  ;;  %9700 = vmatprep.subr.bf16.mxu0 %v9988_v17  ;;  %v9713_v15 = vpack.c.bf16 %v7568_v8, %v7567_v6 }
 0xa23   :  { %9682 = vmatpush3.bf16.msra.mxu1 %v9681_v29  ;;  %9702 = vmatpush3.bf16.msra.mxu0 %v9701_v14 }
 0xa24   :  { %9684 = vmatprep.subr.bf16.mxu1 %v9683_v40  ;;  %9703 = vmatprep.subr.bf16.mxu0 %v9988_v17 }
 0xa27   :  { %9686 = vmatpush3.bf16.msra.mxu1 %v9685_v63  ;;  %9705 = vmatpush3.bf16.msra.mxu0 %v9704_v9 }
 0xa28   :  { %9688 = vmatprep.subr.bf16.mxu1 %v9687_v43  ;;  %9706 = vmatprep.subr.bf16.mxu0 %v9988_v17 }
 0xa2b   :  { %9690 = vmatpush3.bf16.msra.mxu1 %v9689_v25  ;;  %9708 = vmatpush3.bf16.msra.mxu0 %v9707_v49 }
 0xa2c   :  { %9709 = vmatprep.subr.bf16.mxu0 %v9988_v17 }
 0xa2f   :  { %9711 = vmatpush3.bf16.msra.mxu0 %v9710_v61 }
 0xa30   :  { %9712 = vmatprep.subr.bf16.mxu0 %v9988_v17 }
 0xa33   :  { %9714 = vmatpush3.bf16.msra.mxu0 %v9713_v15 }
 0xae9   :  { %v7418_v47 = vpop.f32.mrb[64].mxu0 }
 0xaea   :  { %v7419_v24 = vadd.f32 %v7418_v47, %v7342_v3  ;;  %v7420_v21 = vpop.f32.mrb[65].mxu0 }
 0xaeb   :  { %v7421_v12 = vadd.f32 %v7420_v21, %v7346_v44 }
 0xaec   :  { %v7425_v35 = vmul.f32 1.442695, %v7419_v24  ;;  %vm7423_vm4 = vcmp.gt.f32.partialorder %v7419_v24, 0.0 }
 0xaed   :  { %v7427_v22 = vmul.f32 1.442695, %v7421_v12  ;;  %vm7424_vm5 = vcmp.gt.f32.partialorder %v7421_v12, 0.0 }
 0xaee   :  { %9973 = vpow2.f32 %v7425_v35 }
 0xaef   :  { %9975 = vpow2.f32 %v7427_v22 }
 0xaf8   :  { %v9974_v31 = vpop.eup %9973 }
 0xaf9   :  { %v9976_v28 = vpop.eup %9975  ;;  %v7807_v32 = vadd.f32 -1.0, %v9974_v31 }
 0xafa   :  { %v7808_v4 = vadd.f32 -1.0, %v9976_v28 }
 0xafb   :  { %v7431_v52 = vmul.f32 1.6732632, %v7807_v32 }
 0xafc   :  { %v7432_v37 = vmul.f32 1.6732632, %v7808_v4 }
 0xafd   :  { %v7433_v1 = vsel %vm7423_vm4, %v7419_v24, %v7431_v52 }
 0xafe   :  { %v7434_v39 = vsel %vm7424_vm5, %v7421_v12, %v7432_v37  ;;  %v7435_v2 = vmul.f32 1.050701, %v7433_v1 }
 0xaff   :  { %v7436_v54 = vmul.f32 1.050701, %v7434_v39 }
 0xb01   :  { %7540 = vmatprep.mubr.f32.mxu1 %v7436_v54 }
 0xb02   :  { %7541 = vmatmul.mubr.f32.vlgmr.msra.gmra.mrb[66].mxu1 %v7435_v2 }
 0xbd5   :  { %v8252_v16 = vpop.f32.mrb[66].mxu1 }
 0xbd6   :  { %v8253_v57 = vpop.f32.mrb[67].mxu1 }
 0xbd7   :  { %v8254_v29 = vadd.f32 %v8253_v57, %v8252_v16 }
 0xbd9   :  { %v7543_v30 = vadd.f32 %v8254_v29, %v7809_v38 }
 0xbdb   :  { %v7547_v34 = vmul.f32 1.442695, %v7543_v30  ;;  %vm7546_vm6 = vcmp.gt.f32.partialorder %v7543_v30, 0.0 }
 0xbdd   :  { %9977 = vpow2.f32 %v7547_v34 }
 0xbe7   :  { %v9978_v17 = vpop.eup %9977 }
 0xbe8   :  { %v7810_v40 = vadd.f32 -1.0, %v9978_v17 }
 0xbea   :  { %v7550_v62 = vmul.f32 1.6732632, %v7810_v40 }
 0xbec   :  { %v7551_v36 = vsel %vm7546_vm6, %v7543_v30, %v7550_v62 }
 0xbed   :  { %v7552_v63 = vmul.f32 1.050701, %v7551_v36 }
 0xbef   :  { %9217 = vmatmul.mubr.f32.vlgmr.msra.gmra.mrb[66].mxu0 %v7552_v63 }
 0xcc2   :  { %v7642_v45 = vpop.f32.mrb[66].mxu0 }
 0xcc3   :  { %v7643_v43 = vadd.f32 %v7811_v20, %v7642_v45  ;;  %v9218_v42 = vpop.f32.mrb[67].mxu0 }
 0xcc5   :  { %7647 = vst.msk [vmem:[%s11434_s27] sm:$0x3] %vm7646_vm7, %v7643_v43 }

</bundles_post_ra>
